<compile_context>
chip_gen: v7x
topology: tpu7x:2x2x1
jax: 0.10.0
libtpu: 0.0.40
codegen_flags: <defaults>
</compile_context>

<pallas_src>
import math

import jax
import jax.numpy as jnp
from jax.experimental import pallas as pl
from jax.experimental.pallas import tpu as pltpu


# --------------------------------------------------------------------------
# Config (small, deterministic)
# --------------------------------------------------------------------------
class Cfg:
    hidden_size = 32          # H  (2H = 64, 8H = 256 -> sublane friendly)
    neg_count = 3             # C = neg_count + 1 = 4 candidates
    max_title_len = 8
    pos_hist_length = 4
    neg_hist_length = 4
    neighbor_length = 4
    news_num = 50
    word_num = 100


def _round_up(x, m):
    return ((x + m - 1) // m) * m


def _choose_tile(b_pad):
    """Largest lane-dense tile dividing b_pad that leaves >=2 grid steps
    (so both v7x TensorCores get work); single step only when b_pad == 128."""
    for t in (1024, 512, 256, 128):
        if b_pad % t == 0 and b_pad // t >= 2:
            return t
    return b_pad


# --------------------------------------------------------------------------
# Pallas kernel: PNRec head, de-duplicated transposed layout (users -> lanes)
# --------------------------------------------------------------------------
def pnrec_head_kernel(x_ref, wu_ref, wc_ref, b1_ref, w2_ref, b2_ref, out_ref):
    """x_ref rows (features on sublanes, users on lanes):
         [0        , 2H )      uv    = [title_v ; node_v]                (per user)
         [2H       , 10H)      mix   = 8 mixture chunks of H rows        (per user)
         [10H+2H*c , +2H)      tgt_c = [target_news_c ; target_nodes_c]  (per cand)
       wu/wc: (8H, 2H) packed first policy layer (user / target halves),
       b1: (8H,1), w2: (8,8H) block-diag second layer, b2: (8,1).
       out: (C, T) — candidate scores, lane-dense.
    """
    H = wu_ref.shape[1] // 2
    C = out_ref.shape[0]

    uv = x_ref[pl.ds(0, 2 * H), :]                 # (2H, T)
    mix = x_ref[pl.ds(2 * H, 8 * H), :]            # (8H, T)
    wu = wu_ref[...]
    wc = wc_ref[...]
    w2 = w2_ref[...]
    b2 = b2_ref[...]

    # candidate-independent half of the first policy layer (hoisted out of
    # the candidate loop)
    pre = jnp.dot(wu, uv, preferred_element_type=jnp.float32) + b1_ref[...]   # (8H,T)

    rows = []
    for c in range(C):                             # static unroll, C is small
        tgt = x_ref[pl.ds(10 * H + 2 * H * c, 2 * H), :]       # (2H, T)
        h1 = jnp.tanh(pre + jnp.dot(wc, tgt,
                                    preferred_element_type=jnp.float32))       # (8H,T)
        g = jnp.dot(w2, h1, preferred_element_type=jnp.float32) + b2           # (8, T)

        tn = tgt[0:H, :]                           # target_news^T   (H, T)
        td = tgt[H:2 * H, :]                       # target_nodes^T  (H, T)
        # per-chunk <mixture, target> dot products: VPU multiply + sublane sum
        dots = jnp.concatenate(
            [jnp.sum(mix[i * H:(i + 1) * H, :] * tn, axis=0, keepdims=True)
             for i in range(4)]
            + [jnp.sum(mix[(4 + i) * H:(5 + i) * H, :] * td, axis=0, keepdims=True)
               for i in range(4)],
            axis=0)                                # (8, T)

        rows.append(jnp.sum(g * dots, axis=0, keepdims=True))                  # (1, T)

    out_ref[...] = jnp.concatenate(rows, axis=0)   # (C, T) lane-dense store


def pnrec_head(title_v, node_v, mixes, target_news, target_nodes, weights):
    """title_v/node_v: (B,H); mixes: 8 x (B,H);
       target_news/target_nodes: (B, C, H).  Returns scores (B, C)."""
    B, H = title_v.shape
    C = target_news.shape[1]
    Wu, Wc, b1c, W2T, b2c = weights

    # Pad users only to the next multiple of 128 lanes (never up to a tile).
    B_pad = _round_up(max(B, 1), 128)
    TILE = _choose_tile(B_pad)
    n_steps = B_pad // TILE

    # Build the single streamed slab from the SMALL per-user / per-candidate
    # vectors (no big packed-array transpose, no C-fold jnp.repeat).
    feats = [title_v, node_v] + list(mixes)
    for c in range(C):
        feats.append(target_news[:, c, :])
        feats.append(target_nodes[:, c, :])
    xT = jnp.concatenate([f.T for f in feats], axis=0)        # (10H + 2HC, B)
    xT = jnp.pad(xT, ((0, 0), (0, B_pad - B)))                # zero lane padding

    rows_in = 10 * H + 2 * H * C

    stream_kwargs = {}
    if n_steps >= 3:
        # third buffer only pays when the grid is long enough to pipeline
        stream_kwargs["pipeline_mode"] = pl.Buffered(3)
    stream_spec = pl.BlockSpec((rows_in, TILE), lambda i: (0, i), **stream_kwargs)

    def resident(shape):   # weights: constant block index -> stay in VMEM
        return pl.BlockSpec(shape, lambda i: (0,) * len(shape))

    weight_bytes = 4 * (Wu.size + Wc.size + b1c.size + W2T.size + b2c.size)
    cost = pl.CostEstimate(
        flops=B_pad * (2 * (8 * H) * (2 * H)
                       + C * (2 * (8 * H) * (2 * H) + 2 * 8 * (8 * H) + 10 * 8 * H)),
        transcendentals=B_pad * C * 8 * H,
        bytes_accessed=B_pad * (rows_in + C) * 4 + weight_bytes,
    )

    out = pl.pallas_call(
        pnrec_head_kernel,
        out_shape=jax.ShapeDtypeStruct((C, B_pad), jnp.float32),
        grid=(n_steps,),
        in_specs=[stream_spec,
                  resident(Wu.shape), resident(Wc.shape), resident(b1c.shape),
                  resident(W2T.shape), resident(b2c.shape)],
        out_specs=pl.BlockSpec((C, TILE), lambda i: (0, i)),
        compiler_params=pltpu.CompilerParams(
            dimension_semantics=("parallel",),
            vmem_limit_bytes=32 * 1024 * 1024),
        cost_estimate=cost,
    )(xT, Wu, Wc, b1c, W2T, b2c)

    return out[:, :B].T                                        # (B, C)


# --------------------------------------------------------------------------
# Deterministic parameter init
# --------------------------------------------------------------------------
def _lin(key, fin, fout):
    k1, k2 = jax.random.split(key)
    bound = 1.0 / math.sqrt(fin)
    W = jax.random.uniform(k1, (fin, fout), jnp.float32, -bound, bound)
    b = jax.random.uniform(k2, (fout,), jnp.float32, -bound, bound)
    return W, b


NE_NAMES = ['pos_s', 'neg_s', 'pos_c', 'neg_c',
            'pos_sn', 'neg_sn', 'pos_cn', 'neg_cn']


def init_params(key, cfg):
    H = cfg.hidden_size
    ks = jax.random.split(key, 32)
    p = {}
    p['word_emb'] = jax.random.normal(ks[0], (cfg.word_num, H), jnp.float32) * 0.1
    p['news_emb'] = jax.random.normal(ks[1], (cfg.news_num, H), jnp.float32) * 0.1
    p['title_proj'] = _lin(ks[2], H, H)
    p['ta_W'], p['ta_b'] = _lin(ks[3], H, H)
    p['ta_v'] = jax.random.normal(ks[4], (H,), jnp.float32) * 0.1
    p['na_W'], p['na_b'] = _lin(ks[5], H, H)
    p['na_v'] = jax.random.normal(ks[6], (H,), jnp.float32) * 0.1
    for i, name in enumerate(NE_NAMES):
        p['ne_' + name] = _lin(ks[7 + i], H, H)
    p['gat_W'], p['gat_b'] = _lin(ks[15], H, H)
    p['gat_a'] = jax.random.normal(ks[16], (2 * H,), jnp.float32) * 0.1
    policy = {}
    for i, name in enumerate(NE_NAMES):
        ka, kb = jax.random.split(ks[17 + i])
        W1, b1 = _lin(ka, 2 * H, H)
        W2, b2 = _lin(kb, H, 1)
        policy[name] = (W1, b1, W2, b2)
    p['policy'] = policy
    return p


def pack_policy_weights(policy, H):
    """Pack the eight (2H -> H -> 1) policy MLPs for the de-duplicated,
    transposed kernel layout.

    Heads 0..3 (news) read [title_v ; target_news]; heads 4..7 (nodes) read
    [node_v ; target_nodes].  The first linear layer is split into a
    candidate-independent part Wu (applied to [title_v ; node_v]) and a
    per-candidate part Wc (applied to [target_news_c ; target_nodes_c]).
    """
    # TODO(synk): bf16 weights/streams would halve HBM traffic on v6e/v7x but
    # are kept f32 to stay within the 1e-3 tolerance vs the f32 reference.
    Wu = jnp.zeros((8 * H, 2 * H), jnp.float32)
    Wc = jnp.zeros((8 * H, 2 * H), jnp.float32)
    b1_rows, w2_rows, b2_rows = [], [], []
    for idx, name in enumerate(NE_NAMES):
        W1, b1, W2, b2 = policy[name]          # (2H,H), (H,), (H,1), (1,)
        r0 = idx * H
        col = 0 if idx < 4 else H              # news heads: title_v; node heads: node_v
        Wu = Wu.at[r0:r0 + H, col:col + H].set(W1[:H, :].T)   # per-user half
        Wc = Wc.at[r0:r0 + H, col:col + H].set(W1[H:, :].T)   # per-candidate half
        b1_rows.append(b1)
        w2_rows.append(jnp.zeros((8 * H,), jnp.float32).at[r0:r0 + H].set(W2[:, 0]))
        b2_rows.append(b2[0])
    b1c = jnp.concatenate(b1_rows)[:, None]    # (8H, 1)
    W2T = jnp.stack(w2_rows, axis=0)           # (8, 8H) block-diagonal
    b2c = jnp.stack(b2_rows)[:, None]          # (8, 1)
    return Wu, Wc, b1c, W2T, b2c


# --------------------------------------------------------------------------
# Plain-JAX glue (stand-ins for undefined submodules)
# --------------------------------------------------------------------------
# TODO(synk): TitleEncoder / NodesEncoder / GatNet / SelfAttend definitions
# were not provided with the module; deterministic simplified versions below.
def encode_titles(titles, params):
    emb = params['word_emb'][titles]            # (M, L, H)
    pooled = emb.mean(axis=-2)                  # (M, H)
    W, b = params['title_proj']
    return jnp.tanh(pooled @ W + b)


def self_attend(x, W, b, v):
    scores = jnp.tanh(x @ W + b) @ v            # (B, L)
    a = jax.nn.softmax(scores, axis=-1)
    return jnp.einsum('bl,blh->bh', a, x)


def gat(nodes, edge_index, W, b, a):
    h = nodes @ W + b
    src, dst = edge_index[0], edge_index[1]
    e = jax.nn.leaky_relu(
        jnp.concatenate([h[src], h[dst]], axis=-1) @ a, negative_slope=0.2)
    e = jnp.exp(e - jnp.max(e))
    denom = jax.ops.segment_sum(e, dst, num_segments=nodes.shape[0])
    alpha = e / (denom[dst] + 1e-9)
    out = jax.ops.segment_sum(alpha[:, None] * h[src], dst,
                              num_segments=nodes.shape[0])
    return jax.nn.elu(out)


def nodes_encoder(pos_his, neg_his, pos_nodes, neg_nodes, params):
    def lin(x, name):
        W, b = params['ne_' + name]
        return jnp.tanh(x @ W + b)
    pos_s = lin(pos_his.mean(axis=1), 'pos_s')
    neg_s = lin(neg_his.mean(axis=1), 'neg_s')
    pos_c = lin(pos_his.mean(axis=1), 'pos_c')
    neg_c = lin(neg_his.mean(axis=1), 'neg_c')
    pos_sn = lin(pos_nodes.mean(axis=1), 'pos_sn')
    neg_sn = lin(neg_nodes.mean(axis=1), 'neg_sn')
    pos_cn = lin(pos_nodes.mean(axis=1), 'pos_cn')
    neg_cn = lin(neg_nodes.mean(axis=1), 'neg_cn')
    return pos_s, pos_sn, neg_s, neg_sn, pos_c, pos_cn, neg_c, neg_cn


# --------------------------------------------------------------------------
# Full PNRec forward (glue + Pallas head).  Returns (pallas_score, ref_score)
# --------------------------------------------------------------------------
def pnrec_forward(data, params, cfg):
    C = cfg.neg_count + 1
    H = cfg.hidden_size
    B = data['target_news_id'].shape[0]
    L = cfg.pos_hist_length + cfg.neg_hist_length + cfg.neighbor_length
    N = B * C

    target_news = encode_titles(
        data['target_info'].reshape(-1, cfg.max_title_len), params
    ).reshape(B, C, H)
    target_nodes = params['news_emb'][data['target_news_id']]          # (B,C,H)

    pos_his = encode_titles(
        data['pos_news_info'].reshape(-1, cfg.max_title_len), params
    ).reshape(B, cfg.pos_hist_length, H)
    neg_his = encode_titles(
        data['neg_news_info'].reshape(-1, cfg.max_title_len), params
    ).reshape(B, cfg.neg_hist_length, H)

    title_v = self_attend(jnp.concatenate([pos_his, neg_his], axis=1),
                          params['ta_W'], params['ta_b'], params['ta_v'])  # (B,H)

    nodes = params['news_emb'][data['x'][:, 0]]                        # (B*L, H)
    node_seq = nodes.reshape(B, L, H)
    node_v = self_attend(
        node_seq[:, :cfg.pos_hist_length + cfg.neg_hist_length, :],
        params['na_W'], params['na_b'], params['na_v'])                # (B,H)

    gnodes = gat(nodes, data['edge_index'],
                 params['gat_W'], params['gat_b'], params['gat_a']).reshape(B, L, H)
    pos_nodes = gnodes[:, :cfg.pos_hist_length, :]
    neg_nodes = gnodes[:, cfg.pos_hist_length:
                       cfg.pos_hist_length + cfg.neg_hist_length, :]

    (pos_s, pos_s_n, neg_s, neg_s_n,
     pos_c, pos_c_n, neg_c, neg_c_n) = nodes_encoder(
        pos_his, neg_his, pos_nodes, neg_nodes, params)

    # ------------- Pallas head: de-duplicated per-user streaming -----------
    mixes = (pos_s, neg_s, pos_c, neg_c, pos_s_n, neg_s_n, pos_c_n, neg_c_n)
    weights = pack_policy_weights(params['policy'], H)
    score = pnrec_head(title_v, node_v, mixes, target_news, target_nodes,
                       weights)                                        # (B, C)

    # ---------------- pure-JAX reference (unpacked policy heads) -----------
    def rep(v):                                   # .repeat(1, C).view(-1, C, H)
        return jnp.repeat(v, C, axis=0)           # (B,H) -> (N,H)

    tgt_news_f = target_news.reshape(N, H)
    tgt_nodes_f = target_nodes.reshape(N, H)
    news_states = jnp.concatenate([rep(title_v), tgt_news_f], axis=-1)  # (N,2H)
    node_states = jnp.concatenate([rep(node_v), tgt_nodes_f], axis=-1)  # (N,2H)

    def apply_policy(states, p):
        W1, b1, W2, b2 = p
        return jnp.tanh(states @ W1 + b1) @ W2 + b2     # (N,1)

    pol = params['policy']
    g1 = apply_policy(news_states, pol['pos_s'])
    g2 = apply_policy(news_states, pol['neg_s'])
    g3 = apply_policy(news_states, pol['pos_c'])
    g4 = apply_policy(news_states, pol['neg_c'])
    news_final = g1 * rep(pos_s) + g2 * rep(neg_s) + g3 * rep(pos_c) + g4 * rep(neg_c)
    gn1 = apply_policy(node_states, pol['pos_sn'])
    gn2 = apply_policy(node_states, pol['neg_sn'])
    gn3 = apply_policy(node_states, pol['pos_cn'])
    gn4 = apply_policy(node_states, pol['neg_cn'])
    node_final = (gn1 * rep(pos_s_n) + gn2 * rep(neg_s_n)
                  + gn3 * rep(pos_c_n) + gn4 * rep(neg_c_n))
    score_ref = (jnp.sum(news_final * tgt_news_f, axis=-1)
                 + jnp.sum(node_final * tgt_nodes_f, axis=-1)).reshape(B, C)

    return score, score_ref


# --------------------------------------------------------------------------
# Data construction
# --------------------------------------------------------------------------
def make_data(key, cfg, batch):
    C = cfg.neg_count + 1
    L = cfg.pos_hist_length + cfg.neg_hist_length + cfg.neighbor_length
    ks = jax.random.split(key, 5)
    data = {}
    data['target_info'] = jax.random.randint(
        ks[0], (batch, C, cfg.max_title_len), 0, cfg.word_num, jnp.int32)
    data['target_news_id'] = jax.random.randint(
        ks[1], (batch, C), 0, cfg.news_num, jnp.int32)
    data['pos_news_info'] = jax.random.randint(
        ks[2], (batch, cfg.pos_hist_length, cfg.max_title_len), 0, cfg.word_num, jnp.int32)
    data['neg_news_info'] = jax.random.randint(
        ks[3], (batch, cfg.neg_hist_length, cfg.max_title_len), 0, cfg.word_num, jnp.int32)
    data['x'] = jax.random.randint(
        ks[4], (batch * L, 1), 0, cfg.news_num, jnp.int32)
    # ring + self-loop edges per graph (PyG-style batched edge_index)
    srcs, dsts = [], []
    for g in range(batch):
        off = g * L
        for i in range(L):
            srcs.append(off + i); dsts.append(off + (i + 1) % L)
            srcs.append(off + i); dsts.append(off + i)
    data['edge_index'] = jnp.array([srcs, dsts], dtype=jnp.int32)
    return data


# --------------------------------------------------------------------------
if __name__ == "__main__":
    cfg = Cfg()
    batch = 2
    key = jax.random.PRNGKey(0)
    pk, dk = jax.random.split(key)
    params = init_params(pk, cfg)
    data = make_data(dk, cfg, batch)

    score, score_ref = pnrec_forward(data, params, cfg)
    score = jax.block_until_ready(score)

    assert score.shape == (batch, cfg.neg_count + 1)
    if not bool(jnp.allclose(score, score_ref, rtol=1e-3, atol=1e-3)):
        raise AssertionError(
            f"Pallas head mismatch:\n{score}\nvs ref\n{score_ref}")
    print("KERNEL_OK")
</pallas_src>

<mosaic_0001>
module attributes {stable_mosaic.version = 11 : i64} {
  func.func @pnrec_head_kernel(%arg0: i32, %arg1: memref<576x128xf32, #tpu.memory_space<vmem>>, %arg2: memref<256x64xf32, #tpu.memory_space<vmem>>, %arg3: memref<256x64xf32, #tpu.memory_space<vmem>>, %arg4: memref<256x1xf32, #tpu.memory_space<vmem>>, %arg5: memref<8x256xf32, #tpu.memory_space<vmem>>, %arg6: memref<8x1xf32, #tpu.memory_space<vmem>>, %arg7: memref<4x128xf32, #tpu.memory_space<vmem>>) attributes {dimension_semantics = [#tpu.dimension_semantics<parallel>], iteration_bounds = array<i64: 1>, scalar_prefetch = 0 : i64, scratch_operands = 0 : i64, tpu.core_type = #tpu.core_type<tc>, window_params = [{transform_indices = @transform_0, window_bounds = array<i64: 576, 128>}, {pipeline_mode = #tpu.pipeline_mode<synchronous>, transform_indices = @transform_1, window_bounds = array<i64: 256, 64>}, {pipeline_mode = #tpu.pipeline_mode<synchronous>, transform_indices = @transform_2, window_bounds = array<i64: 256, 64>}, {pipeline_mode = #tpu.pipeline_mode<synchronous>, transform_indices = @transform_3, window_bounds = array<i64: 256, 1>}, {pipeline_mode = #tpu.pipeline_mode<synchronous>, transform_indices = @transform_4, window_bounds = array<i64: 8, 256>}, {pipeline_mode = #tpu.pipeline_mode<synchronous>, transform_indices = @transform_5, window_bounds = array<i64: 8, 1>}, {transform_indices = @transform_6, window_bounds = array<i64: 4, 128>}]} {
    %c0 = arith.constant 0 : index
    %c0_0 = arith.constant 0 : index
    %0 = vector.load %arg1[%c0, %c0_0] : memref<576x128xf32, #tpu.memory_space<vmem>>, vector<64x128xf32>
    %c64 = arith.constant 64 : index
    %c0_1 = arith.constant 0 : index
    %1 = vector.load %arg1[%c64, %c0_1] : memref<576x128xf32, #tpu.memory_space<vmem>>, vector<256x128xf32>
    %c0_2 = arith.constant 0 : index
    %c0_3 = arith.constant 0 : index
    %2 = vector.load %arg2[%c0_2, %c0_3] : memref<256x64xf32, #tpu.memory_space<vmem>>, vector<256x64xf32>
    %c0_4 = arith.constant 0 : index
    %c0_5 = arith.constant 0 : index
    %3 = vector.load %arg3[%c0_4, %c0_5] : memref<256x64xf32, #tpu.memory_space<vmem>>, vector<256x64xf32>
    %c0_6 = arith.constant 0 : index
    %c0_7 = arith.constant 0 : index
    %4 = vector.load %arg5[%c0_6, %c0_7] : memref<8x256xf32, #tpu.memory_space<vmem>>, vector<8x256xf32>
    %c0_8 = arith.constant 0 : index
    %c0_9 = arith.constant 0 : index
    %5 = vector.load %arg6[%c0_8, %c0_9] : memref<8x1xf32, #tpu.memory_space<vmem>>, vector<8x1xf32>
    %cst = arith.constant dense<0.000000e+00> : vector<256x128xf32>
    %6 = tpu.matmul %2, %0, %cst {dimension_numbers = #tpu.dot_dimension_numbers<[1], [0], [0], [1], [0, 0, 1, 1], [], []>} : vector<256x64xf32>, vector<64x128xf32>, vector<256x128xf32> -> vector<256x128xf32>
    %c0_10 = arith.constant 0 : index
    %c0_11 = arith.constant 0 : index
    %7 = vector.load %arg4[%c0_10, %c0_11] : memref<256x1xf32, #tpu.memory_space<vmem>>, vector<256x1xf32>
    %8 = vector.broadcast %7 : vector<256x1xf32> to vector<256x128xf32>
    %9 = arith.addf %6, %8 : vector<256x128xf32>
    %c320 = arith.constant 320 : index
    %c0_12 = arith.constant 0 : index
    %10 = vector.load %arg1[%c320, %c0_12] : memref<576x128xf32, #tpu.memory_space<vmem>>, vector<64x128xf32>
    %cst_13 = arith.constant dense<0.000000e+00> : vector<256x128xf32>
    %11 = tpu.matmul %3, %10, %cst_13 {dimension_numbers = #tpu.dot_dimension_numbers<[1], [0], [0], [1], [0, 0, 1, 1], [], []>} : vector<256x64xf32>, vector<64x128xf32>, vector<256x128xf32> -> vector<256x128xf32>
    %12 = arith.addf %9, %11 : vector<256x128xf32>
    %13 = math.tanh %12 : vector<256x128xf32>
    %cst_14 = arith.constant dense<0.000000e+00> : vector<8x128xf32>
    %14 = tpu.matmul %4, %13, %cst_14 {dimension_numbers = #tpu.dot_dimension_numbers<[1], [0], [0], [1], [0, 0, 1, 1], [], []>} : vector<8x256xf32>, vector<256x128xf32>, vector<8x128xf32> -> vector<8x128xf32>
    %15 = vector.broadcast %5 : vector<8x1xf32> to vector<8x128xf32>
    %16 = arith.addf %14, %15 : vector<8x128xf32>
    %17 = vector.extract_strided_slice %10 {offsets = [0, 0], sizes = [32, 128], strides = [1, 1]} : vector<64x128xf32> to vector<32x128xf32>
    %18 = vector.extract_strided_slice %10 {offsets = [32, 0], sizes = [32, 128], strides = [1, 1]} : vector<64x128xf32> to vector<32x128xf32>
    %19 = vector.extract_strided_slice %1 {offsets = [0, 0], sizes = [32, 128], strides = [1, 1]} : vector<256x128xf32> to vector<32x128xf32>
    %20 = arith.mulf %19, %17 : vector<32x128xf32>
    %cst_15 = arith.constant dense<0.000000e+00> : vector<128xf32>
    %21 = vector.multi_reduction <add>, %20, %cst_15 [0] : vector<32x128xf32> to vector<128xf32>
    %22 = vector.shape_cast %21 : vector<128xf32> to vector<1x128xf32>
    %23 = vector.extract_strided_slice %1 {offsets = [32, 0], sizes = [32, 128], strides = [1, 1]} : vector<256x128xf32> to vector<32x128xf32>
    %24 = arith.mulf %23, %17 : vector<32x128xf32>
    %cst_16 = arith.constant dense<0.000000e+00> : vector<128xf32>
    %25 = vector.multi_reduction <add>, %24, %cst_16 [0] : vector<32x128xf32> to vector<128xf32>
    %26 = vector.shape_cast %25 : vector<128xf32> to vector<1x128xf32>
    %27 = vector.extract_strided_slice %1 {offsets = [64, 0], sizes = [32, 128], strides = [1, 1]} : vector<256x128xf32> to vector<32x128xf32>
    %28 = arith.mulf %27, %17 : vector<32x128xf32>
    %cst_17 = arith.constant dense<0.000000e+00> : vector<128xf32>
    %29 = vector.multi_reduction <add>, %28, %cst_17 [0] : vector<32x128xf32> to vector<128xf32>
    %30 = vector.shape_cast %29 : vector<128xf32> to vector<1x128xf32>
    %31 = vector.extract_strided_slice %1 {offsets = [96, 0], sizes = [32, 128], strides = [1, 1]} : vector<256x128xf32> to vector<32x128xf32>
    %32 = arith.mulf %31, %17 : vector<32x128xf32>
    %cst_18 = arith.constant dense<0.000000e+00> : vector<128xf32>
    %33 = vector.multi_reduction <add>, %32, %cst_18 [0] : vector<32x128xf32> to vector<128xf32>
    %34 = vector.shape_cast %33 : vector<128xf32> to vector<1x128xf32>
    %35 = vector.extract_strided_slice %1 {offsets = [128, 0], sizes = [32, 128], strides = [1, 1]} : vector<256x128xf32> to vector<32x128xf32>
    %36 = arith.mulf %35, %18 : vector<32x128xf32>
    %cst_19 = arith.constant dense<0.000000e+00> : vector<128xf32>
    %37 = vector.multi_reduction <add>, %36, %cst_19 [0] : vector<32x128xf32> to vector<128xf32>
    %38 = vector.shape_cast %37 : vector<128xf32> to vector<1x128xf32>
    %39 = vector.extract_strided_slice %1 {offsets = [160, 0], sizes = [32, 128], strides = [1, 1]} : vector<256x128xf32> to vector<32x128xf32>
    %40 = arith.mulf %39, %18 : vector<32x128xf32>
    %cst_20 = arith.constant dense<0.000000e+00> : vector<128xf32>
    %41 = vector.multi_reduction <add>, %40, %cst_20 [0] : vector<32x128xf32> to vector<128xf32>
    %42 = vector.shape_cast %41 : vector<128xf32> to vector<1x128xf32>
    %43 = vector.extract_strided_slice %1 {offsets = [192, 0], sizes = [32, 128], strides = [1, 1]} : vector<256x128xf32> to vector<32x128xf32>
    %44 = arith.mulf %43, %18 : vector<32x128xf32>
    %cst_21 = arith.constant dense<0.000000e+00> : vector<128xf32>
    %45 = vector.multi_reduction <add>, %44, %cst_21 [0] : vector<32x128xf32> to vector<128xf32>
    %46 = vector.shape_cast %45 : vector<128xf32> to vector<1x128xf32>
    %47 = vector.extract_strided_slice %1 {offsets = [224, 0], sizes = [32, 128], strides = [1, 1]} : vector<256x128xf32> to vector<32x128xf32>
    %48 = arith.mulf %47, %18 : vector<32x128xf32>
    %cst_22 = arith.constant dense<0.000000e+00> : vector<128xf32>
    %49 = vector.multi_reduction <add>, %48, %cst_22 [0] : vector<32x128xf32> to vector<128xf32>
    %50 = vector.shape_cast %49 : vector<128xf32> to vector<1x128xf32>
    %51 = tpu.concatenate %22, %26, %30, %34, %38, %42, %46, %50 in 0 : vector<1x128xf32>, vector<1x128xf32>, vector<1x128xf32>, vector<1x128xf32>, vector<1x128xf32>, vector<1x128xf32>, vector<1x128xf32>, vector<1x128xf32> -> vector<8x128xf32>
    %52 = arith.mulf %16, %51 : vector<8x128xf32>
    %cst_23 = arith.constant dense<0.000000e+00> : vector<128xf32>
    %53 = vector.multi_reduction <add>, %52, %cst_23 [0] : vector<8x128xf32> to vector<128xf32>
    %54 = vector.shape_cast %53 : vector<128xf32> to vector<1x128xf32>
    %c384 = arith.constant 384 : index
    %c0_24 = arith.constant 0 : index
    %55 = vector.load %arg1[%c384, %c0_24] : memref<576x128xf32, #tpu.memory_space<vmem>>, vector<64x128xf32>
    %cst_25 = arith.constant dense<0.000000e+00> : vector<256x128xf32>
    %56 = tpu.matmul %3, %55, %cst_25 {dimension_numbers = #tpu.dot_dimension_numbers<[1], [0], [0], [1], [0, 0, 1, 1], [], []>} : vector<256x64xf32>, vector<64x128xf32>, vector<256x128xf32> -> vector<256x128xf32>
    %57 = arith.addf %9, %56 : vector<256x128xf32>
    %58 = math.tanh %57 : vector<256x128xf32>
    %cst_26 = arith.constant dense<0.000000e+00> : vector<8x128xf32>
    %59 = tpu.matmul %4, %58, %cst_26 {dimension_numbers = #tpu.dot_dimension_numbers<[1], [0], [0], [1], [0, 0, 1, 1], [], []>} : vector<8x256xf32>, vector<256x128xf32>, vector<8x128xf32> -> vector<8x128xf32>
    %60 = vector.broadcast %5 : vector<8x1xf32> to vector<8x128xf32>
    %61 = arith.addf %59, %60 : vector<8x128xf32>
    %62 = vector.extract_strided_slice %55 {offsets = [0, 0], sizes = [32, 128], strides = [1, 1]} : vector<64x128xf32> to vector<32x128xf32>
    %63 = vector.extract_strided_slice %55 {offsets = [32, 0], sizes = [32, 128], strides = [1, 1]} : vector<64x128xf32> to vector<32x128xf32>
    %64 = vector.extract_strided_slice %1 {offsets = [0, 0], sizes = [32, 128], strides = [1, 1]} : vector<256x128xf32> to vector<32x128xf32>
    %65 = arith.mulf %64, %62 : vector<32x128xf32>
    %cst_27 = arith.constant dense<0.000000e+00> : vector<128xf32>
    %66 = vector.multi_reduction <add>, %65, %cst_27 [0] : vector<32x128xf32> to vector<128xf32>
    %67 = vector.shape_cast %66 : vector<128xf32> to vector<1x128xf32>
    %68 = vector.extract_strided_slice %1 {offsets = [32, 0], sizes = [32, 128], strides = [1, 1]} : vector<256x128xf32> to vector<32x128xf32>
    %69 = arith.mulf %68, %62 : vector<32x128xf32>
    %cst_28 = arith.constant dense<0.000000e+00> : vector<128xf32>
    %70 = vector.multi_reduction <add>, %69, %cst_28 [0] : vector<32x128xf32> to vector<128xf32>
    %71 = vector.shape_cast %70 : vector<128xf32> to vector<1x128xf32>
    %72 = vector.extract_strided_slice %1 {offsets = [64, 0], sizes = [32, 128], strides = [1, 1]} : vector<256x128xf32> to vector<32x128xf32>
    %73 = arith.mulf %72, %62 : vector<32x128xf32>
    %cst_29 = arith.constant dense<0.000000e+00> : vector<128xf32>
    %74 = vector.multi_reduction <add>, %73, %cst_29 [0] : vector<32x128xf32> to vector<128xf32>
    %75 = vector.shape_cast %74 : vector<128xf32> to vector<1x128xf32>
    %76 = vector.extract_strided_slice %1 {offsets = [96, 0], sizes = [32, 128], strides = [1, 1]} : vector<256x128xf32> to vector<32x128xf32>
    %77 = arith.mulf %76, %62 : vector<32x128xf32>
    %cst_30 = arith.constant dense<0.000000e+00> : vector<128xf32>
    %78 = vector.multi_reduction <add>, %77, %cst_30 [0] : vector<32x128xf32> to vector<128xf32>
    %79 = vector.shape_cast %78 : vector<128xf32> to vector<1x128xf32>
    %80 = vector.extract_strided_slice %1 {offsets = [128, 0], sizes = [32, 128], strides = [1, 1]} : vector<256x128xf32> to vector<32x128xf32>
    %81 = arith.mulf %80, %63 : vector<32x128xf32>
    %cst_31 = arith.constant dense<0.000000e+00> : vector<128xf32>
    %82 = vector.multi_reduction <add>, %81, %cst_31 [0] : vector<32x128xf32> to vector<128xf32>
    %83 = vector.shape_cast %82 : vector<128xf32> to vector<1x128xf32>
    %84 = vector.extract_strided_slice %1 {offsets = [160, 0], sizes = [32, 128], strides = [1, 1]} : vector<256x128xf32> to vector<32x128xf32>
    %85 = arith.mulf %84, %63 : vector<32x128xf32>
    %cst_32 = arith.constant dense<0.000000e+00> : vector<128xf32>
    %86 = vector.multi_reduction <add>, %85, %cst_32 [0] : vector<32x128xf32> to vector<128xf32>
    %87 = vector.shape_cast %86 : vector<128xf32> to vector<1x128xf32>
    %88 = vector.extract_strided_slice %1 {offsets = [192, 0], sizes = [32, 128], strides = [1, 1]} : vector<256x128xf32> to vector<32x128xf32>
    %89 = arith.mulf %88, %63 : vector<32x128xf32>
    %cst_33 = arith.constant dense<0.000000e+00> : vector<128xf32>
    %90 = vector.multi_reduction <add>, %89, %cst_33 [0] : vector<32x128xf32> to vector<128xf32>
    %91 = vector.shape_cast %90 : vector<128xf32> to vector<1x128xf32>
    %92 = vector.extract_strided_slice %1 {offsets = [224, 0], sizes = [32, 128], strides = [1, 1]} : vector<256x128xf32> to vector<32x128xf32>
    %93 = arith.mulf %92, %63 : vector<32x128xf32>
    %cst_34 = arith.constant dense<0.000000e+00> : vector<128xf32>
    %94 = vector.multi_reduction <add>, %93, %cst_34 [0] : vector<32x128xf32> to vector<128xf32>
    %95 = vector.shape_cast %94 : vector<128xf32> to vector<1x128xf32>
    %96 = tpu.concatenate %67, %71, %75, %79, %83, %87, %91, %95 in 0 : vector<1x128xf32>, vector<1x128xf32>, vector<1x128xf32>, vector<1x128xf32>, vector<1x128xf32>, vector<1x128xf32>, vector<1x128xf32>, vector<1x128xf32> -> vector<8x128xf32>
    %97 = arith.mulf %61, %96 : vector<8x128xf32>
    %cst_35 = arith.constant dense<0.000000e+00> : vector<128xf32>
    %98 = vector.multi_reduction <add>, %97, %cst_35 [0] : vector<8x128xf32> to vector<128xf32>
    %99 = vector.shape_cast %98 : vector<128xf32> to vector<1x128xf32>
    %c448 = arith.constant 448 : index
    %c0_36 = arith.constant 0 : index
    %100 = vector.load %arg1[%c448, %c0_36] : memref<576x128xf32, #tpu.memory_space<vmem>>, vector<64x128xf32>
    %cst_37 = arith.constant dense<0.000000e+00> : vector<256x128xf32>
    %101 = tpu.matmul %3, %100, %cst_37 {dimension_numbers = #tpu.dot_dimension_numbers<[1], [0], [0], [1], [0, 0, 1, 1], [], []>} : vector<256x64xf32>, vector<64x128xf32>, vector<256x128xf32> -> vector<256x128xf32>
    %102 = arith.addf %9, %101 : vector<256x128xf32>
    %103 = math.tanh %102 : vector<256x128xf32>
    %cst_38 = arith.constant dense<0.000000e+00> : vector<8x128xf32>
    %104 = tpu.matmul %4, %103, %cst_38 {dimension_numbers = #tpu.dot_dimension_numbers<[1], [0], [0], [1], [0, 0, 1, 1], [], []>} : vector<8x256xf32>, vector<256x128xf32>, vector<8x128xf32> -> vector<8x128xf32>
    %105 = vector.broadcast %5 : vector<8x1xf32> to vector<8x128xf32>
    %106 = arith.addf %104, %105 : vector<8x128xf32>
    %107 = vector.extract_strided_slice %100 {offsets = [0, 0], sizes = [32, 128], strides = [1, 1]} : vector<64x128xf32> to vector<32x128xf32>
    %108 = vector.extract_strided_slice %100 {offsets = [32, 0], sizes = [32, 128], strides = [1, 1]} : vector<64x128xf32> to vector<32x128xf32>
    %109 = vector.extract_strided_slice %1 {offsets = [0, 0], sizes = [32, 128], strides = [1, 1]} : vector<256x128xf32> to vector<32x128xf32>
    %110 = arith.mulf %109, %107 : vector<32x128xf32>
    %cst_39 = arith.constant dense<0.000000e+00> : vector<128xf32>
    %111 = vector.multi_reduction <add>, %110, %cst_39 [0] : vector<32x128xf32> to vector<128xf32>
    %112 = vector.shape_cast %111 : vector<128xf32> to vector<1x128xf32>
    %113 = vector.extract_strided_slice %1 {offsets = [32, 0], sizes = [32, 128], strides = [1, 1]} : vector<256x128xf32> to vector<32x128xf32>
    %114 = arith.mulf %113, %107 : vector<32x128xf32>
    %cst_40 = arith.constant dense<0.000000e+00> : vector<128xf32>
    %115 = vector.multi_reduction <add>, %114, %cst_40 [0] : vector<32x128xf32> to vector<128xf32>
    %116 = vector.shape_cast %115 : vector<128xf32> to vector<1x128xf32>
    %117 = vector.extract_strided_slice %1 {offsets = [64, 0], sizes = [32, 128], strides = [1, 1]} : vector<256x128xf32> to vector<32x128xf32>
    %118 = arith.mulf %117, %107 : vector<32x128xf32>
    %cst_41 = arith.constant dense<0.000000e+00> : vector<128xf32>
    %119 = vector.multi_reduction <add>, %118, %cst_41 [0] : vector<32x128xf32> to vector<128xf32>
    %120 = vector.shape_cast %119 : vector<128xf32> to vector<1x128xf32>
    %121 = vector.extract_strided_slice %1 {offsets = [96, 0], sizes = [32, 128], strides = [1, 1]} : vector<256x128xf32> to vector<32x128xf32>
    %122 = arith.mulf %121, %107 : vector<32x128xf32>
    %cst_42 = arith.constant dense<0.000000e+00> : vector<128xf32>
    %123 = vector.multi_reduction <add>, %122, %cst_42 [0] : vector<32x128xf32> to vector<128xf32>
    %124 = vector.shape_cast %123 : vector<128xf32> to vector<1x128xf32>
    %125 = vector.extract_strided_slice %1 {offsets = [128, 0], sizes = [32, 128], strides = [1, 1]} : vector<256x128xf32> to vector<32x128xf32>
    %126 = arith.mulf %125, %108 : vector<32x128xf32>
    %cst_43 = arith.constant dense<0.000000e+00> : vector<128xf32>
    %127 = vector.multi_reduction <add>, %126, %cst_43 [0] : vector<32x128xf32> to vector<128xf32>
    %128 = vector.shape_cast %127 : vector<128xf32> to vector<1x128xf32>
    %129 = vector.extract_strided_slice %1 {offsets = [160, 0], sizes = [32, 128], strides = [1, 1]} : vector<256x128xf32> to vector<32x128xf32>
    %130 = arith.mulf %129, %108 : vector<32x128xf32>
    %cst_44 = arith.constant dense<0.000000e+00> : vector<128xf32>
    %131 = vector.multi_reduction <add>, %130, %cst_44 [0] : vector<32x128xf32> to vector<128xf32>
    %132 = vector.shape_cast %131 : vector<128xf32> to vector<1x128xf32>
    %133 = vector.extract_strided_slice %1 {offsets = [192, 0], sizes = [32, 128], strides = [1, 1]} : vector<256x128xf32> to vector<32x128xf32>
    %134 = arith.mulf %133, %108 : vector<32x128xf32>
    %cst_45 = arith.constant dense<0.000000e+00> : vector<128xf32>
    %135 = vector.multi_reduction <add>, %134, %cst_45 [0] : vector<32x128xf32> to vector<128xf32>
    %136 = vector.shape_cast %135 : vector<128xf32> to vector<1x128xf32>
    %137 = vector.extract_strided_slice %1 {offsets = [224, 0], sizes = [32, 128], strides = [1, 1]} : vector<256x128xf32> to vector<32x128xf32>
    %138 = arith.mulf %137, %108 : vector<32x128xf32>
    %cst_46 = arith.constant dense<0.000000e+00> : vector<128xf32>
    %139 = vector.multi_reduction <add>, %138, %cst_46 [0] : vector<32x128xf32> to vector<128xf32>
    %140 = vector.shape_cast %139 : vector<128xf32> to vector<1x128xf32>
    %141 = tpu.concatenate %112, %116, %120, %124, %128, %132, %136, %140 in 0 : vector<1x128xf32>, vector<1x128xf32>, vector<1x128xf32>, vector<1x128xf32>, vector<1x128xf32>, vector<1x128xf32>, vector<1x128xf32>, vector<1x128xf32> -> vector<8x128xf32>
    %142 = arith.mulf %106, %141 : vector<8x128xf32>
    %cst_47 = arith.constant dense<0.000000e+00> : vector<128xf32>
    %143 = vector.multi_reduction <add>, %142, %cst_47 [0] : vector<8x128xf32> to vector<128xf32>
    %144 = vector.shape_cast %143 : vector<128xf32> to vector<1x128xf32>
    %c512 = arith.constant 512 : index
    %c0_48 = arith.constant 0 : index
    %145 = vector.load %arg1[%c512, %c0_48] : memref<576x128xf32, #tpu.memory_space<vmem>>, vector<64x128xf32>
    %cst_49 = arith.constant dense<0.000000e+00> : vector<256x128xf32>
    %146 = tpu.matmul %3, %145, %cst_49 {dimension_numbers = #tpu.dot_dimension_numbers<[1], [0], [0], [1], [0, 0, 1, 1], [], []>} : vector<256x64xf32>, vector<64x128xf32>, vector<256x128xf32> -> vector<256x128xf32>
    %147 = arith.addf %9, %146 : vector<256x128xf32>
    %148 = math.tanh %147 : vector<256x128xf32>
    %cst_50 = arith.constant dense<0.000000e+00> : vector<8x128xf32>
    %149 = tpu.matmul %4, %148, %cst_50 {dimension_numbers = #tpu.dot_dimension_numbers<[1], [0], [0], [1], [0, 0, 1, 1], [], []>} : vector<8x256xf32>, vector<256x128xf32>, vector<8x128xf32> -> vector<8x128xf32>
    %150 = vector.broadcast %5 : vector<8x1xf32> to vector<8x128xf32>
    %151 = arith.addf %149, %150 : vector<8x128xf32>
    %152 = vector.extract_strided_slice %145 {offsets = [0, 0], sizes = [32, 128], strides = [1, 1]} : vector<64x128xf32> to vector<32x128xf32>
    %153 = vector.extract_strided_slice %145 {offsets = [32, 0], sizes = [32, 128], strides = [1, 1]} : vector<64x128xf32> to vector<32x128xf32>
    %154 = vector.extract_strided_slice %1 {offsets = [0, 0], sizes = [32, 128], strides = [1, 1]} : vector<256x128xf32> to vector<32x128xf32>
    %155 = arith.mulf %154, %152 : vector<32x128xf32>
    %cst_51 = arith.constant dense<0.000000e+00> : vector<128xf32>
    %156 = vector.multi_reduction <add>, %155, %cst_51 [0] : vector<32x128xf32> to vector<128xf32>
    %157 = vector.shape_cast %156 : vector<128xf32> to vector<1x128xf32>
    %158 = vector.extract_strided_slice %1 {offsets = [32, 0], sizes = [32, 128], strides = [1, 1]} : vector<256x128xf32> to vector<32x128xf32>
    %159 = arith.mulf %158, %152 : vector<32x128xf32>
    %cst_52 = arith.constant dense<0.000000e+00> : vector<128xf32>
    %160 = vector.multi_reduction <add>, %159, %cst_52 [0] : vector<32x128xf32> to vector<128xf32>
    %161 = vector.shape_cast %160 : vector<128xf32> to vector<1x128xf32>
    %162 = vector.extract_strided_slice %1 {offsets = [64, 0], sizes = [32, 128], strides = [1, 1]} : vector<256x128xf32> to vector<32x128xf32>
    %163 = arith.mulf %162, %152 : vector<32x128xf32>
    %cst_53 = arith.constant dense<0.000000e+00> : vector<128xf32>
    %164 = vector.multi_reduction <add>, %163, %cst_53 [0] : vector<32x128xf32> to vector<128xf32>
    %165 = vector.shape_cast %164 : vector<128xf32> to vector<1x128xf32>
    %166 = vector.extract_strided_slice %1 {offsets = [96, 0], sizes = [32, 128], strides = [1, 1]} : vector<256x128xf32> to vector<32x128xf32>
    %167 = arith.mulf %166, %152 : vector<32x128xf32>
    %cst_54 = arith.constant dense<0.000000e+00> : vector<128xf32>
    %168 = vector.multi_reduction <add>, %167, %cst_54 [0] : vector<32x128xf32> to vector<128xf32>
    %169 = vector.shape_cast %168 : vector<128xf32> to vector<1x128xf32>
    %170 = vector.extract_strided_slice %1 {offsets = [128, 0], sizes = [32, 128], strides = [1, 1]} : vector<256x128xf32> to vector<32x128xf32>
    %171 = arith.mulf %170, %153 : vector<32x128xf32>
    %cst_55 = arith.constant dense<0.000000e+00> : vector<128xf32>
    %172 = vector.multi_reduction <add>, %171, %cst_55 [0] : vector<32x128xf32> to vector<128xf32>
    %173 = vector.shape_cast %172 : vector<128xf32> to vector<1x128xf32>
    %174 = vector.extract_strided_slice %1 {offsets = [160, 0], sizes = [32, 128], strides = [1, 1]} : vector<256x128xf32> to vector<32x128xf32>
    %175 = arith.mulf %174, %153 : vector<32x128xf32>
    %cst_56 = arith.constant dense<0.000000e+00> : vector<128xf32>
    %176 = vector.multi_reduction <add>, %175, %cst_56 [0] : vector<32x128xf32> to vector<128xf32>
    %177 = vector.shape_cast %176 : vector<128xf32> to vector<1x128xf32>
    %178 = vector.extract_strided_slice %1 {offsets = [192, 0], sizes = [32, 128], strides = [1, 1]} : vector<256x128xf32> to vector<32x128xf32>
    %179 = arith.mulf %178, %153 : vector<32x128xf32>
    %cst_57 = arith.constant dense<0.000000e+00> : vector<128xf32>
    %180 = vector.multi_reduction <add>, %179, %cst_57 [0] : vector<32x128xf32> to vector<128xf32>
    %181 = vector.shape_cast %180 : vector<128xf32> to vector<1x128xf32>
    %182 = vector.extract_strided_slice %1 {offsets = [224, 0], sizes = [32, 128], strides = [1, 1]} : vector<256x128xf32> to vector<32x128xf32>
    %183 = arith.mulf %182, %153 : vector<32x128xf32>
    %cst_58 = arith.constant dense<0.000000e+00> : vector<128xf32>
    %184 = vector.multi_reduction <add>, %183, %cst_58 [0] : vector<32x128xf32> to vector<128xf32>
    %185 = vector.shape_cast %184 : vector<128xf32> to vector<1x128xf32>
    %186 = tpu.concatenate %157, %161, %165, %169, %173, %177, %181, %185 in 0 : vector<1x128xf32>, vector<1x128xf32>, vector<1x128xf32>, vector<1x128xf32>, vector<1x128xf32>, vector<1x128xf32>, vector<1x128xf32>, vector<1x128xf32> -> vector<8x128xf32>
    %187 = arith.mulf %151, %186 : vector<8x128xf32>
    %cst_59 = arith.constant dense<0.000000e+00> : vector<128xf32>
    %188 = vector.multi_reduction <add>, %187, %cst_59 [0] : vector<8x128xf32> to vector<128xf32>
    %189 = vector.shape_cast %188 : vector<128xf32> to vector<1x128xf32>
    %190 = tpu.concatenate %54, %99, %144, %189 in 0 : vector<1x128xf32>, vector<1x128xf32>, vector<1x128xf32>, vector<1x128xf32> -> vector<4x128xf32>
    %c0_60 = arith.constant 0 : index
    %c0_61 = arith.constant 0 : index
    %191 = vector.load %arg7[%c0_60, %c0_61] : memref<4x128xf32, #tpu.memory_space<vmem>>, vector<4x128xf32>
    tpu.vector_store %arg7[%c0_60, %c0_61], %190 {strides = array<i32>} : memref<4x128xf32, #tpu.memory_space<vmem>>, vector<4x128xf32>,
    return
  }
  func.func @transform_0(%arg0: i32) -> (i32, i32) {
    %c0_i32 = arith.constant 0 : i32
    %c0_i32_0 = arith.constant 0 : i32
    return %c0_i32, %arg0 : i32, i32
  }
  func.func @transform_1(%arg0: i32) -> (i32, i32) {
    %c0_i32 = arith.constant 0 : i32
    %c0_i32_0 = arith.constant 0 : i32
    %c0_i32_1 = arith.constant 0 : i32
    return %c0_i32, %c0_i32_0 : i32, i32
  }
  func.func @transform_2(%arg0: i32) -> (i32, i32) {
    %c0_i32 = arith.constant 0 : i32
    %c0_i32_0 = arith.constant 0 : i32
    %c0_i32_1 = arith.constant 0 : i32
    return %c0_i32, %c0_i32_0 : i32, i32
  }
  func.func @transform_3(%arg0: i32) -> (i32, i32) {
    %c0_i32 = arith.constant 0 : i32
    %c0_i32_0 = arith.constant 0 : i32
    %c0_i32_1 = arith.constant 0 : i32
    return %c0_i32, %c0_i32_0 : i32, i32
  }
  func.func @transform_4(%arg0: i32) -> (i32, i32) {
    %c0_i32 = arith.constant 0 : i32
    %c0_i32_0 = arith.constant 0 : i32
    %c0_i32_1 = arith.constant 0 : i32
    return %c0_i32, %c0_i32_0 : i32, i32
  }
  func.func @transform_5(%arg0: i32) -> (i32, i32) {
    %c0_i32 = arith.constant 0 : i32
    %c0_i32_0 = arith.constant 0 : i32
    %c0_i32_1 = arith.constant 0 : i32
    return %c0_i32, %c0_i32_0 : i32, i32
  }
  func.func @transform_6(%arg0: i32) -> (i32, i32) {
    %c0_i32 = arith.constant 0 : i32
    %c0_i32_0 = arith.constant 0 : i32
    return %c0_i32, %arg0 : i32, i32
  }
}

</mosaic_0001>

<bundles_post_ra>
// kernel: tpu_custom_call.1
= control target key start
LH: loop header
LB: loop body
LE: loop exit
PB: predicated region body
PF: predicated region fallthrough
CT: control target
= control target key end

     0   :  { %v4105_v7 = vmov 0   ;;  %vm323_vm0 = vcmask 523264   ;;  %s6385_s0 = inlined_call_operand.vmem [shape: f32[576,128], index: 0, kind: input, shape index: {}]   ;;  %s6386_s1 = inlined_call_operand.vmem [shape: f32[256,64], index: 1, kind: input, shape index: {}]   ;;  %s6387_s2 = inlined_call_operand.vmem [shape: f32[256,64], index: 2, kind: input, shape index: {}]   ;;  %s6388_s3 = inlined_call_operand.vmem [shape: f32[256,1], index: 3, kind: input, shape index: {}]   ;;  %s6389_s4 = inlined_call_operand.vmem [shape: f32[8,256], index: 4, kind: input, shape index: {}]   ;;  %s6390_s5 = inlined_call_operand.vmem [shape: f32[8,1], index: 5, kind: input, shape index: {}]   ;;  %s6391_s6 = inlined_call_operand.hbm [shape: f32[4,128], index: 6, kind: output, shape index: {}]  }
   0x1   :  { %v24_v0 = vld [vmem:[%s6385_s0] sm:$0xff]  ;;  %v25_v1 = vld [vmem:[%s6385_s0 + $0x8] sm:$0xff]  ;;  %3749 = vset.pattern.permute.xlu0 %v4105_v7  ;;  %3750 = vset.pattern.permute.xlu1 %v4105_v7  ;;  %v26_v18 = vld [vmem:[%s6385_s0 + $0x10] sm:$0xff] }
   0x2   :  { %v4151_v2 = vld [vmem:[%s6385_s0 + $0x40] sm:$0xff]  ;;  %v3531_v3 = vpack.c.bf16 %v25_v1, %v24_v0  ;;  %v4156_v4 = vld [vmem:[%s6385_s0 + $0x48] sm:$0xff]  ;;  %v27_v19 = vld [vmem:[%s6385_s0 + $0x18] sm:$0xff] }
   0x3   :  { %v4161_v5 = vld [vmem:[%s6385_s0 + $0x60] sm:$0xff]  ;;  %v4166_v6 = vld [vmem:[%s6385_s0 + $0x68] sm:$0xff]  ;;  %v4206_v20 = vld [vmem:[%s6385_s0 + $0x50] sm:$0xff]  ;;  %v3535_v30 = vpack.c.bf16 %v27_v19, %v26_v18 }
   0x4   :  { %v4171_v8 = vld [vmem:[%s6385_s0 + $0x80] sm:$0xff]  ;;  %v4176_v9 = vld [vmem:[%s6385_s0 + $0x88] sm:$0xff]  ;;  %3532 = vmatprep.subr.bf16.mxu0 %v3531_v3  ;;  %v4215_v25 = vld [vmem:[%s6385_s0 + $0x58] sm:$0xff] }
   0x5   :  { %v4181_v10 = vld [vmem:[%s6385_s0 + $0xa0] sm:$0xff]  ;;  %v4186_v11 = vld [vmem:[%s6385_s0 + $0xa8] sm:$0xff]  ;;  %3534 = vmatpush3.bf16.msra.mxu0 %v3531_v3  ;;  %v4220_v26 = vld [vmem:[%s6385_s0 + $0x70] sm:$0xff] }
   0x6   :  { %v645_v12 = vld [vmem:[%s6385_s0 + $0x140] sm:$0xff]  ;;  %v646_v13 = vld [vmem:[%s6385_s0 + $0x148] sm:$0xff]  ;;  %v4225_v27 = vld [vmem:[%s6385_s0 + $0x78] sm:$0xff]  ;;  %3536 = vmatprep.subr.bf16.mxu0 %v3535_v30 }
   0x7   :  { %v3547_v14 = vpack.c.bf16 %v646_v13, %v645_v12  ;;  %v1113_v15 = vmul.f32 %v645_v12, %v4151_v2  ;;  %v1114_v16 = vmul.f32 %v646_v13, %v4156_v4  ;;  %v1126_v17 = vmul.f32 %v645_v12, %v4161_v5  ;;  %v4231_v31 = vld [vmem:[%s6385_s0 + $0x90] sm:$0xff]  ;;  %v4236_v32 = vld [vmem:[%s6385_s0 + $0x98] sm:$0xff]  ;;  %v28_v43 = vld [vmem:[%s6385_s0 + $0x20] sm:$0xff] }
   0x8   :  { %v1127_v21 = vmul.f32 %v646_v13, %v4166_v6  ;;  %v1139_v22 = vmul.f32 %v645_v12, %v4171_v8  ;;  %v1140_v23 = vmul.f32 %v646_v13, %v4176_v9  ;;  %v1152_v24 = vmul.f32 %v645_v12, %v4181_v10  ;;  %v4241_v33 = vld [vmem:[%s6385_s0 + $0xb0] sm:$0xff]  ;;  %v4246_v36 = vld [vmem:[%s6385_s0 + $0xb8] sm:$0xff]  ;;  %v29_v44 = vld [vmem:[%s6385_s0 + $0x28] sm:$0xff] }
   0x9   :  { %3548 = vmatprep.subr.bf16.mxu1 %v3547_v14  ;;  %v1117_v28 = vadd.f32 %v1114_v16, %v1113_v15  ;;  %v1153_v29 = vmul.f32 %v646_v13, %v4186_v11  ;;  %v647_v37 = vld [vmem:[%s6385_s0 + $0x150] sm:$0xff]  ;;  %v648_v38 = vld [vmem:[%s6385_s0 + $0x158] sm:$0xff]  ;;  %3538 = vmatpush3.bf16.msra.mxu0 %v3535_v30  ;;  %v4269_v49 = vld [vmem:[%s6385_s0 + $0xc0] sm:$0xff]  ;;  %v3539_v53 = vpack.c.bf16 %v29_v44, %v28_v43 }
   0xa   :  { %v1130_v34 = vadd.f32 %v1127_v21, %v1126_v17  ;;  %v1143_v35 = vadd.f32 %v1140_v23, %v1139_v22  ;;  %3550 = vmatpush3.bf16.msra.mxu1 %v3547_v14  ;;  %v3551_v40 = vpack.c.bf16 %v648_v38, %v647_v37  ;;  %v1115_v41 = vmul.f32 %v647_v37, %v4206_v20  ;;  %v4276_v54 = vld [vmem:[%s6385_s0 + $0xc8] sm:$0xff]  ;;  %v4281_v55 = vld [vmem:[%s6385_s0 + $0xe0] sm:$0xff]  ;;  %v30_v21 = vld [vmem:[%s6385_s0 + $0x30] sm:$0xff] }
   0xb   :  { %v1156_v39 = vadd.f32 %v1153_v29, %v1152_v24  ;;  %v1116_v42 = vmul.f32 %v648_v38, %v4215_v25  ;;  %v1128_v45 = vmul.f32 %v647_v37, %v4220_v26  ;;  %v1129_v46 = vmul.f32 %v648_v38, %v4225_v27  ;;  %v4286_v56 = vld [vmem:[%s6385_s0 + $0xe8] sm:$0xff]  ;;  %v4291_v59 = vld [vmem:[%s6385_s0 + $0x100] sm:$0xff]  ;;  %3540 = vmatprep.subr.bf16.mxu0 %v3539_v53  ;;  %v31_v24 = vld [vmem:[%s6385_s0 + $0x38] sm:$0xff] }
   0xc   :  { %v1141_v47 = vmul.f32 %v647_v37, %v4231_v31  ;;  %v1142_v48 = vmul.f32 %v648_v38, %v4236_v32  ;;  %3552 = vmatprep.subr.bf16.mxu1 %v3551_v40  ;;  %v1118_v50 = vadd.f32 %v1117_v28, %v1115_v41  ;;  %v1154_v51 = vmul.f32 %v647_v37, %v4241_v33  ;;  %v649_v60 = vld [vmem:[%s6385_s0 + $0x160] sm:$0xff]  ;;  %v650_v61 = vld [vmem:[%s6385_s0 + $0x168] sm:$0xff]  ;;  %v651_v28 = vld [vmem:[%s6385_s0 + $0x170] sm:$0xff] }
   0xd   :  { %v1155_v52 = vmul.f32 %v648_v38, %v4246_v36  ;;  %v1131_v57 = vadd.f32 %v1130_v34, %v1128_v45  ;;  %v4304_v0 = vld [vmem:[%s6385_s0 + $0x108] sm:$0xff]  ;;  %v3555_v1 = vpack.c.bf16 %v650_v61, %v649_v60  ;;  %v1165_v3 = vmul.f32 %v649_v60, %v4269_v49  ;;  %3542 = vmatpush3.bf16.msra.mxu0 %v3539_v53  ;;  %v60_v13 = vld [vmem:[%s6385_s0 + $0x120] sm:$0xff]  ;;  %v652_v29 = vld [vmem:[%s6385_s0 + $0x178] sm:$0xff] }
   0xe   :  { %v1144_v58 = vadd.f32 %v1143_v35, %v1141_v47  ;;  %3554 = vmatpush3.bf16.msra.mxu1 %v3551_v40  ;;  %v4299_v62 = vadd.f32 %v1118_v50, %v1116_v42  ;;  %v1157_v63 = vadd.f32 %v1156_v39, %v1154_v51  ;;  %v1166_v14 = vmul.f32 %v650_v61, %v4276_v54  ;;  %v61_v17 = vld [vmem:[%s6385_s0 + $0x128] sm:$0xff]  ;;  %v50_v35 = vld [vmem:[%s6385_s0 + $0xd0] sm:$0xff]  ;;  %v64_v37 = vld [vmem:[%s6386_s1] sm:$0xff] }
   0xf   :  { %v4307_v7 = vadd.f32 %v1131_v57, %v1129_v46  ;;  %v1178_v15 = vmul.f32 %v649_v60, %v4281_v55  ;;  %3556 = vmatprep.subr.bf16.mxu1 %v3555_v1  ;;  %v1179_v18 = vmul.f32 %v650_v61, %v4286_v56  ;;  %v1191_v19 = vmul.f32 %v649_v60, %v4291_v59  ;;  %v4345_v38 = vld [vmem:[%s6387_s2] sm:$0xff]  ;;  %v51_v41 = vld [vmem:[%s6385_s0 + $0xd8] sm:$0xff]  ;;  %v54_v42 = vld [vmem:[%s6385_s0 + $0xf0] sm:$0xff] }
  0x10   :  { %6524 = vst [vmem:[#allocation5_spill] sm:$0xff] %v4299_v62  ;;  %v4309_v12 = vadd.f32 %v1144_v58, %v1142_v48  ;;  %v4316_v16 = vadd.f32 %v1157_v63, %v1155_v52  ;;  %v1169_v22 = vadd.f32 %v1166_v14, %v1165_v3  ;;  %v1192_v23 = vmul.f32 %v650_v61, %v4304_v0  ;;  %v55_v44 = vld [vmem:[%s6385_s0 + $0xf8] sm:$0xff]  ;;  %v58_v47 = vld [vmem:[%s6385_s0 + $0x110] sm:$0xff]  ;;  %v65_v57 = vld [vmem:[%s6386_s1 + $0x8] sm:$0xff] }
  0x11   :  { %6525 = vst [vmem:[#allocation6_spill] sm:$0xff] %v4307_v7  ;;  %v1182_v30 = vadd.f32 %v1179_v18, %v1178_v15  ;;  %v1204_v34 = vmul.f32 %v649_v60, %v60_v13  ;;  %v1205_v40 = vmul.f32 %v650_v61, %v61_v17  ;;  %3227 = vmatprep.mubr.msk.f32.mxu0 %vm323_vm0, %v64_v37  ;;  %v4370_v61 = vld [vmem:[%s6387_s2 + $0x8] sm:$0xff]  ;;  %v66_v63 = vld [vmem:[%s6386_s1 + $0x10] sm:$0xff]  ;;  %v147_v15 = vld [vmem:[%s6388_s3 + $0x80] sm:$0xff] }
  0x12   :  { %6526 = vst [vmem:[#allocation7_spill] sm:$0xff] %v4309_v12  ;;  %6527 = vst [vmem:[#allocation8_spill] sm:$0xff] %v4316_v16  ;;  %3558 = vmatpush3.bf16.msra.mxu1 %v3555_v1  ;;  %v1195_v39 = vadd.f32 %v1192_v23, %v1191_v19  ;;  %v3543_v43 = vpack.c.bf16 %v31_v24, %v30_v21  ;;  %v3559_v45 = vpack.c.bf16 %v652_v29, %v651_v28  ;;  %v4380_v3 = vld [vmem:[%s6387_s2 + $0x10] sm:$0xff]  ;;  %v67_v17 = vld [vmem:[%s6386_s1 + $0x18] sm:$0xff] }
  0x13   :  { %3291 = vmatprep.mubr.msk.f32.mxu1 %vm323_vm0, %v4345_v38  ;;  %v4359_v46 = vadd.f32 %v1205_v40, %v1204_v34  ;;  %v1167_v48 = vmul.f32 %v651_v28, %v50_v35  ;;  %v1168_v50 = vmul.f32 %v652_v29, %v51_v41  ;;  %v1180_v51 = vmul.f32 %v651_v28, %v54_v42  ;;  %v4401_v18 = vld [vmem:[%s6387_s2 + $0x18] sm:$0xff]  ;;  %v68_v19 = vld [vmem:[%s6386_s1 + $0x20] sm:$0xff]  ;;  %v148_v23 = vld [vmem:[%s6388_s3 + $0x88] sm:$0xff] }
  0x14   :  { %3544 = vmatprep.subr.bf16.mxu0 %v3543_v43  ;;  %3560 = vmatprep.subr.bf16.mxu1 %v3559_v45  ;;  %v1181_v53 = vmul.f32 %v652_v29, %v55_v44  ;;  %v1193_v60 = vmul.f32 %v651_v28, %v58_v47  ;;  %v131_v21 = vld [vmem:[%s6388_s3] sm:$0xff]  ;;  %v132_v24 = vld [vmem:[%s6388_s3 + $0x8] sm:$0xff]  ;;  %v4440_v34 = vld [vmem:[%s6387_s2 + $0x30] sm:$0xff] }
  0x15   :  { %6528 = vst [vmem:[#allocation9_spill] sm:$0xff] %v4359_v46  ;;  %3546 = vmatpush3.bf16.msra.mxu0 %v3543_v43  ;;  %v1170_v52 = vadd.f32 %v1169_v22, %v1167_v48  ;;  %v1183_v58 = vadd.f32 %v1182_v30, %v1180_v51  ;;  %245 = vperm.xlu0 %3749, %v147_v15   ;;  %v4412_v22 = vld [vmem:[%s6387_s2 + $0x20] sm:$0xff]  ;;  %v69_v28 = vld [vmem:[%s6386_s1 + $0x28] sm:$0xff]  ;;  %v70_v30 = vld [vmem:[%s6386_s1 + $0x30] sm:$0xff] }
  0x16   :  { %3562 = vmatpush3.bf16.msra.mxu1 %v3559_v45  ;;  %v4384_v14 = vadd.f32 %v1195_v39, %v1193_v60  ;;  %165 = vperm.xlu1 %3750, %v131_v21   ;;  %v4432_v29 = vld [vmem:[%s6387_s2 + $0x28] sm:$0xff]  ;;  %v149_v35 = vld [vmem:[%s6388_s3 + $0x90] sm:$0xff]  ;;  %v150_v37 = vld [vmem:[%s6388_s3 + $0x98] sm:$0xff] }
  0x17   :  { %v4375_v1 = vadd.f32 %v1170_v52, %v1168_v50  ;;  %v4382_v13 = vadd.f32 %v1183_v58, %v1181_v53  ;;  %v71_v39 = vld [vmem:[%s6386_s1 + $0x38] sm:$0xff]  ;;  %v72_v41 = vld [vmem:[%s6386_s1 + $0x40] sm:$0xff]  ;;  %v133_v43 = vld [vmem:[%s6388_s3 + $0x10] sm:$0xff] }
  0x18   :  { %6531 = vst [vmem:[#allocation12_spill] sm:$0xff] %v4384_v14  ;;  %3228 = vmatmul.mubr.msk.f32.vlgmr.msra.gmra.mrb[0].mxu0 %vm323_vm0, %v65_v57  ;;  %v4460_v40 = vld [vmem:[%s6387_s2 + $0x38] sm:$0xff]  ;;  %v4468_v42 = vld [vmem:[%s6387_s2 + $0x40] sm:$0xff]  ;;  %v73_v45 = vld [vmem:[%s6386_s1 + $0x48] sm:$0xff] }
  0x19   :  { %6529 = vst [vmem:[#allocation10_spill] sm:$0xff] %v4375_v1  ;;  %6530 = vst [vmem:[#allocation11_spill] sm:$0xff] %v4382_v13  ;;  %3292 = vmatmul.mubr.msk.f32.vlgmr.msra.gmra.mrb[0].mxu1 %vm323_vm0, %v4370_v61  ;;  %3230 = vmatprep.mubr.msk.f32.mxu0 %vm323_vm0, %v66_v63  ;;  %v134_v44 = vld [vmem:[%s6388_s3 + $0x18] sm:$0xff]  ;;  %v1238_v47 = vld [vmem:[%s6385_s0 + $0x180] sm:$0xff] }
  0x1a   :  { %3294 = vmatprep.mubr.msk.f32.mxu1 %vm323_vm0, %v4380_v3  ;;  %250 = vperm.xlu0 %3749, %v148_v23   ;;  %v1239_v48 = vld [vmem:[%s6385_s0 + $0x188] sm:$0xff]  ;;  %v74_v51 = vld [vmem:[%s6386_s1 + $0x50] sm:$0xff]  ;;  %v1605_v53 = vmul.f32 %v1238_v47, %v4151_v2  ;;  %v151_v60 = vld [vmem:[%s6388_s3 + $0xa0] sm:$0xff]  ;;  %v1618_v63 = vmul.f32 %v1238_v47, %v4161_v5  ;;  %v1644_v21 = vmul.f32 %v1238_v47, %v4181_v10 }
  0x1b   :  { %170 = vperm.xlu1 %3750, %v132_v24   ;;  %v4494_v50 = vld [vmem:[%s6387_s2 + $0x48] sm:$0xff]  ;;  %v4499_v52 = vpack.c.bf16 %v1239_v48, %v1238_v47  ;;  %v1606_v57 = vmul.f32 %v1239_v48, %v4156_v4  ;;  %v4506_v58 = vld [vmem:[%s6387_s2 + $0x50] sm:$0xff]  ;;  %v1619_v15 = vmul.f32 %v1239_v48, %v4166_v6  ;;  %v1632_v2 = vmul.f32 %v1239_v48, %v4176_v9  ;;  %v1241_v6 = vld [vmem:[%s6385_s0 + $0x198] sm:$0xff] }
  0x1c   :  { %3231 = vmatmul.mubr.msk.f32.gmra.mrb[2].mxu0 %vm323_vm0, %v67_v17  ;;  %v1631_v17 = vmul.f32 %v1238_v47, %v4171_v8  ;;  %v152_v4 = vld [vmem:[%s6388_s3 + $0xa8] sm:$0xff]  ;;  %v1645_v23 = vmul.f32 %v1239_v48, %v4186_v11  ;;  %v1240_v5 = vld [vmem:[%s6385_s0 + $0x190] sm:$0xff]  ;;  %v75_v8 = vld [vmem:[%s6386_s1 + $0x58] sm:$0xff] }
  0x1d   :  { %3295 = vmatmul.mubr.msk.f32.gmra.mrb[2].mxu1 %vm323_vm0, %v4401_v18  ;;  %3233 = vmatprep.mubr.msk.f32.mxu0 %vm323_vm0, %v68_v19  ;;  %v1609_v19 = vadd.f32 %v1606_v57, %v1605_v53  ;;  %v1622_v9 = vadd.f32 %v1619_v15, %v1618_v63  ;;  %v4534_v11 = vpack.c.bf16 %v1241_v6, %v1240_v5  ;;  %v4541_v24 = vld [vmem:[%s6387_s2 + $0x58] sm:$0xff]  ;;  %v1242_v47 = vld [vmem:[%s6385_s0 + $0x1a0] sm:$0xff]  ;;  %v77_v48 = vld [vmem:[%s6386_s1 + $0x68] sm:$0xff] }
  0x1e   :  { %3297 = vmatprep.mubr.msk.f32.mxu1 %vm323_vm0, %v4412_v22  ;;  %255 = vperm.xlu0 %3749, %v149_v35   ;;  %v1635_v10 = vadd.f32 %v1632_v2, %v1631_v17  ;;  %v1648_v35 = vadd.f32 %v1645_v23, %v1644_v21  ;;  %v1647_v57 = vmul.f32 %v1241_v6, %v4246_v36  ;;  %v4597_v36 = vld [vmem:[%s6387_s2 + $0x70] sm:$0xff]  ;;  %v154_v21 = vld [vmem:[%s6388_s3 + $0xb8] sm:$0xff] }
  0x1f   :  { %260 = vperm.xlu1 %3750, %v150_v37   ;;  %3596 = vmatprep.subr.bf16.mxu0 %v4499_v52  ;;  %v1607_v37 = vmul.f32 %v1240_v5, %v4206_v20  ;;  %v1243_v20 = vld [vmem:[%s6385_s0 + $0x1a8] sm:$0xff]  ;;  %v153_v17 = vld [vmem:[%s6388_s3 + $0xb0] sm:$0xff] }
  0x20   :  { %3234 = vmatmul.mubr.msk.f32.gmra.mrb[4].mxu0 %vm323_vm0, %v69_v28  ;;  %v76_v28 = vld [vmem:[%s6386_s1 + $0x60] sm:$0xff]  ;;  %v4592_v15 = vpack.c.bf16 %v1243_v20, %v1242_v47 }
  0x21   :  { %3298 = vmatmul.mubr.msk.f32.gmra.mrb[4].mxu1 %vm323_vm0, %v4432_v29  ;;  %3236 = vmatprep.mubr.msk.f32.mxu0 %vm323_vm0, %v70_v30  ;;  %v4549_v30 = vld [vmem:[%s6387_s2 + $0x60] sm:$0xff] }
  0x22   :  { %3300 = vmatprep.mubr.msk.f32.mxu1 %vm323_vm0, %v4440_v34  ;;  %175 = vperm.xlu0 %3749, %v133_v43   ;;  %v1620_v43 = vmul.f32 %v1240_v5, %v4220_v26  ;;  %v1610_v26 = vadd.f32 %v1609_v19, %v1607_v37  ;;  %v1657_v19 = vmul.f32 %v1242_v47, %v4269_v49  ;;  %v79_v49 = vld [vmem:[%s6386_s1 + $0x78] sm:$0xff]  ;;  %v137_v37 = vld [vmem:[%s6388_s3 + $0x30] sm:$0xff] }
  0x23   :  { %180 = vperm.xlu1 %3750, %v134_v44   ;;  %3598 = vmatpush3.bf16.msra.mxu0 %v4499_v52  ;;  %v1621_v44 = vmul.f32 %v1241_v6, %v4225_v27  ;;  %v1634_v27 = vmul.f32 %v1241_v6, %v4236_v32  ;;  %v4585_v32 = vld [vmem:[%s6387_s2 + $0x68] sm:$0xff] }
  0x24   :  { %3237 = vmatmul.mubr.msk.f32.gmra.mrb[6].mxu0 %vm323_vm0, %v71_v39  ;;  %v1608_v39 = vmul.f32 %v1241_v6, %v4215_v25  ;;  %v136_v25 = vld [vmem:[%s6388_s3 + $0x28] sm:$0xff]  ;;  %3600 = vmatprep.subr.bf16.mxu0 %v4534_v11  ;;  %v1670_v6 = vmul.f32 %v1242_v47, %v4281_v55  ;;  %v4636_v55 = vld [vmem:[%s6387_s2 + $0x78] sm:$0xff] }
  0x25   :  { %3301 = vmatmul.mubr.msk.f32.gmra.mrb[6].mxu1 %vm323_vm0, %v4460_v40  ;;  %3239 = vmatprep.mubr.msk.f32.mxu0 %vm323_vm0, %v72_v41  ;;  %v135_v41 = vld [vmem:[%s6388_s3 + $0x20] sm:$0xff] }
  0x26   :  { %3303 = vmatprep.mubr.msk.f32.mxu1 %vm323_vm0, %v4468_v42  ;;  %265 = vperm.xlu0 %3749, %v151_v60   ;;  %v4590_v60 = vadd.f32 %v1610_v26, %v1608_v39 }
  0x27   :  { %270 = vperm.xlu1 %3750, %v152_v4   ;;  %3602 = vmatpush3.bf16.msra.mxu0 %v4534_v11 }
  0x28   :  { %3240 = vmatmul.mubr.msk.f32.gmra.mrb[8].mxu0 %vm323_vm0, %v73_v45  ;;  %v1633_v45 = vmul.f32 %v1240_v5, %v4231_v31  ;;  %v1646_v31 = vmul.f32 %v1240_v5, %v4241_v33  ;;  %v78_v33 = vld [vmem:[%s6386_s1 + $0x70] sm:$0xff]  ;;  %6532 = vst [vmem:[#allocation13_spill] sm:$0xff] %v4590_v60  ;;  %3604 = vmatprep.subr.bf16.mxu0 %v4592_v15 }
  0x29   :  { %3304 = vmatmul.mubr.msk.f32.gmra.mrb[8].mxu1 %vm323_vm0, %v4494_v50  ;;  %3242 = vmatprep.mubr.msk.f32.mxu0 %vm323_vm0, %v74_v51  ;;  %v1623_v51 = vadd.f32 %v1622_v9, %v1620_v43  ;;  %v1658_v5 = vmul.f32 %v1243_v20, %v4276_v54  ;;  %v1683_v9 = vmul.f32 %v1242_v47, %v4291_v59  ;;  %v1245_v54 = vld [vmem:[%s6385_s0 + $0x1b8] sm:$0xff] }
  0x2a   :  { %3306 = vmatprep.mubr.msk.f32.mxu1 %vm323_vm0, %v4506_v58  ;;  %v1636_v53 = vadd.f32 %v1635_v10, %v1633_v45  ;;  %185 = vperm.xlu0 %3749, %v135_v41   ;;  %v1649_v63 = vadd.f32 %v1648_v35, %v1646_v31  ;;  %v1244_v10 = vld [vmem:[%s6385_s0 + $0x1b0] sm:$0xff]  ;;  %v4647_v35 = vld [vmem:[%s6387_s2 + $0x80] sm:$0xff] }
  0x2b   :  { %190 = vperm.xlu1 %3750, %v136_v25   ;;  %v4602_v2 = vadd.f32 %v1623_v51, %v1621_v44  ;;  %v4641_v59 = vadd.f32 %v1658_v5, %v1657_v19 }
  0x2c   :  { %3243 = vmatmul.mubr.msk.f32.gmra.mrb[10].mxu0 %vm323_vm0, %v75_v8  ;;  %v4604_v4 = vadd.f32 %v1636_v53, %v1634_v27  ;;  %v4612_v23 = vadd.f32 %v1649_v63, %v1647_v57  ;;  %v1671_v8 = vmul.f32 %v1243_v20, %v4286_v56  ;;  %v80_v56 = vld [vmem:[%s6386_s1 + $0x80] sm:$0xff] }
  0x2d   :  { %3307 = vmatmul.mubr.msk.f32.gmra.mrb[10].mxu1 %vm323_vm0, %v4541_v24  ;;  %3245 = vmatprep.mubr.msk.f32.mxu0 %vm323_vm0, %v76_v28  ;;  %6533 = vst [vmem:[#allocation14_spill] sm:$0xff] %v4602_v2  ;;  %6536 = vst [vmem:[#allocation17_spill] sm:$0xff] %v4641_v59  ;;  %v1684_v28 = vmul.f32 %v1243_v20, %v4304_v0 }
  0x2e   :  { %3309 = vmatprep.mubr.msk.f32.mxu1 %vm323_vm0, %v4549_v30  ;;  %6534 = vst [vmem:[#allocation15_spill] sm:$0xff] %v4604_v4  ;;  %6535 = vst [vmem:[#allocation16_spill] sm:$0xff] %v4612_v23  ;;  %275 = vperm.xlu0 %3749, %v153_v17   ;;  %v4652_v39 = vadd.f32 %v1671_v8, %v1670_v6 }
  0x2f   :  { %280 = vperm.xlu1 %3750, %v154_v21  }
  0x30   :  { %3246 = vmatmul.mubr.msk.f32.gmra.mrb[12].mxu0 %vm323_vm0, %v77_v48  ;;  %6537 = vst [vmem:[#allocation18_spill] sm:$0xff] %v4652_v39 }
  0x31   :  { %3310 = vmatmul.mubr.msk.f32.gmra.mrb[12].mxu1 %vm323_vm0, %v4585_v32  ;;  %3248 = vmatprep.mubr.msk.f32.mxu0 %vm323_vm0, %v78_v33 }
  0x32   :  { %3312 = vmatprep.mubr.msk.f32.mxu1 %vm323_vm0, %v4597_v36 }
  0x33   :  { %11 = vsyncpa [#allocation3], 0  ;;  %v138_v41 = vld [vmem:[%s6388_s3 + $0x38] sm:$0xff]  ;;  %v4658_v0 = vadd.f32 %v1684_v28, %v1683_v9  ;;  %v4660_v43 = vpack.c.bf16 %v1245_v54, %v1244_v10  ;;  %v81_v44 = vld [vmem:[%s6386_s1 + $0x88] sm:$0xff]  ;;  %195 = vperm.xlu0 %3749, %v137_v37   ;;  %3606 = vmatpush3.bf16.msra.mxu0 %v4592_v15  ;;  %vm1217_vm1 = vcmask 1040384   ;;  %vm1219_vm2 = vcmask 1041408  }
  0x34   :  { %3249 = vmatmul.mubr.msk.f32.gmra.mrb[14].mxu0 %vm323_vm0, %v79_v49  ;;  %v4673_v45 = vld [vmem:[%s6387_s2 + $0x88] sm:$0xff]  ;;  %v82_v47 = vld [vmem:[%s6386_s1 + $0x90] sm:$0xff]  ;;  %v155_v25 = vld [vmem:[%s6388_s3 + $0xc0] sm:$0xff]  ;;  %200 = vperm.xlu1 %3750, %v138_v41   ;;  %vm1221_vm3 = vcmask 1042432   ;;  %vm1223_vm4 = vcmask 1043456   ;;  %vm1225_vm5 = vcmask 1044480  }
  0x35   :  { %6538 = vst [vmem:[#allocation19_spill] sm:$0xff] %v4658_v0  ;;  %3313 = vmatmul.mubr.msk.f32.gmra.mrb[14].mxu1 %vm323_vm0, %v4636_v55  ;;  %3251 = vmatprep.mubr.msk.f32.mxu0 %vm323_vm0, %v80_v56  ;;  %v4681_v20 = vld [vmem:[%s6387_s2 + $0x90] sm:$0xff]  ;;  %v156_v26 = vld [vmem:[%s6388_s3 + $0xc8] sm:$0xff]  ;;  %v83_v27 = vld [vmem:[%s6386_s1 + $0x98] sm:$0xff]  ;;  %vm1227_vm6 = vcmask 1045504   ;;  %vm1229_vm7 = vcmask 1046528  }
  0x36   :  { %3315 = vmatprep.mubr.msk.f32.mxu1 %vm323_vm0, %v4647_v35  ;;  %3608 = vmatprep.subr.bf16.mxu0 %v4660_v43  ;;  %v4703_v31 = vld [vmem:[%s6387_s2 + $0x98] sm:$0xff]  ;;  %v84_v48 = vld [vmem:[%s6386_s1 + $0xa0] sm:$0xff]  ;;  %v140_v57 = vld [vmem:[%s6388_s3 + $0x48] sm:$0xff] }
  0x37   :  { %6539 = vst [vmem:[#allocation20_spill] sm:$0xff] %v4703_v31  ;;  %285 = vperm.xlu0 %3749, %v155_v25   ;;  %v4711_v51 = vld [vmem:[%s6387_s2 + $0xa0] sm:$0xff]  ;;  %3610 = vmatpush3.bf16.msra.mxu0 %v4660_v43  ;;  %v85_v33 = vld [vmem:[%s6386_s1 + $0xa8] sm:$0xff]  ;;  %v86_v17 = vld [vmem:[%s6386_s1 + $0xb0] sm:$0xff] }
  0x38   :  { %3252 = vmatmul.mubr.msk.f32.gmra.mrb[16].mxu0 %vm323_vm0, %v81_v44  ;;  %6540 = vst [vmem:[#allocation21_spill] sm:$0xff] %v4711_v51  ;;  %v139_v53 = vld [vmem:[%s6388_s3 + $0x40] sm:$0xff]  ;;  %290 = vperm.xlu1 %3750, %v156_v26   ;;  %v4732_v63 = vld [vmem:[%s6387_s2 + $0xa8] sm:$0xff]  ;;  %v4740_v19 = vld [vmem:[%s6387_s2 + $0xb0] sm:$0xff] }
  0x39   :  { %3316 = vmatmul.mubr.msk.f32.gmra.mrb[16].mxu1 %vm323_vm0, %v4673_v45  ;;  %3254 = vmatprep.mubr.msk.f32.mxu0 %vm323_vm0, %v82_v47  ;;  %6541 = vst [vmem:[#allocation22_spill] sm:$0xff] %v4732_v63  ;;  %6542 = vst [vmem:[#allocation23_spill] sm:$0xff] %v4740_v19  ;;  %v157_v21 = vld [vmem:[%s6388_s3 + $0xd0] sm:$0xff]  ;;  %v158_v5 = vld [vmem:[%s6388_s3 + $0xd8] sm:$0xff] }
  0x3a   :  { %3318 = vmatprep.mubr.msk.f32.mxu1 %vm323_vm0, %v4681_v20  ;;  %v87_v6 = vld [vmem:[%s6386_s1 + $0xb8] sm:$0xff]  ;;  %v88_v8 = vld [vmem:[%s6386_s1 + $0xc0] sm:$0xff]  ;;  %v141_v10 = vld [vmem:[%s6388_s3 + $0x50] sm:$0xff] }
  0x3b   :  { %205 = vperm.xlu0 %3749, %v139_v53   ;;  %v4760_v49 = vld [vmem:[%s6387_s2 + $0xb8] sm:$0xff]  ;;  %v4768_v9 = vld [vmem:[%s6387_s2 + $0xc0] sm:$0xff]  ;;  %v89_v56 = vld [vmem:[%s6386_s1 + $0xc8] sm:$0xff] }
  0x3c   :  { %3255 = vmatmul.mubr.msk.f32.gmra.mrb[18].mxu0 %vm323_vm0, %v83_v27  ;;  %210 = vperm.xlu1 %3750, %v140_v57   ;;  %6543 = vst [vmem:[#allocation24_spill] sm:$0xff] %v4760_v49  ;;  %6544 = vst [vmem:[#allocation25_spill] sm:$0xff] %v4768_v9  ;;  %v142_v54 = vld [vmem:[%s6388_s3 + $0x58] sm:$0xff]  ;;  %v4788_v28 = vld [vmem:[%s6387_s2 + $0xc8] sm:$0xff] }
  0x3d   :  { %3319 = vmatmul.mubr.msk.f32.gmra.mrb[18].mxu1 %vm323_vm0, %v4703_v31  ;;  %3257 = vmatprep.mubr.msk.f32.mxu0 %vm323_vm0, %v84_v48  ;;  %6545 = vst [vmem:[#allocation26_spill] sm:$0xff] %v4788_v28  ;;  %v90_v37 = vld [vmem:[%s6386_s1 + $0xd0] sm:$0xff]  ;;  %v159_v44 = vld [vmem:[%s6388_s3 + $0xe0] sm:$0xff]  ;;  %v160_v47 = vld [vmem:[%s6388_s3 + $0xe8] sm:$0xff] }
  0x3e   :  { %3321 = vmatprep.mubr.msk.f32.mxu1 %vm323_vm0, %v4711_v51  ;;  %v4796_v41 = vld [vmem:[%s6387_s2 + $0xd0] sm:$0xff]  ;;  %v91_v25 = vld [vmem:[%s6386_s1 + $0xd8] sm:$0xff]  ;;  %v92_v27 = vld [vmem:[%s6386_s1 + $0xe0] sm:$0xff] }
  0x3f   :  { %295 = vperm.xlu0 %3749, %v157_v21   ;;  %6546 = vst [vmem:[#allocation27_spill] sm:$0xff] %v4796_v41  ;;  %v4816_v26 = vld [vmem:[%s6387_s2 + $0xd8] sm:$0xff]  ;;  %v4824_v48 = vld [vmem:[%s6387_s2 + $0xe0] sm:$0xff]  ;;  %v144_v57 = vld [vmem:[%s6388_s3 + $0x68] sm:$0xff] }
  0x40   :  { %3258 = vmatmul.mubr.msk.f32.gmra.mrb[20].mxu0 %vm323_vm0, %v85_v33  ;;  %300 = vperm.xlu1 %3750, %v158_v5   ;;  %6547 = vst [vmem:[#allocation28_spill] sm:$0xff] %v4816_v26  ;;  %6548 = vst [vmem:[#allocation29_spill] sm:$0xff] %v4824_v48  ;;  %v143_v53 = vld [vmem:[%s6388_s3 + $0x60] sm:$0xff]  ;;  %v93_v33 = vld [vmem:[%s6386_s1 + $0xe8] sm:$0xff] }
  0x41   :  { %3322 = vmatmul.mubr.msk.f32.gmra.mrb[20].mxu1 %vm323_vm0, %v4732_v63  ;;  %3260 = vmatprep.mubr.msk.f32.mxu0 %vm323_vm0, %v86_v17  ;;  %v4844_v17 = vld [vmem:[%s6387_s2 + $0xe8] sm:$0xff]  ;;  %v94_v21 = vld [vmem:[%s6386_s1 + $0xf0] sm:$0xff] }
  0x42   :  { %3324 = vmatprep.mubr.msk.f32.mxu1 %vm323_vm0, %v4740_v19  ;;  %6549 = vst [vmem:[#allocation30_spill] sm:$0xff] %v4844_v17  ;;  %v4852_v5 = vld [vmem:[%s6387_s2 + $0xf0] sm:$0xff] }
  0x43   :  { %215 = vperm.xlu0 %3749, %v141_v10   ;;  %6550 = vst [vmem:[#allocation31_spill] sm:$0xff] %v4852_v5  ;;  %v95_v10 = vld [vmem:[%s6386_s1 + $0xf8] sm:$0xff] }
  0x44   :  { %3261 = vmatmul.mubr.msk.f32.gmra.mrb[22].mxu0 %vm323_vm0, %v87_v6  ;;  %220 = vperm.xlu1 %3750, %v142_v54   ;;  %v161_v6 = vld [vmem:[%s6388_s3 + $0xf0] sm:$0xff]  ;;  %v4872_v54 = vld [vmem:[%s6387_s2 + $0xf8] sm:$0xff] }
  0x45   :  { %3325 = vmatmul.mubr.msk.f32.gmra.mrb[22].mxu1 %vm323_vm0, %v4760_v49  ;;  %3263 = vmatprep.mubr.msk.f32.mxu0 %vm323_vm0, %v88_v8  ;;  %v162_v8 = vld [vmem:[%s6388_s3 + $0xf8] sm:$0xff]  ;;  %6551 = vst [vmem:[#allocation32_spill] sm:$0xff] %v4872_v54 }
  0x46   :  { %3327 = vmatprep.mubr.msk.f32.mxu1 %vm323_vm0, %v4768_v9 }
  0x47   :  { %305 = vperm.xlu0 %3749, %v159_v44   ;;  %v130_v44 = vld [vmem:[%s6390_s5] sm:$0xff] }
  0x48   :  { %3264 = vmatmul.mubr.msk.f32.gmra.mrb[24].mxu0 %vm323_vm0, %v89_v56  ;;  %310 = vperm.xlu1 %3750, %v160_v47   ;;  %v145_v56 = vld [vmem:[%s6388_s3 + $0x70] sm:$0xff] }
  0x49   :  { %3328 = vmatmul.mubr.msk.f32.gmra.mrb[24].mxu1 %vm323_vm0, %v4788_v28  ;;  %3266 = vmatprep.mubr.msk.f32.mxu0 %vm323_vm0, %v90_v37  ;;  %v146_v37 = vld [vmem:[%s6388_s3 + $0x78] sm:$0xff] }
  0x4a   :  { %3330 = vmatprep.mubr.msk.f32.mxu1 %vm323_vm0, %v4796_v41 }
  0x4b   :  { %225 = vperm.xlu0 %3749, %v143_v53  }
  0x4c   :  { %3267 = vmatmul.mubr.msk.f32.gmra.mrb[26].mxu0 %vm323_vm0, %v91_v25  ;;  %230 = vperm.xlu1 %3750, %v144_v57  }
  0x4d   :  { %3331 = vmatmul.mubr.msk.f32.gmra.mrb[26].mxu1 %vm323_vm0, %v4816_v26  ;;  %3269 = vmatprep.mubr.msk.f32.mxu0 %vm323_vm0, %v92_v27 }
  0x4e   :  { %3333 = vmatprep.mubr.msk.f32.mxu1 %vm323_vm0, %v4824_v48 }
  0x4f   :  { %315 = vperm.xlu0 %3749, %v161_v6  }
  0x50   :  { %3270 = vmatmul.mubr.msk.f32.gmra.mrb[28].mxu0 %vm323_vm0, %v93_v33  ;;  %320 = vperm.xlu1 %3750, %v162_v8  }
  0x51   :  { %3334 = vmatmul.mubr.msk.f32.gmra.mrb[28].mxu1 %vm323_vm0, %v4844_v17  ;;  %3272 = vmatprep.mubr.msk.f32.mxu0 %vm323_vm0, %v94_v21 }
  0x52   :  { %3336 = vmatprep.mubr.msk.f32.mxu1 %vm323_vm0, %v4852_v5 }
  0x53   :  { %235 = vperm.xlu0 %3749, %v145_v56  }
  0x54   :  { %3273 = vmatmul.mubr.msk.f32.gmra.mrb[30].mxu0 %vm323_vm0, %v95_v10  ;;  %240 = vperm.xlu1 %3750, %v146_v37  }
  0x55   :  { %3337 = vmatmul.mubr.msk.f32.gmra.mrb[30].mxu1 %vm323_vm0, %v4872_v54  ;;  %3355 = vmatprep.mubr.msk.f32.mxu0 %vm323_vm0, %v4345_v38 }
  0x57   :  { %1040 = vperm.xlu0 %3749, %v130_v44  }
  0x58   :  { %3356 = vmatmul.mubr.msk.f32.vlgmr.msra.gmra.mrb[32].mxu0 %vm323_vm0, %v4370_v61 }
  0x59   :  { %3358 = vmatprep.mubr.msk.f32.mxu0 %vm323_vm0, %v4380_v3 }
  0x5c   :  { %3359 = vmatmul.mubr.msk.f32.gmra.mrb[34].mxu0 %vm323_vm0, %v4401_v18 }
  0x5d   :  { %3361 = vmatprep.mubr.msk.f32.mxu0 %vm323_vm0, %v4412_v22 }
  0x60   :  { %3362 = vmatmul.mubr.msk.f32.gmra.mrb[36].mxu0 %vm323_vm0, %v4432_v29 }
  0x61   :  { %3364 = vmatprep.mubr.msk.f32.mxu0 %vm323_vm0, %v4440_v34  ;;  %v4929_v34 = vld [vmem:[%s6389_s4 + $0x8] sm:$0xff] }
  0x62   :  { %6552 = vst [vmem:[#allocation33_spill] sm:$0xff] %v4929_v34  ;;  %1107 = vmatprep.mubr.f32.mxu1 %v4929_v34 }
  0x64   :  { %3365 = vmatmul.mubr.msk.f32.gmra.mrb[38].mxu0 %vm323_vm0, %v4460_v40 }
  0x65   :  { %3367 = vmatprep.mubr.msk.f32.mxu0 %vm323_vm0, %v4468_v42 }
  0x68   :  { %3368 = vmatmul.mubr.msk.f32.gmra.mrb[40].mxu0 %vm323_vm0, %v4494_v50 }
  0x69   :  { %3370 = vmatprep.mubr.msk.f32.mxu0 %vm323_vm0, %v4506_v58 }
  0x6c   :  { %3371 = vmatmul.mubr.msk.f32.gmra.mrb[42].mxu0 %vm323_vm0, %v4541_v24 }
  0x6d   :  { %3373 = vmatprep.mubr.msk.f32.mxu0 %vm323_vm0, %v4549_v30 }
  0x70   :  { %3374 = vmatmul.mubr.msk.f32.gmra.mrb[44].mxu0 %vm323_vm0, %v4585_v32 }
  0x71   :  { %3376 = vmatprep.mubr.msk.f32.mxu0 %vm323_vm0, %v4597_v36 }
  0x74   :  { %3377 = vmatmul.mubr.msk.f32.gmra.mrb[46].mxu0 %vm323_vm0, %v4636_v55 }
  0x75   :  { %1599 = vmatprep.mubr.f32.mxu0 %v4929_v34 }
  0x94   :  { %v4918_v38 = vpop.permute.xlu0 %245 }
  0x95   :  { %v166_v61 = vpop.permute.xlu1 %165 }
  0x99   :  { %v4920_v3 = vpop.permute.xlu0 %250 }
  0x9a   :  { %v171_v18 = vpop.permute.xlu1 %170 }
  0x9d   :  { %v4922_v22 = vpop.permute.xlu0 %255 }
  0x9e   :  { %v4924_v29 = vpop.permute.xlu1 %260 }
  0xa1   :  { %v176_v40 = vpop.permute.xlu0 %175 }
  0xa2   :  { %v181_v42 = vpop.permute.xlu1 %180 }
  0xa5   :  { %v4933_v50 = vpop.permute.xlu0 %265 }
  0xa6   :  { %v4935_v58 = vpop.permute.xlu1 %270 }
  0xa9   :  { %v186_v24 = vpop.permute.xlu0 %185 }
  0xaa   :  { %v191_v30 = vpop.permute.xlu1 %190 }
  0xad   :  { %v4937_v32 = vpop.permute.xlu0 %275 }
  0xae   :  { %v4939_v36 = vpop.permute.xlu1 %280 }
  0xb2   :  { %v196_v55 = vpop.permute.xlu0 %195 }
  0xb3   :  { %v201_v47 = vpop.permute.xlu1 %200 }
  0xb6   :  { %v4941_v25 = vpop.permute.xlu0 %285 }
  0xb7   :  { %v4943_v27 = vpop.permute.xlu1 %290 }
  0xba   :  { %v206_v53 = vpop.permute.xlu0 %205 }
  0xbb   :  { %v211_v57 = vpop.permute.xlu1 %210 }
  0xbe   :  { %v4945_v33 = vpop.permute.xlu0 %295 }
  0xbf   :  { %v4947_v21 = vpop.permute.xlu1 %300 }
  0xc2   :  { %v4951_v37 = vpop.permute.xlu0 %215 }
  0xc3   :  { %v221_v39 = vpop.permute.xlu1 %220 }
  0xeb   :  { %v3229_v6 = vpop.f32.mrb[0].mxu0 }
  0xec   :  { %v4949_v8 = vadd.f32 %v3229_v6, %v171_v18  ;;  %v486_v10 = vpop.f32.mrb[1].mxu0  ;;  %v3293_v56 = vpop.f32.mrb[0].mxu1 }
  0xed   :  { %v4953_v44 = vadd.f32 %v486_v10, %v166_v61  ;;  %v815_v0 = vpop.f32.mrb[1].mxu1  ;;  %v4962_v61 = vpop.permute.xlu0 %305 }
  0xee   :  { %6553 = vst [vmem:[#allocation34_spill] sm:$0xff] %v4949_v8  ;;  %v975_v23 = vadd.f32 %v3293_v56, %v4949_v8 }
  0xef   :  { %6554 = vst [vmem:[#allocation35_spill] sm:$0xff] %v4953_v44  ;;  %v974_v4 = vadd.f32 %v815_v0, %v4953_v44  ;;  %v3232_v59 = vpop.f32.mrb[2].mxu0 }
  0xf0   :  { %3751 = vtanh.f32 %v975_v23  ;;  %v4957_v2 = vadd.f32 %v3232_v59, %v181_v42  ;;  %v496_v60 = vpop.f32.mrb[3].mxu0  ;;  %v3296_v13 = vpop.f32.mrb[2].mxu1 }
  0xf1   :  { %3753 = vtanh.f32 %v974_v4  ;;  %v4959_v18 = vadd.f32 %v496_v60, %v176_v40  ;;  %v825_v6 = vpop.f32.mrb[3].mxu1  ;;  %v4967_v59 = vpop.permute.xlu1 %310 }
  0xf2   :  { %6555 = vst [vmem:[#allocation36_spill] sm:$0xff] %v4957_v2  ;;  %v977_v14 = vadd.f32 %v3296_v13, %v4957_v2 }
  0xf3   :  { %6556 = vst [vmem:[#allocation37_spill] sm:$0xff] %v4959_v18  ;;  %v976_v10 = vadd.f32 %v825_v6, %v4959_v18  ;;  %v3235_v56 = vpop.f32.mrb[4].mxu0 }
  0xf4   :  { %3755 = vtanh.f32 %v977_v14  ;;  %v4965_v46 = vadd.f32 %v3235_v56, %v191_v30  ;;  %v506_v0 = vpop.f32.mrb[5].mxu0  ;;  %v3299_v23 = vpop.f32.mrb[4].mxu1 }
  0xf5   :  { %3757 = vtanh.f32 %v976_v10  ;;  %v4969_v42 = vadd.f32 %v506_v0, %v186_v24  ;;  %v835_v60 = vpop.f32.mrb[5].mxu1  ;;  %v226_v30 = vpop.permute.xlu0 %225 }
  0xf6   :  { %6557 = vst [vmem:[#allocation38_spill] sm:$0xff] %v4965_v46  ;;  %v979_v4 = vadd.f32 %v3299_v23, %v4965_v46  ;;  %v231_v0 = vpop.permute.xlu1 %230 }
  0xf7   :  { %6558 = vst [vmem:[#allocation39_spill] sm:$0xff] %v4969_v42  ;;  %v978_v13 = vadd.f32 %v835_v60, %v4969_v42  ;;  %v3238_v40 = vpop.f32.mrb[6].mxu0 }
  0xf8   :  { %3759 = vtanh.f32 %v979_v4  ;;  %v4973_v1 = vadd.f32 %v3238_v40, %v201_v47  ;;  %v516_v6 = vpop.f32.mrb[7].mxu0  ;;  %v3302_v14 = vpop.f32.mrb[6].mxu1 }
  0xf9   :  { %3761 = vtanh.f32 %v978_v13  ;;  %v4975_v56 = vadd.f32 %v516_v6, %v196_v55  ;;  %v845_v16 = vpop.f32.mrb[7].mxu1 }
  0xfa   :  { %6559 = vst [vmem:[#allocation40_spill] sm:$0xff] %v4973_v1  ;;  %v4977_v12 = vpop.eup %3751  ;;  %v981_v24 = vadd.f32 %v3302_v14, %v4973_v1 }
  0xfb   :  { %6560 = vst [vmem:[#allocation41_spill] sm:$0xff] %v4975_v56  ;;  %v4980_v10 = vpop.eup %3753  ;;  %v980_v23 = vadd.f32 %v845_v16, %v4975_v56  ;;  %v3241_v60 = vpop.f32.mrb[8].mxu0 }
  0xfc   :  { %3763 = vtanh.f32 %v981_v24  ;;  %v4983_v47 = vadd.f32 %v3241_v60, %v211_v57  ;;  %v526_v4 = vpop.f32.mrb[9].mxu0  ;;  %v3305_v40 = vpop.f32.mrb[8].mxu1 }
  0xfd   :  { %3765 = vtanh.f32 %v980_v23  ;;  %v4987_v13 = vadd.f32 %v526_v4, %v206_v53  ;;  %v855_v6 = vpop.f32.mrb[9].mxu1  ;;  %v4994_v16 = vpop.permute.xlu0 %315 }
  0xfe   :  { %6561 = vst [vmem:[#allocation42_spill] sm:$0xff] %v4983_v47  ;;  %v4989_v7 = vpop.eup %3755  ;;  %v983_v14 = vadd.f32 %v3305_v40, %v4983_v47  ;;  %v5001_v23 = vpop.permute.xlu1 %320 }
  0xff   :  { %6562 = vst [vmem:[#allocation43_spill] sm:$0xff] %v4987_v13  ;;  %v4992_v62 = vpop.eup %3757  ;;  %v982_v57 = vadd.f32 %v855_v6, %v4987_v13  ;;  %v3244_v24 = vpop.f32.mrb[10].mxu0 }
 0x100   :  { %3767 = vtanh.f32 %v983_v14  ;;  %v4997_v60 = vadd.f32 %v3244_v24, %v221_v39  ;;  %v536_v34 = vpop.f32.mrb[11].mxu0  ;;  %v3308_v55 = vpop.f32.mrb[10].mxu1 }
 0x101   :  { %3769 = vtanh.f32 %v982_v57  ;;  %v5004_v4 = vadd.f32 %v536_v34, %v4951_v37  ;;  %v865_v40 = vpop.f32.mrb[11].mxu1 }
 0x102   :  { %6563 = vst [vmem:[#allocation44_spill] sm:$0xff] %v4997_v60  ;;  %v5006_v54 = vpop.eup %3759  ;;  %v985_v6 = vadd.f32 %v3308_v55, %v4997_v60  ;;  %v236_v55 = vpop.permute.xlu0 %235 }
 0x103   :  { %6564 = vst [vmem:[#allocation45_spill] sm:$0xff] %v5004_v4  ;;  %v5009_v5 = vpop.eup %3761  ;;  %v984_v39 = vadd.f32 %v865_v40, %v5004_v4  ;;  %v3247_v14 = vpop.f32.mrb[12].mxu0 }
 0x104   :  { %3771 = vtanh.f32 %v985_v6  ;;  %v5012_v24 = vadd.f32 %v3247_v14, %v231_v0  ;;  %v546_v53 = vpop.f32.mrb[13].mxu0  ;;  %v3311_v17 = vpop.f32.mrb[12].mxu1 }
 0x105   :  { %3773 = vtanh.f32 %v984_v39  ;;  %v5016_v34 = vadd.f32 %v546_v53, %v226_v30  ;;  %v875_v37 = vpop.f32.mrb[13].mxu1  ;;  %v241_v40 = vpop.permute.xlu1 %240 }
 0x106   :  { %6565 = vst [vmem:[#allocation46_spill] sm:$0xff] %v5012_v24  ;;  %v5018_v48 = vpop.eup %3763  ;;  %v987_v26 = vadd.f32 %v3311_v17, %v5012_v24 }
 0x107   :  { %6566 = vst [vmem:[#allocation47_spill] sm:$0xff] %v5016_v34  ;;  %v5021_v41 = vpop.eup %3765  ;;  %v986_v0 = vadd.f32 %v875_v37, %v5016_v34  ;;  %v3250_v6 = vpop.f32.mrb[14].mxu0 }
 0x108   :  { %3775 = vtanh.f32 %v987_v26  ;;  %v5024_v14 = vadd.f32 %v3250_v6, %v241_v40  ;;  %v556_v28 = vpop.f32.mrb[15].mxu0  ;;  %v3314_v57 = vpop.f32.mrb[14].mxu1 }
 0x109   :  { %3777 = vtanh.f32 %v986_v0  ;;  %v5028_v53 = vadd.f32 %v556_v28, %v236_v55  ;;  %v885_v39 = vpop.f32.mrb[15].mxu1 }
 0x10a   :  { %6567 = vst [vmem:[#allocation48_spill] sm:$0xff] %v5024_v14  ;;  %v5030_v9 = vpop.eup %3767  ;;  %v989_v17 = vadd.f32 %v3314_v57, %v5024_v14 }
 0x10b   :  { %6568 = vst [vmem:[#allocation49_spill] sm:$0xff] %v5028_v53  ;;  %v5033_v49 = vpop.eup %3769  ;;  %v988_v37 = vadd.f32 %v885_v39, %v5028_v53  ;;  %v3253_v26 = vpop.f32.mrb[16].mxu0 }
 0x10c   :  { %3779 = vtanh.f32 %v989_v17  ;;  %v5037_v40 = vadd.f32 %v3253_v26, %v4920_v3  ;;  %v566_v6 = vpop.f32.mrb[17].mxu0  ;;  %v3317_v19 = vpop.f32.mrb[16].mxu1 }
 0x10d   :  { %3781 = vtanh.f32 %v988_v37  ;;  %v5042_v55 = vadd.f32 %v566_v6, %v4918_v38  ;;  %v895_v0 = vpop.f32.mrb[17].mxu1 }
 0x10e   :  { %6569 = vst [vmem:[#allocation50_spill] sm:$0xff] %v5037_v40  ;;  %v5044_v57 = vpop.eup %3771  ;;  %v991_v30 = vadd.f32 %v3317_v19, %v5037_v40 }
 0x10f   :  { %6570 = vst [vmem:[#allocation51_spill] sm:$0xff] %v5042_v55  ;;  %v5047_v39 = vpop.eup %3773  ;;  %v990_v17 = vadd.f32 %v895_v0, %v5042_v55  ;;  %v3256_v3 = vpop.f32.mrb[18].mxu0 }
 0x110   :  { %3783 = vtanh.f32 %v991_v30  ;;  %v5051_v26 = vadd.f32 %v3256_v3, %v4924_v29  ;;  %v576_v63 = vpop.f32.mrb[19].mxu0  ;;  %v3320_v28 = vpop.f32.mrb[18].mxu1 }
 0x111   :  { %3785 = vtanh.f32 %v990_v17  ;;  %v5056_v37 = vadd.f32 %v576_v63, %v4922_v22  ;;  %v905_v6 = vpop.f32.mrb[19].mxu1 }
 0x112   :  { %6571 = vst [vmem:[#allocation52_spill] sm:$0xff] %v5051_v26  ;;  %v5058_v19 = vpop.eup %3775  ;;  %v993_v40 = vadd.f32 %v3320_v28, %v5051_v26 }
 0x113   :  { %6572 = vst [vmem:[#allocation53_spill] sm:$0xff] %v5056_v37  ;;  %v5061_v0 = vpop.eup %3777  ;;  %v992_v30 = vadd.f32 %v905_v6, %v5056_v37  ;;  %v3259_v29 = vpop.f32.mrb[20].mxu0 }
 0x114   :  { %3787 = vtanh.f32 %v993_v40  ;;  %v5065_v3 = vadd.f32 %v3259_v29, %v4935_v58  ;;  %v586_v55 = vpop.f32.mrb[21].mxu0  ;;  %v3323_v38 = vpop.f32.mrb[20].mxu1 }
 0x115   :  { %3789 = vtanh.f32 %v992_v30  ;;  %v5070_v22 = vadd.f32 %v586_v55, %v4933_v50  ;;  %v915_v17 = vpop.f32.mrb[21].mxu1 }
 0x116   :  { %6573 = vst [vmem:[#allocation54_spill] sm:$0xff] %v5065_v3  ;;  %v5072_v28 = vpop.eup %3779  ;;  %v995_v26 = vadd.f32 %v3323_v38, %v5065_v3 }
 0x117   :  { %6574 = vst [vmem:[#allocation55_spill] sm:$0xff] %v5070_v22  ;;  %v5075_v6 = vpop.eup %3781  ;;  %v994_v40 = vadd.f32 %v915_v17, %v5070_v22  ;;  %v3262_v58 = vpop.f32.mrb[22].mxu0 }
 0x118   :  { %3791 = vtanh.f32 %v995_v26  ;;  %v5079_v29 = vadd.f32 %v3262_v58, %v4939_v36  ;;  %v596_v37 = vpop.f32.mrb[23].mxu0  ;;  %v3326_v63 = vpop.f32.mrb[22].mxu1 }
 0x119   :  { %3793 = vtanh.f32 %v994_v40  ;;  %v5084_v55 = vadd.f32 %v596_v37, %v4937_v32  ;;  %v925_v30 = vpop.f32.mrb[23].mxu1 }
 0x11a   :  { %v3784_v38 = vpop.eup %3783  ;;  %v997_v3 = vadd.f32 %v3326_v63, %v5079_v29 }
 0x11b   :  { %6575 = vst [vmem:[#allocation56_spill] sm:$0xff] %v5084_v55  ;;  %v3786_v51 = vpop.eup %3785  ;;  %v996_v17 = vadd.f32 %v925_v30, %v5084_v55  ;;  %v3265_v26 = vpop.f32.mrb[24].mxu0 }
 0x11c   :  { %3795 = vtanh.f32 %v997_v3  ;;  %v5089_v36 = vadd.f32 %v3265_v26, %v4943_v27  ;;  %v606_v58 = vpop.f32.mrb[25].mxu0  ;;  %v3329_v22 = vpop.f32.mrb[24].mxu1  ;;  %v3563_v31 = vpack.c.bf16 %v3784_v38, %v3786_v51  ;;  %v6576_v27 = vpack.c.bf16 %v4977_v12, %v4980_v10 }
 0x11d   :  { %3797 = vtanh.f32 %v996_v17  ;;  %v5092_v40 = vadd.f32 %v606_v58, %v4941_v25  ;;  %v935_v32 = vpop.f32.mrb[25].mxu1 }
 0x11e   :  { %v3788_v37 = vpop.eup %3787  ;;  %v999_v50 = vadd.f32 %v3329_v22, %v5089_v36  ;;  %3564 = vmatprep.subr.bf16.mxu1 %v3563_v31 }
 0x11f   :  { %v3790_v63 = vpop.eup %3789  ;;  %v998_v30 = vadd.f32 %v935_v32, %v5092_v40  ;;  %v3268_v55 = vpop.f32.mrb[26].mxu0  ;;  %3566 = vmatpush3.bf16.msra.mxu1 %v6576_v27 }
 0x120   :  { %3799 = vtanh.f32 %v999_v50  ;;  %v5100_v51 = vadd.f32 %v3268_v55, %v4947_v21  ;;  %v616_v3 = vpop.f32.mrb[27].mxu0  ;;  %v3332_v25 = vpop.f32.mrb[26].mxu1  ;;  %v3567_v38 = vpack.c.bf16 %v3788_v37, %v3790_v63  ;;  %v6577_v21 = vpack.c.bf16 %v4989_v7, %v4992_v62 }
 0x121   :  { %3801 = vtanh.f32 %v998_v30  ;;  %v5103_v17 = vadd.f32 %v616_v3, %v4945_v33  ;;  %v945_v31 = vpop.f32.mrb[27].mxu1 }
 0x122   :  { %v3792_v22 = vpop.eup %3791  ;;  %v1001_v26 = vadd.f32 %v3332_v25, %v5100_v51  ;;  %3568 = vmatprep.subr.bf16.mxu1 %v3567_v38 }
 0x123   :  { %v3794_v58 = vpop.eup %3793  ;;  %v1000_v12 = vadd.f32 %v945_v31, %v5103_v17  ;;  %v3271_v10 = vpop.f32.mrb[28].mxu0  ;;  %3570 = vmatpush3.bf16.msra.mxu1 %v6577_v21 }
 0x124   :  { %3803 = vtanh.f32 %v1001_v26  ;;  %v5111_v50 = vadd.f32 %v3271_v10, %v4967_v59  ;;  %v626_v55 = vpop.f32.mrb[29].mxu0  ;;  %v3335_v33 = vpop.f32.mrb[28].mxu1  ;;  %v3571_v32 = vpack.c.bf16 %v3792_v22, %v3794_v58  ;;  %v6578_v59 = vpack.c.bf16 %v5006_v54, %v5009_v5 }
 0x125   :  { %3805 = vtanh.f32 %v1000_v12  ;;  %v5114_v37 = vadd.f32 %v626_v55, %v4962_v61  ;;  %v955_v63 = vpop.f32.mrb[29].mxu1  ;;  %v6579_v54 = vpack.c.bf16 %v5018_v48, %v5021_v41 }
 0x126   :  { %v3796_v30 = vpop.eup %3795  ;;  %v1003_v27 = vadd.f32 %v3335_v33, %v5111_v50  ;;  %3572 = vmatprep.subr.bf16.mxu1 %v3571_v32 }
 0x127   :  { %v3798_v3 = vpop.eup %3797  ;;  %v1002_v62 = vadd.f32 %v955_v63, %v5114_v37  ;;  %v3274_v7 = vpop.f32.mrb[30].mxu0  ;;  %3574 = vmatpush3.bf16.msra.mxu1 %v6578_v59 }
 0x128   :  { %3807 = vtanh.f32 %v1003_v27  ;;  %v5122_v25 = vadd.f32 %v3274_v7, %v5001_v23  ;;  %v636_v38 = vpop.f32.mrb[31].mxu0  ;;  %v3338_v61 = vpop.f32.mrb[30].mxu1  ;;  %v3575_v31 = vpack.c.bf16 %v3796_v30, %v3798_v3  ;;  %v6580_v30 = vpack.c.bf16 %v5030_v9, %v5033_v49 }
 0x129   :  { %3809 = vtanh.f32 %v1002_v62  ;;  %v5125_v22 = vadd.f32 %v636_v38, %v4994_v16  ;;  %v965_v26 = vpop.f32.mrb[31].mxu1  ;;  %v6581_v38 = vpack.c.bf16 %v5044_v57, %v5047_v39 }
 0x12a   :  { %v3800_v58 = vpop.eup %3799  ;;  %v1005_v12 = vadd.f32 %v3338_v61, %v5122_v25  ;;  %3576 = vmatprep.subr.bf16.mxu1 %v3575_v31 }
 0x12b   :  { %v3802_v10 = vpop.eup %3801  ;;  %v1004_v5 = vadd.f32 %v965_v26, %v5125_v22  ;;  %3578 = vmatpush3.bf16.msra.mxu1 %v6579_v54  ;;  %v3357_v23 = vpop.f32.mrb[32].mxu0 }
 0x12c   :  { %3811 = vtanh.f32 %v1005_v12  ;;  %v1472_v21 = vadd.f32 %v3357_v23, %v4949_v8  ;;  %v1312_v55 = vpop.f32.mrb[33].mxu0  ;;  %v3579_v33 = vpack.c.bf16 %v3800_v58, %v3802_v10  ;;  %v6582_v10 = vpack.c.bf16 %v5058_v19, %v5061_v0  ;;  %v5444_v8 = vld [vmem:[%s6385_s0 + $0x1e8] sm:$0xff] }
 0x12d   :  { %3813 = vtanh.f32 %v1004_v5  ;;  %v1471_v16 = vadd.f32 %v1312_v55, %v4953_v44  ;;  %v6583_v19 = vpack.c.bf16 %v5072_v28, %v5075_v6 }
 0x12e   :  { %v3804_v32 = vpop.eup %3803  ;;  %3815 = vtanh.f32 %v1472_v21  ;;  %3580 = vmatprep.subr.bf16.mxu1 %v3579_v33  ;;  %v6604_v33 = vld [vmem:[#allocation9_spill] sm:$0xff] }
 0x12f   :  { %v3806_v63 = vpop.eup %3805  ;;  %3817 = vtanh.f32 %v1471_v16  ;;  %3582 = vmatpush3.bf16.msra.mxu1 %v6580_v30  ;;  %v3360_v41 = vpop.f32.mrb[34].mxu0  ;;  %v5161_v16 = vld [vmem:[%s6389_s4] sm:$0xff] }
 0x130   :  { %v1474_v48 = vadd.f32 %v3360_v41, %v4957_v2  ;;  %v1322_v27 = vpop.f32.mrb[35].mxu0  ;;  %v3583_v3 = vpack.c.bf16 %v3804_v32, %v3806_v63 }
 0x131   :  { %v1473_v62 = vadd.f32 %v1322_v27, %v4959_v18 }
 0x132   :  { %v3808_v7 = vpop.eup %3807  ;;  %3819 = vtanh.f32 %v1474_v48  ;;  %3584 = vmatprep.subr.bf16.mxu1 %v3583_v3 }
 0x133   :  { %v3810_v59 = vpop.eup %3809  ;;  %3821 = vtanh.f32 %v1473_v62  ;;  %3586 = vmatpush3.bf16.msra.mxu1 %v6581_v38  ;;  %v3363_v61 = vpop.f32.mrb[36].mxu0 }
 0x134   :  { %v1476_v49 = vadd.f32 %v3363_v61, %v4965_v46  ;;  %v1332_v9 = vpop.f32.mrb[37].mxu0  ;;  %v3587_v31 = vpack.c.bf16 %v3808_v7, %v3810_v59 }
 0x135   :  { %v1475_v26 = vadd.f32 %v1332_v9, %v4969_v42 }
 0x136   :  { %v3812_v58 = vpop.eup %3811  ;;  %3823 = vtanh.f32 %v1476_v49  ;;  %3588 = vmatprep.subr.bf16.mxu1 %v3587_v31 }
 0x137   :  { %v3814_v12 = vpop.eup %3813  ;;  %3825 = vtanh.f32 %v1475_v26  ;;  %3590 = vmatpush3.bf16.msra.mxu1 %v6582_v10  ;;  %v3366_v5 = vpop.f32.mrb[38].mxu0 }
 0x138   :  { %v5147_v54 = vpop.eup %3815  ;;  %v1478_v57 = vadd.f32 %v3366_v5, %v4973_v1  ;;  %v1342_v39 = vpop.f32.mrb[39].mxu0  ;;  %v3591_v23 = vpack.c.bf16 %v3812_v58, %v3814_v12 }
 0x139   :  { %v5150_v21 = vpop.eup %3817  ;;  %v1477_v55 = vadd.f32 %v1342_v39, %v4975_v56 }
 0x13a   :  { %3827 = vtanh.f32 %v1478_v57  ;;  %3592 = vmatprep.subr.bf16.mxu1 %v3591_v23 }
 0x13b   :  { %3829 = vtanh.f32 %v1477_v55  ;;  %3594 = vmatpush3.bf16.msra.mxu1 %v6583_v19  ;;  %v3369_v0 = vpop.f32.mrb[40].mxu0  ;;  %v4008_v55 = vld [vmem:[%s6385_s0 + $0x178] sm:$0xff] }
 0x13c   :  { %v5163_v32 = vpop.eup %3819  ;;  %v1480_v63 = vadd.f32 %v3369_v0, %v4983_v47  ;;  %v1352_v30 = vpop.f32.mrb[41].mxu0  ;;  %3739 = vmatprep.subr.bf16.mxu1 %v4499_v52 }
 0x13d   :  { %v5167_v41 = vpop.eup %3821  ;;  %v1479_v48 = vadd.f32 %v1352_v30, %v4987_v13  ;;  %v6585_v30 = vld [vmem:[#allocation21_spill] sm:$0xff] }
 0x13e   :  { %3831 = vtanh.f32 %v1480_v63  ;;  %1108 = vmatmul.mubr.f32.vlgmr.msra.gmra.mrb[32].mxu1 %v5161_v16  ;;  %v6584_v63 = vld [vmem:[#allocation20_spill] sm:$0xff] }
 0x13f   :  { %3833 = vtanh.f32 %v1479_v48  ;;  %3743 = vmatpush3.bf16.msra.mxu1 %v4499_v52  ;;  %v3372_v6 = vpop.f32.mrb[42].mxu0  ;;  %3379 = vmatprep.mubr.msk.f32.mxu1 %vm323_vm0, %v4647_v35 }
 0x140   :  { %v5176_v27 = vpop.eup %3823  ;;  %v1482_v3 = vadd.f32 %v3372_v6, %v4997_v60  ;;  %v1362_v62 = vpop.f32.mrb[43].mxu0  ;;  %3740 = vmatprep.subr.bf16.mxu1 %v4534_v11  ;;  %v6586_v6 = vld [vmem:[#allocation22_spill] sm:$0xff] }
 0x141   :  { %v5180_v7 = vpop.eup %3825  ;;  %v1481_v59 = vadd.f32 %v1362_v62, %v5004_v4  ;;  %v6588_v62 = vld [vmem:[#allocation24_spill] sm:$0xff]  ;;  %v6606_v4 = vld [vmem:[#allocation11_spill] sm:$0xff] }
 0x142   :  { %3835 = vtanh.f32 %v1482_v3  ;;  %v6587_v3 = vld [vmem:[#allocation23_spill] sm:$0xff]  ;;  %v1185_v60 = vrot.slane %v6606_v4, 4 }
 0x143   :  { %3837 = vtanh.f32 %v1481_v59  ;;  %3744 = vmatpush3.bf16.msra.mxu1 %v4534_v11  ;;  %v3375_v52 = vpop.f32.mrb[44].mxu0  ;;  %v6589_v59 = vld [vmem:[#allocation25_spill] sm:$0xff] }
 0x144   :  { %v5186_v35 = vpop.eup %3827  ;;  %v1484_v61 = vadd.f32 %v3375_v52, %v5012_v24  ;;  %v1372_v49 = vpop.f32.mrb[45].mxu0  ;;  %3741 = vmatprep.subr.bf16.mxu1 %v4592_v15  ;;  %v6590_v52 = vld [vmem:[#allocation26_spill] sm:$0xff] }
 0x145   :  { %v5190_v9 = vpop.eup %3829  ;;  %v1483_v31 = vadd.f32 %v1372_v49, %v5016_v34  ;;  %v6592_v49 = vld [vmem:[#allocation28_spill] sm:$0xff] }
 0x146   :  { %3839 = vtanh.f32 %v1484_v61  ;;  %v6591_v61 = vld [vmem:[#allocation27_spill] sm:$0xff] }
 0x147   :  { %3841 = vtanh.f32 %v1483_v31  ;;  %3745 = vmatpush3.bf16.msra.mxu1 %v4592_v15  ;;  %v3378_v11 = vpop.f32.mrb[46].mxu0  ;;  %v6593_v31 = vld [vmem:[#allocation29_spill] sm:$0xff] }
 0x148   :  { %v5196_v58 = vpop.eup %3831  ;;  %v1486_v12 = vadd.f32 %v3378_v11, %v5024_v14  ;;  %v1382_v10 = vpop.f32.mrb[47].mxu0  ;;  %3742 = vmatprep.subr.bf16.mxu1 %v4660_v43  ;;  %v6594_v11 = vld [vmem:[#allocation30_spill] sm:$0xff] }
 0x149   :  { %v5200_v5 = vpop.eup %3833  ;;  %v1485_v57 = vadd.f32 %v1382_v10, %v5028_v53  ;;  %v6596_v10 = vld [vmem:[#allocation32_spill] sm:$0xff] }
 0x14a   :  { %3843 = vtanh.f32 %v1486_v12  ;;  %v6595_v12 = vld [vmem:[#allocation31_spill] sm:$0xff] }
 0x14b   :  { %3845 = vtanh.f32 %v1485_v57  ;;  %3746 = vmatpush3.bf16.msra.mxu1 %v4660_v43  ;;  %v6597_v57 = vld [vmem:[#allocation33_spill] sm:$0xff] }
 0x14c   :  { %v5206_v15 = vpop.eup %3835 }
 0x14d   :  { %v5208_v23 = vpop.eup %3837 }
 0x14e   :  { %3380 = vmatmul.mubr.msk.f32.vlgmr.msra.gmra.mrb[34].mxu1 %vm323_vm0, %v4673_v45 }
 0x14f   :  { %3382 = vmatprep.mubr.msk.f32.mxu1 %vm323_vm0, %v4681_v20  ;;  %v6603_v20 = vld [vmem:[#allocation10_spill] sm:$0xff] }
 0x150   :  { %v5216_v19 = vpop.eup %3839  ;;  %v1172_v43 = vrot.slane %v6603_v20, 4 }
 0x151   :  { %v5218_v0 = vpop.eup %3841 }
 0x152   :  { %3383 = vmatmul.mubr.msk.f32.gmra.mrb[36].mxu1 %vm323_vm0, %v6584_v63  ;;  %v6598_v63 = vld [vmem:[#allocation5_spill] sm:$0xff]  ;;  %v1173_v14 = vadd.f32 %v1172_v43, %v6603_v20 }
 0x153   :  { %3385 = vmatprep.mubr.msk.f32.mxu1 %vm323_vm0, %v6585_v30  ;;  %v1120_v30 = vrot.slane %v6598_v63, 4 }
 0x154   :  { %v5226_v45 = vpop.eup %3843 }
 0x155   :  { %v5228_v48 = vpop.eup %3845 }
 0x156   :  { %3386 = vmatmul.mubr.msk.f32.gmra.mrb[38].mxu1 %vm323_vm0, %v6586_v6  ;;  %v6599_v6 = vld [vmem:[#allocation6_spill] sm:$0xff] }
 0x157   :  { %3388 = vmatprep.mubr.msk.f32.mxu1 %vm323_vm0, %v6587_v3  ;;  %v1133_v3 = vrot.slane %v6599_v6, 4 }
 0x15a   :  { %3389 = vmatmul.mubr.msk.f32.gmra.mrb[40].mxu1 %vm323_vm0, %v6588_v62  ;;  %v6600_v62 = vld [vmem:[#allocation7_spill] sm:$0xff] }
 0x15b   :  { %3391 = vmatprep.mubr.msk.f32.mxu1 %vm323_vm0, %v6589_v59  ;;  %v1146_v59 = vrot.slane %v6600_v62, 4 }
 0x15e   :  { %3392 = vmatmul.mubr.msk.f32.gmra.mrb[42].mxu1 %vm323_vm0, %v6590_v52  ;;  %v1121_v52 = vadd.f32 %v1120_v30, %v6598_v63 }
 0x15f   :  { %3394 = vmatprep.mubr.msk.f32.mxu1 %vm323_vm0, %v6591_v61  ;;  %v1134_v61 = vadd.f32 %v1133_v3, %v6599_v6  ;;  %v4007_v6 = vld [vmem:[%s6385_s0 + $0x170] sm:$0xff] }
 0x160   :  { %v1122_v63 = vrot.slane %v1121_v52, 2 }
 0x161   :  { %v1135_v30 = vrot.slane %v1134_v61, 2 }
 0x162   :  { %3395 = vmatmul.mubr.msk.f32.gmra.mrb[44].mxu1 %vm323_vm0, %v6592_v49  ;;  %v5263_v49 = vld [vmem:[%s6385_s0 + $0x130] sm:$0xff]  ;;  %v1123_v38 = vadd.f32 %v1122_v63, %v1121_v52 }
 0x163   :  { %3397 = vmatprep.mubr.msk.f32.mxu1 %vm323_vm0, %v6593_v31  ;;  %v6601_v31 = vld [vmem:[#allocation8_spill] sm:$0xff]  ;;  %v1206_v3 = vmul.f32 %v4007_v6, %v5263_v49  ;;  %v1136_v28 = vadd.f32 %v1135_v30, %v1134_v61 }
 0x164   :  { %v6605_v6 = vld [vmem:[#allocation12_spill] sm:$0xff]  ;;  %v1124_v1 = vrot.slane %v1123_v38, 1 }
 0x165   :  { %v1209_v53 = vadd.f32 %v6604_v33, %v1206_v3  ;;  %v1137_v42 = vrot.slane %v1136_v28, 1 }
 0x166   :  { %3398 = vmatmul.mubr.msk.f32.gmra.mrb[46].mxu1 %vm323_vm0, %v6594_v11  ;;  %v1159_v11 = vrot.slane %v6601_v31, 4  ;;  %v1125_v3 = vadd.f32 %v1124_v1, %v1123_v38 }
 0x167   :  { %3400 = vmatprep.mubr.msk.f32.mxu1 %vm323_vm0, %v6595_v12  ;;  %v5269_v12 = vld [vmem:[%s6385_s0 + $0x118] sm:$0xff] }
 0x16a   :  { %3401 = vmatmul.mubr.msk.f32.gmra.mrb[48].mxu1 %vm323_vm0, %v6596_v10  ;;  %v1147_v10 = vadd.f32 %v1146_v59, %v6600_v62  ;;  %v1194_v62 = vmul.f32 %v4008_v55, %v5269_v12  ;;  %v1160_v59 = vadd.f32 %v1159_v11, %v6601_v31  ;;  %v1186_v31 = vadd.f32 %v1185_v60, %v6606_v4 }
 0x16b   :  { %2084 = vmatprep.mubr.f32.mxu1 %v6597_v57  ;;  %v5275_v57 = vld [vmem:[%s6385_s0 + $0x138] sm:$0xff]  ;;  %v1174_v11 = vrot.slane %v1173_v14, 2 }
 0x16c   :  { %6602 = vst [vmem:[#allocation20_spill] sm:$0xff] %v5275_v57  ;;  %v1207_v39 = vmul.f32 %v4008_v55, %v5275_v57  ;;  %v1148_v26 = vrot.slane %v1147_v10, 2  ;;  %v1197_v34 = vadd.f32 %v6605_v6, %v1194_v62  ;;  %v1161_v24 = vrot.slane %v1160_v59, 2 }
 0x16d   :  { %v1187_v63 = vrot.slane %v1186_v31, 2  ;;  %v1175_v43 = vadd.f32 %v1174_v11, %v1173_v14  ;;  %v1138_v62 = vadd.f32 %v1137_v42, %v1136_v28  ;;  %v5322_v11 = vld [vmem:[%s6385_s0 + $0x48] sm:$0xff] }
 0x16e   :  { %v1210_v13 = vadd.f32 %v1209_v53, %v1207_v39  ;;  %v1149_v47 = vadd.f32 %v1148_v26, %v1147_v10  ;;  %v1198_v56 = vrot.slane %v1197_v34, 4  ;;  %v1162_v61 = vadd.f32 %v1161_v24, %v1160_v59  ;;  %6608 = vst [vmem:[#allocation22_spill] sm:$0xff] %v5322_v11 }
 0x16f   :  { %v1188_v46 = vadd.f32 %v1187_v63, %v1186_v31  ;;  %v1176_v26 = vrot.slane %v1175_v43, 1  ;;  %v5315_v31 = vld [vmem:[%s6385_s0 + $0x40] sm:$0xff] }
 0x170   :  { %v1211_v55 = vrot.slane %v1210_v13, 4  ;;  %v1199_v52 = vadd.f32 %v1198_v56, %v1197_v34  ;;  %v1150_v30 = vrot.slane %v1149_v47, 1  ;;  %v1163_v6 = vrot.slane %v1162_v61, 1  ;;  %6607 = vst [vmem:[#allocation21_spill] sm:$0xff] %v5315_v31 }
 0x171   :  { %v1189_v2 = vrot.slane %v1188_v46, 1  ;;  %v1177_v60 = vadd.f32 %v1176_v26, %v1175_v43  ;;  %v5343_v43 = vld [vmem:[%s6385_s0 + $0x80] sm:$0xff]  ;;  %v5364_v26 = vld [vmem:[%s6385_s0 + $0xa8] sm:$0xff] }
 0x172   :  { %v1212_v33 = vadd.f32 %v1211_v55, %v1210_v13  ;;  %v1200_v20 = vrot.slane %v1199_v52, 2  ;;  %v1151_v53 = vadd.f32 %v1150_v30, %v1149_v47  ;;  %v1164_v18 = vadd.f32 %v1163_v6, %v1162_v61  ;;  %v5329_v61 = vld [vmem:[%s6385_s0 + $0x60] sm:$0xff]  ;;  %6611 = vst [vmem:[#allocation25_spill] sm:$0xff] %v5343_v43  ;;  %6614 = vst [vmem:[#allocation28_spill] sm:$0xff] %v5364_v26 }
 0x173   :  { %v1218_v13 = vsel %vm1217_vm1, %v1125_v3, %v1138_v62  ;;  %v1190_v24 = vadd.f32 %v1189_v2, %v1188_v46  ;;  %v5305_v2 = vld [vmem:[%s6385_s0 + $0x1c0] sm:$0xff]  ;;  %6609 = vst [vmem:[#allocation23_spill] sm:$0xff] %v5329_v61  ;;  %v5350_v3 = vld [vmem:[%s6385_s0 + $0x88] sm:$0xff] }
 0x174   :  { %v1201_v39 = vadd.f32 %v1200_v20, %v1199_v52  ;;  %v1213_v10 = vrot.slane %v1212_v33, 2  ;;  %v1220_v34 = vsel %vm1219_vm2, %v1218_v13, %v1151_v53  ;;  %v2090_v55 = vmul.f32 %v5315_v31, %v5305_v2  ;;  %6612 = vst [vmem:[#allocation26_spill] sm:$0xff] %v5350_v3  ;;  %v5357_v6 = vld [vmem:[%s6385_s0 + $0xa0] sm:$0xff]  ;;  %v5381_v13 = vld [vmem:[%s6385_s0 + $0x50] sm:$0xff] }
 0x175   :  { %v1222_v47 = vsel %vm1221_vm3, %v1220_v34, %v1164_v18  ;;  %v5310_v18 = vld [vmem:[%s6385_s0 + $0x1c8] sm:$0xff]  ;;  %v2103_v63 = vmul.f32 %v5329_v61, %v5305_v2  ;;  %v2116_v20 = vmul.f32 %v5343_v43, %v5305_v2  ;;  %6613 = vst [vmem:[#allocation27_spill] sm:$0xff] %v5357_v6  ;;  %v2129_v53 = vmul.f32 %v5357_v6, %v5305_v2  ;;  %v5561_v43 = vpop.permute.xlu0 %1040 }
 0x176   :  { %v1202_v56 = vrot.slane %v1201_v39, 1  ;;  %v1214_v4 = vadd.f32 %v1213_v10, %v1212_v33  ;;  %v1224_v14 = vsel %vm1223_vm4, %v1222_v47, %v1177_v60  ;;  %v2091_v52 = vmul.f32 %v5322_v11, %v5310_v18  ;;  %v5336_v33 = vld [vmem:[%s6385_s0 + $0x68] sm:$0xff]  ;;  %v5371_v10 = vld [vmem:[%s6385_s0 + $0x1d0] sm:$0xff]  ;;  %6615 = vst [vmem:[#allocation29_spill] sm:$0xff] %v5381_v13 }
 0x177   :  { %v1226_v38 = vsel %vm1225_vm5, %v1224_v14, %v1190_v24  ;;  %6610 = vst [vmem:[#allocation24_spill] sm:$0xff] %v5336_v33  ;;  %v2104_v30 = vmul.f32 %v5336_v33, %v5310_v18  ;;  %v2117_v62 = vmul.f32 %v5350_v3, %v5310_v18  ;;  %v2092_v24 = vmul.f32 %v5381_v13, %v5371_v10  ;;  %v5395_v14 = vld [vmem:[%s6385_s0 + $0x70] sm:$0xff] }
 0x178   :  { %v1203_v1 = vadd.f32 %v1202_v56, %v1201_v39  ;;  %v1215_v42 = vrot.slane %v1214_v4, 1  ;;  %v2130_v39 = vmul.f32 %v5364_v26, %v5310_v18  ;;  %v2094_v60 = vadd.f32 %v2091_v52, %v2090_v55  ;;  %6617 = vst [vmem:[#allocation31_spill] sm:$0xff] %v5395_v14  ;;  %v5409_v52 = vld [vmem:[%s6385_s0 + $0x90] sm:$0xff] }
 0x179   :  { %v2107_v56 = vadd.f32 %v2104_v30, %v2103_v63  ;;  %v2120_v34 = vadd.f32 %v2117_v62, %v2116_v20  ;;  %6619 = vst [vmem:[#allocation33_spill] sm:$0xff] %v5409_v52  ;;  %v2118_v63 = vmul.f32 %v5409_v52, %v5371_v10  ;;  %v5416_v30 = vld [vmem:[%s6385_s0 + $0x98] sm:$0xff]  ;;  %v6637_v31 = vld [vmem:[#allocation50_spill] sm:$0xff] }
 0x17a   :  { %v1216_v28 = vadd.f32 %v1215_v42, %v1214_v4  ;;  %v1228_v59 = vsel %vm1227_vm6, %v1226_v38, %v1203_v1  ;;  %v5376_v4 = vld [vmem:[%s6385_s0 + $0x1d8] sm:$0xff]  ;;  %v2133_v1 = vadd.f32 %v2130_v39, %v2129_v53  ;;  %v2095_v38 = vadd.f32 %v2094_v60, %v2092_v24  ;;  %6620 = vst [vmem:[#allocation5_spill] sm:$0xff] %v5416_v30  ;;  %v5423_v53 = vld [vmem:[%s6385_s0 + $0xb0] sm:$0xff] }
 0x17b   :  { %v5388_v42 = vld [vmem:[%s6385_s0 + $0x58] sm:$0xff]  ;;  %v2119_v20 = vmul.f32 %v5416_v30, %v5376_v4  ;;  %6621 = vst [vmem:[#allocation6_spill] sm:$0xff] %v5423_v53  ;;  %v2131_v39 = vmul.f32 %v5423_v53, %v5371_v10  ;;  %v2121_v44 = vadd.f32 %v2120_v34, %v2118_v63  ;;  %v5449_v53 = vld [vmem:[%s6385_s0 + $0xc0] sm:$0xff]  ;;  %v5458_v34 = vld [vmem:[%s6385_s0 + $0xc8] sm:$0xff] }
 0x17c   :  { %v5300_v46 = vsel %vm1229_vm7, %v1228_v59, %v1216_v28  ;;  %6616 = vst [vmem:[#allocation30_spill] sm:$0xff] %v5388_v42  ;;  %v2093_v47 = vmul.f32 %v5388_v42, %v5376_v4  ;;  %v2105_v28 = vmul.f32 %v5395_v14, %v5371_v10  ;;  %v5402_v59 = vld [vmem:[%s6385_s0 + $0x78] sm:$0xff]  ;;  %6624 = vst [vmem:[#allocation10_spill] sm:$0xff] %v5449_v53 }
 0x17d   :  { %6618 = vst [vmem:[#allocation32_spill] sm:$0xff] %v5402_v59  ;;  %v2106_v55 = vmul.f32 %v5402_v59, %v5376_v4  ;;  %v5430_v60 = vld [vmem:[%s6385_s0 + $0xb8] sm:$0xff]  ;;  %v2134_v52 = vadd.f32 %v2133_v1, %v2131_v39  ;;  %6626 = vst [vmem:[#allocation12_spill] sm:$0xff] %v5458_v34  ;;  %v5474_v1 = vld [vmem:[%s6385_s0 + $0xe8] sm:$0xff] }
 0x17e   :  { %v2108_v62 = vadd.f32 %v2107_v56, %v2105_v28  ;;  %6622 = vst [vmem:[#allocation7_spill] sm:$0xff] %v5430_v60  ;;  %v2132_v24 = vmul.f32 %v5430_v60, %v5376_v4  ;;  %v5437_v56 = vld [vmem:[%s6385_s0 + $0x1e0] sm:$0xff]  ;;  %v5439_v28 = vadd.f32 %v2095_v38, %v2093_v47  ;;  %v2143_v47 = vmul.f32 %v5458_v34, %v5444_v8 }
 0x17f   :  { %v2142_v60 = vmul.f32 %v5449_v53, %v5437_v56  ;;  %v5465_v38 = vld [vmem:[%s6385_s0 + $0xe0] sm:$0xff]  ;;  %6629 = vst [vmem:[#allocation58_spill] sm:$0xff] %v5474_v1  ;;  %v5537_v53 = vld [vmem:[%s6385_s0 + $0xf0] sm:$0xff] }
 0x180   :  { %6623 = vst [vmem:[#allocation8_spill] sm:$0xff] %v5439_v28  ;;  %v5453_v30 = vadd.f32 %v2108_v62, %v2106_v55  ;;  %6627 = vst [vmem:[#allocation11_spill] sm:$0xff] %v5465_v38  ;;  %v2155_v63 = vmul.f32 %v5465_v38, %v5437_v56  ;;  %v5469_v28 = vadd.f32 %v2121_v44, %v2119_v20  ;;  %v5481_v62 = vld [vmem:[%s6385_s0 + $0x100] sm:$0xff]  ;;  %v5490_v20 = vld [vmem:[%s6385_s0 + $0x108] sm:$0xff] }
 0x181   :  { %v2156_v55 = vmul.f32 %v5474_v1, %v5444_v8  ;;  %6630 = vst [vmem:[#allocation59_spill] sm:$0xff] %v5481_v62  ;;  %v2168_v39 = vmul.f32 %v5481_v62, %v5437_v56  ;;  %v2146_v44 = vadd.f32 %v2143_v47, %v2142_v60  ;;  %6632 = vst [vmem:[#allocation61_spill] sm:$0xff] %v5490_v20  ;;  %v5497_v38 = vld [vmem:[%s6385_s0 + $0x120] sm:$0xff]  ;;  %v5504_v60 = vld [vmem:[%s6385_s0 + $0x128] sm:$0xff] }
 0x182   :  { %6625 = vst [vmem:[#allocation9_spill] sm:$0xff] %v5453_v30  ;;  %6628 = vst [vmem:[#allocation57_spill] sm:$0xff] %v5469_v28  ;;  %v5485_v30 = vadd.f32 %v2134_v52, %v2132_v24  ;;  %v2169_v28 = vmul.f32 %v5490_v20, %v5444_v8  ;;  %v2181_v62 = vmul.f32 %v5497_v38, %v5437_v56  ;;  %v5511_v47 = vld [vmem:[%s6385_s0 + $0x1f0] sm:$0xff] }
 0x183   :  { %v2159_v1 = vadd.f32 %v2156_v55, %v2155_v63  ;;  %v2182_v24 = vmul.f32 %v5504_v60, %v5444_v8  ;;  %v5516_v63 = vld [vmem:[%s6385_s0 + $0x1f8] sm:$0xff]  ;;  %v2157_v59 = vmul.f32 %v5537_v53, %v5511_v47 }
 0x184   :  { %6631 = vst [vmem:[#allocation60_spill] sm:$0xff] %v5485_v30  ;;  %v2172_v52 = vadd.f32 %v2169_v28, %v2168_v39  ;;  %v5521_v28 = vld [vmem:[%s6385_s0 + $0xd0] sm:$0xff]  ;;  %v5530_v30 = vld [vmem:[%s6385_s0 + $0xd8] sm:$0xff] }
 0x185   :  { %v2144_v55 = vmul.f32 %v5521_v28, %v5511_v47  ;;  %v5525_v39 = vadd.f32 %v2182_v24, %v2181_v62  ;;  %v2145_v20 = vmul.f32 %v5530_v30, %v5516_v63  ;;  %v5544_v62 = vld [vmem:[%s6385_s0 + $0xf8] sm:$0xff]  ;;  %v2160_v14 = vadd.f32 %v2159_v1, %v2157_v59 }
 0x186   :  { %v2158_v24 = vmul.f32 %v5544_v62, %v5516_v63  ;;  %v6639_v1 = vld [vmem:[#allocation52_spill] sm:$0xff] }
 0x187   :  { %6633 = vst [vmem:[#allocation62_spill] sm:$0xff] %v5525_v39  ;;  %v2147_v34 = vadd.f32 %v2146_v44, %v2144_v55  ;;  %v5551_v44 = vld [vmem:[%s6385_s0 + $0x110] sm:$0xff] }
 0x188   :  { %v2170_v55 = vmul.f32 %v5551_v44, %v5511_v47  ;;  %v5559_v13 = vadd.f32 %v2160_v14, %v2158_v24 }
 0x189   :  { %v5555_v39 = vadd.f32 %v2147_v34, %v2145_v20  ;;  %v6638_v20 = vld [vmem:[#allocation51_spill] sm:$0xff] }
 0x18a   :  { %v5557_v42 = vadd.f32 %v2172_v52, %v2170_v55  ;;  %6636 = vst [vmem:[#allocation65_spill] sm:$0xff] %v5559_v13  ;;  %v6641_v55 = vld [vmem:[#allocation54_spill] sm:$0xff]  ;;  %v6642_v13 = vld [vmem:[#allocation55_spill] sm:$0xff] }
 0x18b   :  { %6634 = vst [vmem:[#allocation63_spill] sm:$0xff] %v5555_v39 }
 0x18c   :  { %6635 = vst [vmem:[#allocation64_spill] sm:$0xff] %v5557_v42 }
 0x211   :  { %v2983_v26 = vpop.f32.mrb[32].mxu1 }
 0x212   :  { %v2984_v6 = vpop.f32.mrb[33].mxu1 }
 0x213   :  { %v2985_v3 = vadd.f32 %v2984_v6, %v2983_v26  ;;  %v6640_v6 = vld [vmem:[#allocation53_spill] sm:$0xff] }
 0x215   :  { %v1110_v33 = vadd.f32 %v2985_v3, %v5561_v43 }
 0x217   :  { %v5565_v61 = vmul.f32 %v5300_v46, %v1110_v33 }
 0x221   :  { %v3381_v11 = vpop.f32.mrb[34].mxu1 }
 0x222   :  { %v1488_v57 = vadd.f32 %v3381_v11, %v6637_v31  ;;  %v1392_v34 = vpop.f32.mrb[35].mxu1 }
 0x223   :  { %v1487_v59 = vadd.f32 %v1392_v34, %v6638_v20 }
 0x224   :  { %3847 = vtanh.f32 %v1488_v57 }
 0x225   :  { %3849 = vtanh.f32 %v1487_v59  ;;  %v3384_v14 = vpop.f32.mrb[36].mxu1 }
 0x226   :  { %v1490_v52 = vadd.f32 %v3384_v14, %v6639_v1  ;;  %v1402_v24 = vpop.f32.mrb[37].mxu1  ;;  %v6643_v14 = vld [vmem:[#allocation56_spill] sm:$0xff] }
 0x227   :  { %v1489_v26 = vadd.f32 %v1402_v24, %v6640_v6 }
 0x228   :  { %3851 = vtanh.f32 %v1490_v52 }
 0x229   :  { %3853 = vtanh.f32 %v1489_v26  ;;  %v3387_v3 = vpop.f32.mrb[38].mxu1 }
 0x22a   :  { %v1492_v46 = vadd.f32 %v3387_v3, %v6641_v55  ;;  %v1412_v33 = vpop.f32.mrb[39].mxu1 }
 0x22b   :  { %v1491_v42 = vadd.f32 %v1412_v33, %v6642_v13 }
 0x22c   :  { %3855 = vtanh.f32 %v1492_v46  ;;  %v6644_v46 = vpack.c.bf16 %v5147_v54, %v5150_v21 }
 0x22d   :  { %3857 = vtanh.f32 %v1491_v42  ;;  %v3390_v11 = vpop.f32.mrb[40].mxu1 }
 0x22e   :  { %v3848_v34 = vpop.eup %3847  ;;  %v1494_v57 = vadd.f32 %v3390_v11, %v5079_v29  ;;  %v1422_v59 = vpop.f32.mrb[41].mxu1 }
 0x22f   :  { %v3850_v39 = vpop.eup %3849  ;;  %v1493_v1 = vadd.f32 %v1422_v59, %v6643_v14 }
 0x230   :  { %3859 = vtanh.f32 %v1494_v57  ;;  %v3611_v24 = vpack.c.bf16 %v3848_v34, %v3850_v39 }
 0x231   :  { %3861 = vtanh.f32 %v1493_v1  ;;  %v3393_v52 = vpop.f32.mrb[42].mxu1 }
 0x232   :  { %v3852_v26 = vpop.eup %3851  ;;  %v1496_v3 = vadd.f32 %v3393_v52, %v5089_v36  ;;  %v1432_v55 = vpop.f32.mrb[43].mxu1  ;;  %3612 = vmatprep.subr.bf16.mxu0 %v3611_v24  ;;  %v6645_v24 = vpack.c.bf16 %v5163_v32, %v5167_v41 }
 0x233   :  { %v3854_v33 = vpop.eup %3853  ;;  %v1495_v42 = vadd.f32 %v1432_v55, %v5092_v40  ;;  %3614 = vmatpush3.bf16.msra.mxu0 %v6644_v46  ;;  %v6646_v46 = vpack.c.bf16 %v5176_v27, %v5180_v7 }
 0x234   :  { %3863 = vtanh.f32 %v1496_v3  ;;  %v3615_v11 = vpack.c.bf16 %v3852_v26, %v3854_v33 }
 0x235   :  { %3865 = vtanh.f32 %v1495_v42  ;;  %v3396_v59 = vpop.f32.mrb[44].mxu1 }
 0x236   :  { %v3856_v57 = vpop.eup %3855  ;;  %v1498_v39 = vadd.f32 %v3396_v59, %v5100_v51  ;;  %v1442_v1 = vpop.f32.mrb[45].mxu1  ;;  %3616 = vmatprep.subr.bf16.mxu0 %v3615_v11 }
 0x237   :  { %v3858_v34 = vpop.eup %3857  ;;  %v1497_v52 = vadd.f32 %v1442_v1, %v5103_v17  ;;  %3618 = vmatpush3.bf16.msra.mxu0 %v6645_v24  ;;  %v6648_v24 = vpack.c.bf16 %v5196_v58, %v5200_v5  ;;  %v3643_v58 = vpack.c.bf16 %v5310_v18, %v5305_v2  ;;  %v6651_v5 = vpack.c.bf16 %v5226_v45, %v5228_v48  ;;  %v5640_v45 = vld [vmem:[%s6387_s2 + $0x18] sm:$0xff]  ;;  %v5647_v48 = vld [vmem:[%s6387_s2 + $0x20] sm:$0xff]  ;;  %v5654_v2 = vld [vmem:[%s6387_s2 + $0x28] sm:$0xff] }
 0x238   :  { %3867 = vtanh.f32 %v1498_v39  ;;  %v3619_v55 = vpack.c.bf16 %v3856_v57, %v3858_v34  ;;  %v6647_v34 = vpack.c.bf16 %v5186_v35, %v5190_v9  ;;  %v5661_v18 = vld [vmem:[%s6387_s2 + $0x30] sm:$0xff] }
 0x239   :  { %3869 = vtanh.f32 %v1497_v52  ;;  %v3399_v54 = vpop.f32.mrb[46].mxu1 }
 0x23a   :  { %v3860_v21 = vpop.eup %3859  ;;  %v1500_v26 = vadd.f32 %v3399_v54, %v5111_v50  ;;  %v1452_v3 = vpop.f32.mrb[47].mxu1  ;;  %3620 = vmatprep.subr.bf16.mxu0 %v3619_v55 }
 0x23b   :  { %v3862_v33 = vpop.eup %3861  ;;  %v1499_v42 = vadd.f32 %v1452_v3, %v5114_v37  ;;  %3622 = vmatpush3.bf16.msra.mxu0 %v6646_v46  ;;  %v5703_v46 = vld [vmem:[%s6387_s2 + $0x60] sm:$0xff] }
 0x23c   :  { %3871 = vtanh.f32 %v1500_v26  ;;  %v3623_v11 = vpack.c.bf16 %v3860_v21, %v3862_v33  ;;  %v6649_v26 = vpack.c.bf16 %v5206_v15, %v5208_v23  ;;  %v6650_v33 = vpack.c.bf16 %v5216_v19, %v5218_v0  ;;  %v5615_v23 = vld [vmem:[%s6387_s2] sm:$0xff]  ;;  %6655 = vst [vmem:[#allocation68_spill] sm:$0xff] %v5703_v46 }
 0x23d   :  { %3873 = vtanh.f32 %v1499_v42  ;;  %v3402_v32 = vpop.f32.mrb[48].mxu1  ;;  %v3647_v15 = vpack.c.bf16 %v5376_v4, %v5371_v10  ;;  %v3651_v19 = vpack.c.bf16 %v5444_v8, %v5437_v56  ;;  %v3655_v0 = vpack.c.bf16 %v5516_v63, %v5511_v47  ;;  %v5633_v8 = vld [vmem:[%s6387_s2 + $0x10] sm:$0xff]  ;;  %v5668_v10 = vld [vmem:[%s6387_s2 + $0x38] sm:$0xff]  ;;  %v5675_v4 = vld [vmem:[%s6387_s2 + $0x40] sm:$0xff] }
 0x23e   :  { %v3864_v41 = vpop.eup %3863  ;;  %v1502_v59 = vadd.f32 %v3402_v32, %v5122_v25  ;;  %v1462_v57 = vpop.f32.mrb[49].mxu1  ;;  %3624 = vmatprep.subr.bf16.mxu0 %v3623_v11  ;;  %v5682_v56 = vld [vmem:[%s6387_s2 + $0x48] sm:$0xff]  ;;  %v5689_v47 = vld [vmem:[%s6387_s2 + $0x50] sm:$0xff]  ;;  %v5696_v63 = vld [vmem:[%s6387_s2 + $0x58] sm:$0xff] }
 0x23f   :  { %v3866_v39 = vpop.eup %3865  ;;  %v1501_v1 = vadd.f32 %v1462_v57, %v5125_v22  ;;  %3626 = vmatpush3.bf16.msra.mxu0 %v6647_v34  ;;  %6652 = vst [vmem:[#allocation56_spill] sm:$0xff] %v5682_v56  ;;  %6653 = vst [vmem:[#allocation66_spill] sm:$0xff] %v5689_v47  ;;  %v5710_v11 = vld [vmem:[%s6387_s2 + $0x68] sm:$0xff]  ;;  %v5717_v32 = vld [vmem:[%s6387_s2 + $0x70] sm:$0xff] }
 0x240   :  { %3875 = vtanh.f32 %v1502_v59  ;;  %v3627_v52 = vpack.c.bf16 %v3864_v41, %v3866_v39  ;;  %6654 = vst [vmem:[#allocation67_spill] sm:$0xff] %v5696_v63  ;;  %6656 = vst [vmem:[#allocation69_spill] sm:$0xff] %v5710_v11  ;;  %v5724_v41 = vld [vmem:[%s6387_s2 + $0x78] sm:$0xff]  ;;  %v5731_v59 = vld [vmem:[%s6387_s2 + $0x80] sm:$0xff] }
 0x241   :  { %3877 = vtanh.f32 %v1501_v1  ;;  %6657 = vst [vmem:[#allocation70_spill] sm:$0xff] %v5717_v32  ;;  %6658 = vst [vmem:[#allocation71_spill] sm:$0xff] %v5724_v41  ;;  %v5738_v57 = vld [vmem:[%s6387_s2 + $0x88] sm:$0xff]  ;;  %v5745_v39 = vld [vmem:[%s6387_s2 + $0x90] sm:$0xff] }
 0x242   :  { %v3868_v27 = vpop.eup %3867  ;;  %3628 = vmatprep.subr.bf16.mxu0 %v3627_v52  ;;  %6659 = vst [vmem:[#allocation72_spill] sm:$0xff] %v5731_v59  ;;  %6660 = vst [vmem:[#allocation73_spill] sm:$0xff] %v5738_v57  ;;  %v5752_v1 = vld [vmem:[%s6387_s2 + $0x98] sm:$0xff]  ;;  %v5759_v34 = vld [vmem:[%s6387_s2 + $0xa0] sm:$0xff] }
 0x243   :  { %v3870_v7 = vpop.eup %3869  ;;  %3630 = vmatpush3.bf16.msra.mxu0 %v6648_v24  ;;  %6661 = vst [vmem:[#allocation74_spill] sm:$0xff] %v5745_v39  ;;  %6662 = vst [vmem:[#allocation75_spill] sm:$0xff] %v5752_v1  ;;  %v5766_v52 = vld [vmem:[%s6387_s2 + $0xa8] sm:$0xff]  ;;  %v4062_v24 = vld [vmem:[%s6385_s0 + $0x1b0] sm:$0xff] }
 0x244   :  { %v3631_v55 = vpack.c.bf16 %v3868_v27, %v3870_v7  ;;  %6663 = vst [vmem:[#allocation76_spill] sm:$0xff] %v5759_v34  ;;  %6664 = vst [vmem:[#allocation77_spill] sm:$0xff] %v5766_v52  ;;  %v5773_v27 = vld [vmem:[%s6387_s2 + $0xb0] sm:$0xff]  ;;  %v5780_v7 = vld [vmem:[%s6387_s2 + $0xb8] sm:$0xff] }
 0x245   :  { %6665 = vst [vmem:[#allocation78_spill] sm:$0xff] %v5773_v27  ;;  %6666 = vst [vmem:[#allocation79_spill] sm:$0xff] %v5780_v7 }
 0x246   :  { %v3872_v54 = vpop.eup %3871  ;;  %3632 = vmatprep.subr.bf16.mxu0 %v3631_v55  ;;  %v1659_v55 = vmul.f32 %v4062_v24, %v5521_v28 }
 0x247   :  { %v3874_v21 = vpop.eup %3873  ;;  %3634 = vmatpush3.bf16.msra.mxu0 %v6649_v26 }
 0x248   :  { %v3635_v35 = vpack.c.bf16 %v3872_v54, %v3874_v21  ;;  %v5791_v54 = vld [vmem:[%s6387_s2 + $0xc0] sm:$0xff] }
 0x249   :  { %6667 = vst [vmem:[#allocation80_spill] sm:$0xff] %v5791_v54  ;;  %v6668_v21 = vld [vmem:[#allocation13_spill] sm:$0xff] }
 0x24a   :  { %v3876_v9 = vpop.eup %3875  ;;  %3636 = vmatprep.subr.bf16.mxu0 %v3635_v35  ;;  %v1612_v26 = vrot.slane %v6668_v21, 4  ;;  %v6669_v35 = vld [vmem:[#allocation14_spill] sm:$0xff] }
 0x24b   :  { %v3878_v3 = vpop.eup %3877  ;;  %3638 = vmatpush3.bf16.msra.mxu0 %v6650_v33  ;;  %v5801_v33 = vld [vmem:[%s6387_s2 + $0xc8] sm:$0xff] }
 0x24c   :  { %v3639_v42 = vpack.c.bf16 %v3876_v9, %v3878_v3  ;;  %v1625_v9 = vrot.slane %v6669_v35, 4  ;;  %v1672_v3 = vmul.f32 %v4062_v24, %v5537_v53  ;;  %6670 = vst [vmem:[#allocation13_spill] sm:$0xff] %v5801_v33 }
 0x24e   :  { %3640 = vmatprep.subr.bf16.mxu0 %v3639_v42  ;;  %v4065_v42 = vld [vmem:[%s6385_s0 + $0x1b8] sm:$0xff] }
 0x24f   :  { %3642 = vmatpush3.bf16.msra.mxu0 %v6651_v5  ;;  %v6671_v5 = vld [vmem:[#allocation17_spill] sm:$0xff] }
 0x250   :  { %3644 = vmatprep.subr.bf16.mxu0 %v3643_v58 }
 0x252   :  { %1600 = vmatmul.mubr.f32.vlgmr.msra.gmra.mrb[48].mxu0 %v5161_v16  ;;  %v5626_v16 = vld [vmem:[%s6387_s2 + $0x8] sm:$0xff] }
 0x253   :  { %3646 = vmatpush3.bf16.msra.mxu0 %v3643_v58  ;;  %3419 = vmatprep.mubr.msk.f32.mxu0 %vm323_vm0, %v5615_v23  ;;  %v1660_v58 = vmul.f32 %v4065_v42, %v5530_v30 }
 0x254   :  { %3648 = vmatprep.subr.bf16.mxu0 %v3647_v15 }
 0x257   :  { %3650 = vmatpush3.bf16.msra.mxu0 %v3647_v15  ;;  %v1662_v15 = vadd.f32 %v6671_v5, %v1659_v55  ;;  %v1613_v5 = vadd.f32 %v1612_v26, %v6668_v21  ;;  %v1686_v21 = vmul.f32 %v4065_v42, %v5269_v12  ;;  %v5842_v26 = vld [vmem:[%s6387_s2 + $0xe0] sm:$0xff]  ;;  %v5853_v12 = vld [vmem:[%s6387_s2 + $0xe8] sm:$0xff] }
 0x258   :  { %3652 = vmatprep.subr.bf16.mxu0 %v3651_v19 }
 0x25b   :  { %3654 = vmatpush3.bf16.msra.mxu0 %v3651_v19  ;;  %v5813_v19 = vld [vmem:[%s6387_s2 + $0xd0] sm:$0xff] }
 0x25c   :  { %3656 = vmatprep.subr.bf16.mxu0 %v3655_v0  ;;  %6672 = vst [vmem:[#allocation14_spill] sm:$0xff] %v5813_v19 }
 0x25f   :  { %3658 = vmatpush3.bf16.msra.mxu0 %v3655_v0  ;;  %v4067_v0 = vld [vmem:[%s6385_s0 + $0x1a0] sm:$0xff] }
 0x262   :  { %3420 = vmatmul.mubr.msk.f32.vlgmr.msra.gmra.mrb[50].mxu0 %vm323_vm0, %v5626_v16 }
 0x263   :  { %3422 = vmatprep.mubr.msk.f32.mxu0 %vm323_vm0, %v5633_v8 }
 0x266   :  { %3423 = vmatmul.mubr.msk.f32.gmra.mrb[52].mxu0 %vm323_vm0, %v5640_v45 }
 0x267   :  { %3425 = vmatprep.mubr.msk.f32.mxu0 %vm323_vm0, %v5647_v48 }
 0x26a   :  { %3426 = vmatmul.mubr.msk.f32.gmra.mrb[54].mxu0 %vm323_vm0, %v5654_v2 }
 0x26b   :  { %3428 = vmatprep.mubr.msk.f32.mxu0 %vm323_vm0, %v5661_v18 }
 0x26e   :  { %3429 = vmatmul.mubr.msk.f32.gmra.mrb[56].mxu0 %vm323_vm0, %v5668_v10 }
 0x26f   :  { %3431 = vmatprep.mubr.msk.f32.mxu0 %vm323_vm0, %v5675_v4 }
 0x272   :  { %3432 = vmatmul.mubr.msk.f32.gmra.mrb[58].mxu0 %vm323_vm0, %v5682_v56 }
 0x273   :  { %3434 = vmatprep.mubr.msk.f32.mxu0 %vm323_vm0, %v5689_v47 }
 0x276   :  { %3435 = vmatmul.mubr.msk.f32.gmra.mrb[60].mxu0 %vm323_vm0, %v5696_v63 }
 0x277   :  { %3437 = vmatprep.mubr.msk.f32.mxu0 %vm323_vm0, %v5703_v46 }
 0x27a   :  { %3438 = vmatmul.mubr.msk.f32.gmra.mrb[62].mxu0 %vm323_vm0, %v5710_v11 }
 0x27b   :  { %3440 = vmatprep.mubr.msk.f32.mxu0 %vm323_vm0, %v5717_v32 }
 0x27e   :  { %3441 = vmatmul.mubr.msk.f32.gmra.mrb[64].mxu0 %vm323_vm0, %v5724_v41  ;;  %v6680_v41 = vld [vmem:[#allocation20_spill] sm:$0xff] }
 0x27f   :  { %3443 = vmatprep.mubr.msk.f32.mxu0 %vm323_vm0, %v5731_v59  ;;  %v1699_v32 = vmul.f32 %v4065_v42, %v6680_v41  ;;  %v5869_v41 = vld [vmem:[%s6387_s2 + $0xf8] sm:$0xff] }
 0x282   :  { %3444 = vmatmul.mubr.msk.f32.gmra.mrb[66].mxu0 %vm323_vm0, %v5738_v57  ;;  %v1614_v57 = vrot.slane %v1613_v5, 2 }
 0x283   :  { %3446 = vmatprep.mubr.msk.f32.mxu0 %vm323_vm0, %v5745_v39 }
 0x286   :  { %3447 = vmatmul.mubr.msk.f32.gmra.mrb[68].mxu0 %vm323_vm0, %v5752_v1  ;;  %v6674_v1 = vld [vmem:[#allocation18_spill] sm:$0xff] }
 0x287   :  { %3449 = vmatprep.mubr.msk.f32.mxu0 %vm323_vm0, %v5759_v34  ;;  %v1673_v34 = vmul.f32 %v4065_v42, %v5544_v62  ;;  %v1675_v39 = vadd.f32 %v6674_v1, %v1672_v3  ;;  %v6677_v1 = vld [vmem:[#allocation16_spill] sm:$0xff]  ;;  %6679 = vst [vmem:[#allocation18_spill] sm:$0xff] %v5853_v12 }
 0x28a   :  { %3450 = vmatmul.mubr.msk.f32.gmra.mrb[70].mxu0 %vm323_vm0, %v5766_v52  ;;  %v1685_v52 = vmul.f32 %v4062_v24, %v5551_v44 }
 0x28b   :  { %3452 = vmatprep.mubr.msk.f32.mxu0 %vm323_vm0, %v5773_v27 }
 0x28e   :  { %3453 = vmatmul.mubr.msk.f32.gmra.mrb[72].mxu0 %vm323_vm0, %v5780_v7  ;;  %v6673_v7 = vld [vmem:[#allocation15_spill] sm:$0xff] }
 0x28f   :  { %3455 = vmatprep.mubr.msk.f32.mxu0 %vm323_vm0, %v5791_v54  ;;  %v4068_v54 = vld [vmem:[%s6385_s0 + $0x1a8] sm:$0xff]  ;;  %v1638_v27 = vrot.slane %v6673_v7, 4  ;;  %6676 = vst [vmem:[#allocation15_spill] sm:$0xff] %v5842_v26 }
 0x290   :  { %v1697_v55 = vmul.f32 %v4068_v54, %v5504_v60  ;;  %v1663_v54 = vadd.f32 %v1662_v15, %v1660_v58 }
 0x291   :  { %v1639_v59 = vadd.f32 %v1638_v27, %v6673_v7 }
 0x292   :  { %3456 = vmatmul.mubr.msk.f32.gmra.mrb[74].mxu0 %vm323_vm0, %v5801_v33  ;;  %v1696_v33 = vmul.f32 %v4067_v0, %v5497_v38  ;;  %v5834_v0 = vld [vmem:[%s6387_s2 + $0xd8] sm:$0xff] }
 0x293   :  { %3458 = vmatprep.mubr.msk.f32.mxu0 %vm323_vm0, %v5813_v19  ;;  %v1626_v19 = vadd.f32 %v1625_v9, %v6669_v35  ;;  %6675 = vst [vmem:[#allocation17_spill] sm:$0xff] %v5834_v0  ;;  %v1651_v35 = vrot.slane %v6677_v1, 4  ;;  %v1698_v9 = vmul.f32 %v4062_v24, %v5263_v49  ;;  %v5861_v49 = vld [vmem:[%s6387_s2 + $0xf0] sm:$0xff] }
 0x294   :  { %v1700_v3 = vadd.f32 %v1697_v55, %v1696_v33  ;;  %6681 = vst [vmem:[#allocation16_spill] sm:$0xff] %v5861_v49  ;;  %v1640_v55 = vrot.slane %v1639_v59, 2 }
 0x295   :  { %v1627_v15 = vrot.slane %v1626_v19, 2  ;;  %v1652_v7 = vadd.f32 %v1651_v35, %v6677_v1 }
 0x296   :  { %3459 = vmatmul.mubr.msk.f32.gmra.mrb[76].mxu0 %vm323_vm0, %v5834_v0  ;;  %v6678_v0 = vld [vmem:[#allocation19_spill] sm:$0xff]  ;;  %v1701_v11 = vadd.f32 %v1700_v3, %v1698_v9 }
 0x297   :  { %3461 = vmatprep.mubr.msk.f32.mxu0 %vm323_vm0, %v5842_v26  ;;  %v1688_v58 = vadd.f32 %v6678_v0, %v1685_v52  ;;  %v1676_v26 = vadd.f32 %v1675_v39, %v1673_v34  ;;  %v1664_v52 = vrot.slane %v1663_v54, 4  ;;  %6682 = vst [vmem:[#allocation19_spill] sm:$0xff] %v5869_v41  ;;  %v1615_v34 = vadd.f32 %v1614_v57, %v1613_v5 }
 0x298   :  { %v1702_v33 = vadd.f32 %v1701_v11, %v1699_v32  ;;  %v1628_v42 = vadd.f32 %v1627_v15, %v1626_v19  ;;  %v1653_v9 = vrot.slane %v1652_v7, 2  ;;  %v4074_v11 = vld [vmem:[%s6389_s4 + $0x8] sm:$0xff] }
 0x299   :  { %v1689_v27 = vadd.f32 %v1688_v58, %v1686_v21  ;;  %v1677_v24 = vrot.slane %v1676_v26, 4  ;;  %v1665_v0 = vadd.f32 %v1664_v52, %v1663_v54  ;;  %v1641_v21 = vadd.f32 %v1640_v55, %v1639_v59 }
 0x29a   :  { %3462 = vmatmul.mubr.msk.f32.gmra.mrb[78].mxu0 %vm323_vm0, %v5853_v12  ;;  %v1703_v35 = vrot.slane %v1702_v33, 4  ;;  %v1616_v32 = vrot.slane %v1615_v34, 1  ;;  %v1629_v54 = vrot.slane %v1628_v42, 1  ;;  %v1654_v52 = vadd.f32 %v1653_v9, %v1652_v7 }
 0x29b   :  { %3464 = vmatprep.mubr.msk.f32.mxu0 %vm323_vm0, %v5861_v49  ;;  %v1690_v39 = vrot.slane %v1689_v27, 4  ;;  %v1678_v3 = vadd.f32 %v1677_v24, %v1676_v26  ;;  %v1666_v58 = vrot.slane %v1665_v0, 2  ;;  %v1642_v12 = vrot.slane %v1641_v21, 1 }
 0x29c   :  { %v1704_v57 = vadd.f32 %v1703_v35, %v1702_v33  ;;  %v1617_v19 = vadd.f32 %v1616_v32, %v1615_v34  ;;  %v1630_v5 = vadd.f32 %v1629_v54, %v1628_v42  ;;  %v1655_v26 = vrot.slane %v1654_v52, 1  ;;  %v6685_v35 = vld [vmem:[#allocation23_spill] sm:$0xff]  ;;  %v6686_v54 = vld [vmem:[#allocation24_spill] sm:$0xff] }
 0x29d   :  { %v1691_v1 = vadd.f32 %v1690_v39, %v1689_v27  ;;  %v1679_v49 = vrot.slane %v1678_v3, 2  ;;  %v1667_v46 = vadd.f32 %v1666_v58, %v1665_v0  ;;  %v1643_v15 = vadd.f32 %v1642_v12, %v1641_v21  ;;  %v6684_v58 = vld [vmem:[#allocation22_spill] sm:$0xff] }
 0x29e   :  { %3465 = vmatmul.mubr.msk.f32.gmra.mrb[80].mxu0 %vm323_vm0, %v5869_v41  ;;  %v1705_v55 = vrot.slane %v1704_v57, 2  ;;  %v1656_v39 = vadd.f32 %v1655_v26, %v1654_v52 }
 0x29f   :  { %2569 = vmatprep.mubr.f32.mxu0 %v4074_v11  ;;  %v1692_v41 = vrot.slane %v1691_v1, 2  ;;  %v1680_v59 = vadd.f32 %v1679_v49, %v1678_v3  ;;  %v1668_v27 = vrot.slane %v1667_v46, 1  ;;  %v1709_v11 = vsel %vm1217_vm1, %v1617_v19, %v1630_v5  ;;  %v6688_v5 = vld [vmem:[#allocation26_spill] sm:$0xff] }
 0x2a0   :  { %v1706_v7 = vadd.f32 %v1705_v55, %v1704_v57  ;;  %v1710_v9 = vsel %vm1219_vm2, %v1709_v11, %v1643_v15  ;;  %v6687_v57 = vld [vmem:[#allocation25_spill] sm:$0xff]  ;;  %v5914_v55 = vld [vmem:[%s6385_s0 + $0x210] sm:$0xff] }
 0x2a1   :  { %v1693_v24 = vadd.f32 %v1692_v41, %v1691_v1  ;;  %v1681_v63 = vrot.slane %v1680_v59, 1  ;;  %v1669_v47 = vadd.f32 %v1668_v27, %v1667_v46  ;;  %v1711_v33 = vsel %vm1221_vm3, %v1710_v9, %v1656_v39  ;;  %v5888_v46 = vld [vmem:[%s6385_s0 + $0x200] sm:$0xff] }
 0x2a2   :  { %v1707_v42 = vrot.slane %v1706_v7, 1  ;;  %v2588_v32 = vmul.f32 %v6685_v35, %v5888_v46  ;;  %v2601_v19 = vmul.f32 %v6687_v57, %v5888_v46  ;;  %v6690_v27 = vld [vmem:[#allocation28_spill] sm:$0xff]  ;;  %v6691_v9 = vld [vmem:[#allocation29_spill] sm:$0xff] }
 0x2a3   :  { %v1694_v56 = vrot.slane %v1693_v24, 1  ;;  %v1682_v0 = vadd.f32 %v1681_v63, %v1680_v59  ;;  %v1712_v49 = vsel %vm1223_vm4, %v1711_v33, %v1669_v47  ;;  %v6683_v47 = vld [vmem:[#allocation21_spill] sm:$0xff]  ;;  %v6689_v59 = vld [vmem:[#allocation27_spill] sm:$0xff] }
 0x2a4   :  { %v1708_v41 = vadd.f32 %v1707_v42, %v1706_v7  ;;  %v2575_v63 = vmul.f32 %v6683_v47, %v5888_v46  ;;  %v2614_v15 = vmul.f32 %v6689_v59, %v5888_v46  ;;  %v5919_v7 = vld [vmem:[%s6385_s0 + $0x218] sm:$0xff]  ;;  %v6692_v42 = vld [vmem:[#allocation30_spill] sm:$0xff]  ;;  %v6696_v35 = vld [vmem:[#allocation5_spill] sm:$0xff] }
 0x2a5   :  { %v1695_v34 = vadd.f32 %v1694_v56, %v1693_v24  ;;  %v1713_v12 = vsel %vm1225_vm5, %v1712_v49, %v1682_v0  ;;  %v5893_v56 = vld [vmem:[%s6385_s0 + $0x208] sm:$0xff]  ;;  %v2577_v0 = vmul.f32 %v6691_v9, %v5914_v55  ;;  %v2578_v49 = vmul.f32 %v6692_v42, %v5919_v7  ;;  %v6694_v47 = vld [vmem:[#allocation32_spill] sm:$0xff] }
 0x2a6   :  { %v2576_v1 = vmul.f32 %v6684_v58, %v5893_v56  ;;  %v2589_v52 = vmul.f32 %v6686_v54, %v5893_v56  ;;  %v2602_v26 = vmul.f32 %v6688_v5, %v5893_v56  ;;  %v2615_v24 = vmul.f32 %v6690_v27, %v5893_v56  ;;  %v6695_v58 = vld [vmem:[#allocation33_spill] sm:$0xff] }
 0x2a7   :  { %v1714_v3 = vsel %vm1227_vm6, %v1713_v12, %v1695_v34  ;;  %v6693_v12 = vld [vmem:[#allocation31_spill] sm:$0xff]  ;;  %v5947_v27 = vld [vmem:[%s6385_s0 + $0x228] sm:$0xff] }
 0x2a8   :  { %v5883_v21 = vsel %vm1229_vm7, %v1714_v3, %v1708_v41  ;;  %v2579_v39 = vadd.f32 %v2576_v1, %v2575_v63  ;;  %v2592_v11 = vadd.f32 %v2589_v52, %v2588_v32  ;;  %v2605_v33 = vadd.f32 %v2602_v26, %v2601_v19  ;;  %v6697_v52 = vld [vmem:[#allocation6_spill] sm:$0xff]  ;;  %v6698_v19 = vld [vmem:[#allocation7_spill] sm:$0xff]  ;;  %v5940_v26 = vld [vmem:[%s6385_s0 + $0x220] sm:$0xff] }
 0x2a9   :  { %v2618_v34 = vadd.f32 %v2615_v24, %v2614_v15  ;;  %v2590_v41 = vmul.f32 %v6693_v12, %v5914_v55  ;;  %v2591_v63 = vmul.f32 %v6694_v47, %v5919_v7  ;;  %v2603_v1 = vmul.f32 %v6695_v58, %v5914_v55  ;;  %v6700_v24 = vld [vmem:[#allocation10_spill] sm:$0xff]  ;;  %v6703_v12 = vld [vmem:[#allocation11_spill] sm:$0xff] }
 0x2aa   :  { %v2580_v3 = vadd.f32 %v2579_v39, %v2577_v0  ;;  %v2604_v32 = vmul.f32 %v6696_v35, %v5919_v7  ;;  %v2616_v57 = vmul.f32 %v6697_v52, %v5914_v55  ;;  %v2617_v5 = vmul.f32 %v6698_v19, %v5919_v7  ;;  %v6702_v0 = vld [vmem:[#allocation12_spill] sm:$0xff]  ;;  %v6706_v47 = vld [vmem:[#allocation59_spill] sm:$0xff] }
 0x2ab   :  { %v2593_v54 = vadd.f32 %v2592_v11, %v2590_v41  ;;  %v2606_v15 = vadd.f32 %v2605_v33, %v2603_v1  ;;  %v2627_v39 = vmul.f32 %v6700_v24, %v5940_v26  ;;  %v2628_v42 = vmul.f32 %v6702_v0, %v5947_v27  ;;  %v6705_v33 = vld [vmem:[#allocation58_spill] sm:$0xff] }
 0x2ac   :  { %v5942_v59 = vadd.f32 %v2580_v3, %v2578_v49  ;;  %v2619_v9 = vadd.f32 %v2618_v34, %v2616_v57  ;;  %v2640_v41 = vmul.f32 %v6703_v12, %v5940_v26  ;;  %v2641_v3 = vmul.f32 %v6705_v33, %v5947_v27  ;;  %v5974_v19 = vld [vmem:[%s6385_s0 + $0x230] sm:$0xff] }
 0x2ad   :  { %v5951_v11 = vadd.f32 %v2593_v54, %v2591_v63  ;;  %v5957_v49 = vadd.f32 %v2606_v15, %v2604_v32  ;;  %v2653_v58 = vmul.f32 %v6706_v47, %v5940_v26  ;;  %v2631_v35 = vadd.f32 %v2628_v42, %v2627_v39  ;;  %v6708_v63 = vld [vmem:[#allocation61_spill] sm:$0xff] }
 0x2ae   :  { %6699 = vst [vmem:[#allocation20_spill] sm:$0xff] %v5942_v59  ;;  %v5963_v1 = vadd.f32 %v2619_v9, %v2617_v5  ;;  %v2654_v34 = vmul.f32 %v6708_v63, %v5947_v27  ;;  %v2644_v54 = vadd.f32 %v2641_v3, %v2640_v41  ;;  %v2666_v52 = vmul.f32 %v5497_v38, %v5940_v26  ;;  %v5979_v5 = vld [vmem:[%s6385_s0 + $0x238] sm:$0xff] }
 0x2af   :  { %6701 = vst [vmem:[#allocation21_spill] sm:$0xff] %v5951_v11  ;;  %6704 = vst [vmem:[#allocation22_spill] sm:$0xff] %v5957_v49  ;;  %v2667_v32 = vmul.f32 %v5504_v60, %v5947_v27  ;;  %v2629_v15 = vmul.f32 %v5521_v28, %v5974_v19  ;;  %v2630_v38 = vmul.f32 %v5530_v30, %v5979_v5  ;;  %v1232_v33 = vrot.slane %v5565_v61, 4  ;;  %v6726_v11 = vld [vmem:[#allocation47_spill] sm:$0xff] }
 0x2b0   :  { %6707 = vst [vmem:[#allocation23_spill] sm:$0xff] %v5963_v1  ;;  %v2657_v57 = vadd.f32 %v2654_v34, %v2653_v58  ;;  %v2642_v60 = vmul.f32 %v5537_v53, %v5974_v19  ;;  %v2643_v9 = vmul.f32 %v5544_v62, %v5979_v5  ;;  %v2655_v0 = vmul.f32 %v5551_v44, %v5974_v19 }
 0x2b1   :  { %v5983_v24 = vadd.f32 %v2667_v32, %v2666_v52  ;;  %v2632_v39 = vadd.f32 %v2631_v35, %v2629_v15  ;;  %v1233_v47 = vadd.f32 %v1232_v33, %v5565_v61  ;;  %v6714_v61 = vld [vmem:[#allocation35_spill] sm:$0xff] }
 0x2b2   :  { %v2645_v12 = vadd.f32 %v2644_v54, %v2642_v60  ;;  %v5995_v41 = vadd.f32 %v2657_v57, %v2655_v0 }
 0x2b3   :  { %6709 = vst [vmem:[#allocation24_spill] sm:$0xff] %v5983_v24  ;;  %v5993_v42 = vadd.f32 %v2632_v39, %v2630_v38  ;;  %v1234_v62 = vrot.slane %v1233_v47, 2  ;;  %v6713_v38 = vld [vmem:[#allocation34_spill] sm:$0xff]  ;;  %v6724_v24 = vld [vmem:[#allocation45_spill] sm:$0xff] }
 0x2b4   :  { %6711 = vst [vmem:[#allocation26_spill] sm:$0xff] %v5995_v41  ;;  %v5997_v28 = vadd.f32 %v2645_v12, %v2643_v9 }
 0x2b5   :  { %6710 = vst [vmem:[#allocation25_spill] sm:$0xff] %v5993_v42  ;;  %v1235_v63 = vadd.f32 %v1234_v62, %v1233_v47  ;;  %v6727_v42 = vld [vmem:[#allocation48_spill] sm:$0xff] }
 0x2b6   :  { %6712 = vst [vmem:[#allocation27_spill] sm:$0xff] %v5997_v28 }
 0x2b7   :  { %v1236_v52 = vrot.slane %v1235_v63, 1 }
 0x2b9   :  { %v1237_v9 = vadd.f32 %v1236_v52, %v1235_v63 }
 0x325   :  { %v3058_v30 = vpop.f32.mrb[48].mxu0 }
 0x326   :  { %v3059_v3 = vpop.f32.mrb[49].mxu0 }
 0x327   :  { %v3060_v53 = vadd.f32 %v3059_v3, %v3058_v30  ;;  %v6715_v30 = vld [vmem:[#allocation36_spill] sm:$0xff] }
 0x329   :  { %v1602_v58 = vadd.f32 %v3060_v53, %v5561_v43  ;;  %v6716_v53 = vld [vmem:[#allocation37_spill] sm:$0xff] }
 0x32b   :  { %v1716_v35 = vmul.f32 %v5883_v21, %v1602_v58 }
 0x32d   :  { %v1717_v44 = vrot.slane %v1716_v35, 4 }
 0x32f   :  { %v1718_v34 = vadd.f32 %v1717_v44, %v1716_v35  ;;  %v6717_v35 = vld [vmem:[#allocation38_spill] sm:$0xff] }
 0x331   :  { %v1719_v54 = vrot.slane %v1718_v34, 2 }
 0x333   :  { %v1720_v57 = vadd.f32 %v1719_v54, %v1718_v34  ;;  %v6718_v34 = vld [vmem:[#allocation39_spill] sm:$0xff] }
 0x335   :  { %v1721_v32 = vrot.slane %v1720_v57, 1  ;;  %v3421_v15 = vpop.f32.mrb[50].mxu0 }
 0x336   :  { %v1957_v39 = vadd.f32 %v3421_v15, %v6713_v38  ;;  %v1797_v60 = vpop.f32.mrb[51].mxu0 }
 0x337   :  { %v1722_v0 = vadd.f32 %v1721_v32, %v1720_v57  ;;  %v1956_v12 = vadd.f32 %v1797_v60, %v6714_v61  ;;  %v6719_v32 = vld [vmem:[#allocation40_spill] sm:$0xff] }
 0x338   :  { %3879 = vtanh.f32 %v1957_v39 }
 0x339   :  { %3881 = vtanh.f32 %v1956_v12  ;;  %v3424_v33 = vpop.f32.mrb[52].mxu0  ;;  %v6006_v21 = vsel %vm1217_vm1, %v1237_v9, %v1722_v0  ;;  %v6720_v9 = vld [vmem:[#allocation41_spill] sm:$0xff]  ;;  %v6723_v12 = vld [vmem:[#allocation44_spill] sm:$0xff] }
 0x33a   :  { %v1959_v3 = vadd.f32 %v3424_v33, %v6715_v30  ;;  %v1807_v47 = vpop.f32.mrb[53].mxu0 }
 0x33b   :  { %v1958_v58 = vadd.f32 %v1807_v47, %v6716_v53  ;;  %v6721_v47 = vld [vmem:[#allocation42_spill] sm:$0xff] }
 0x33c   :  { %3883 = vtanh.f32 %v1959_v3 }
 0x33d   :  { %3885 = vtanh.f32 %v1958_v58  ;;  %v3427_v62 = vpop.f32.mrb[54].mxu0 }
 0x33e   :  { %v1961_v44 = vadd.f32 %v3427_v62, %v6717_v35  ;;  %v1817_v63 = vpop.f32.mrb[55].mxu0 }
 0x33f   :  { %v1960_v54 = vadd.f32 %v1817_v63, %v6718_v34  ;;  %v6722_v63 = vld [vmem:[#allocation43_spill] sm:$0xff] }
 0x340   :  { %3887 = vtanh.f32 %v1961_v44 }
 0x341   :  { %3889 = vtanh.f32 %v1960_v54  ;;  %v3430_v52 = vpop.f32.mrb[56].mxu0 }
 0x342   :  { %v6012_v57 = vpop.eup %3879  ;;  %v1963_v15 = vadd.f32 %v3430_v52, %v6719_v32  ;;  %v1827_v39 = vpop.f32.mrb[57].mxu0  ;;  %v6725_v52 = vld [vmem:[#allocation46_spill] sm:$0xff] }
 0x343   :  { %v6015_v60 = vpop.eup %3881  ;;  %v1962_v0 = vadd.f32 %v1827_v39, %v6720_v9 }
 0x344   :  { %3891 = vtanh.f32 %v1963_v15 }
 0x345   :  { %3893 = vtanh.f32 %v1962_v0  ;;  %v3433_v33 = vpop.f32.mrb[58].mxu0 }
 0x346   :  { %v6020_v3 = vpop.eup %3883  ;;  %v1965_v58 = vadd.f32 %v3433_v33, %v6721_v47  ;;  %v1837_v62 = vpop.f32.mrb[59].mxu0 }
 0x347   :  { %v6023_v44 = vpop.eup %3885  ;;  %v1964_v54 = vadd.f32 %v1837_v62, %v6722_v63  ;;  %v6728_v63 = vld [vmem:[#allocation49_spill] sm:$0xff] }
 0x348   :  { %3895 = vtanh.f32 %v1965_v58 }
 0x349   :  { %3897 = vtanh.f32 %v1964_v54  ;;  %v3436_v15 = vpop.f32.mrb[60].mxu0 }
 0x34a   :  { %v6028_v39 = vpop.eup %3887  ;;  %v1967_v0 = vadd.f32 %v3436_v15, %v6723_v12  ;;  %v1847_v28 = vpop.f32.mrb[61].mxu0 }
 0x34b   :  { %v6031_v41 = vpop.eup %3889  ;;  %v1966_v33 = vadd.f32 %v1847_v28, %v6724_v24 }
 0x34c   :  { %3899 = vtanh.f32 %v1967_v0 }
 0x34d   :  { %3901 = vtanh.f32 %v1966_v33  ;;  %v3439_v58 = vpop.f32.mrb[62].mxu0 }
 0x34e   :  { %v6036_v62 = vpop.eup %3891  ;;  %v1969_v54 = vadd.f32 %v3439_v58, %v6725_v52  ;;  %v1857_v1 = vpop.f32.mrb[63].mxu0  ;;  %v6729_v52 = vld [vmem:[#allocation52_spill] sm:$0xff] }
 0x34f   :  { %v6039_v49 = vpop.eup %3893  ;;  %v1968_v15 = vadd.f32 %v1857_v1, %v6726_v11 }
 0x350   :  { %3903 = vtanh.f32 %v1969_v54 }
 0x351   :  { %3905 = vtanh.f32 %v1968_v15  ;;  %v3442_v28 = vpop.f32.mrb[64].mxu0 }
 0x352   :  { %v6044_v0 = vpop.eup %3895  ;;  %v1971_v33 = vadd.f32 %v3442_v28, %v6727_v42  ;;  %v1867_v24 = vpop.f32.mrb[65].mxu0  ;;  %v6730_v42 = vld [vmem:[#allocation54_spill] sm:$0xff] }
 0x353   :  { %v6047_v12 = vpop.eup %3897  ;;  %v1970_v58 = vadd.f32 %v1867_v24, %v6728_v63 }
 0x354   :  { %3907 = vtanh.f32 %v1971_v33 }
 0x355   :  { %3909 = vtanh.f32 %v1970_v58  ;;  %v3445_v1 = vpop.f32.mrb[66].mxu0 }
 0x356   :  { %v6052_v54 = vpop.eup %3899  ;;  %v1973_v15 = vadd.f32 %v3445_v1, %v6637_v31  ;;  %v1877_v59 = vpop.f32.mrb[67].mxu0 }
 0x357   :  { %v6055_v11 = vpop.eup %3901  ;;  %v1972_v28 = vadd.f32 %v1877_v59, %v6638_v20 }
 0x358   :  { %3911 = vtanh.f32 %v1973_v15 }
 0x359   :  { %3913 = vtanh.f32 %v1972_v28  ;;  %v3448_v24 = vpop.f32.mrb[68].mxu0 }
 0x35a   :  { %v6060_v33 = vpop.eup %3903  ;;  %v1975_v58 = vadd.f32 %v3448_v24, %v6729_v52  ;;  %v1887_v63 = vpop.f32.mrb[69].mxu0  ;;  %v6731_v52 = vpack.c.bf16 %v6012_v57, %v6015_v60 }
 0x35b   :  { %v6063_v47 = vpop.eup %3905  ;;  %v1974_v1 = vadd.f32 %v1887_v63, %v6640_v6 }
 0x35c   :  { %3915 = vtanh.f32 %v1975_v58 }
 0x35d   :  { %3917 = vtanh.f32 %v1974_v1  ;;  %v3451_v59 = vpop.f32.mrb[70].mxu0 }
 0x35e   :  { %v6068_v15 = vpop.eup %3907  ;;  %v1977_v28 = vadd.f32 %v3451_v59, %v6730_v42  ;;  %v1897_v20 = vpop.f32.mrb[71].mxu0 }
 0x35f   :  { %v6071_v9 = vpop.eup %3909  ;;  %v1976_v24 = vadd.f32 %v1897_v20, %v6642_v13 }
 0x360   :  { %3919 = vtanh.f32 %v1977_v28 }
 0x361   :  { %3921 = vtanh.f32 %v1976_v24  ;;  %v3454_v63 = vpop.f32.mrb[72].mxu0 }
 0x362   :  { %v3912_v58 = vpop.eup %3911  ;;  %v1979_v31 = vadd.f32 %v3454_v63, %v5079_v29  ;;  %v1907_v1 = vpop.f32.mrb[73].mxu0 }
 0x363   :  { %v3914_v6 = vpop.eup %3913  ;;  %v1978_v32 = vadd.f32 %v1907_v1, %v6643_v14 }
 0x364   :  { %3923 = vtanh.f32 %v1979_v31  ;;  %v3659_v59 = vpack.c.bf16 %v3912_v58, %v3914_v6 }
 0x365   :  { %3925 = vtanh.f32 %v1978_v32  ;;  %v3457_v42 = vpop.f32.mrb[74].mxu0 }
 0x366   :  { %v3916_v34 = vpop.eup %3915  ;;  %v1981_v20 = vadd.f32 %v3457_v42, %v5089_v36  ;;  %v1917_v28 = vpop.f32.mrb[75].mxu0  ;;  %3660 = vmatprep.subr.bf16.mxu1 %v3659_v59  ;;  %v6732_v59 = vpack.c.bf16 %v6020_v3, %v6023_v44 }
 0x367   :  { %v3918_v13 = vpop.eup %3917  ;;  %v1980_v24 = vadd.f32 %v1917_v28, %v5092_v40  ;;  %3662 = vmatpush3.bf16.msra.mxu1 %v6731_v52 }
 0x368   :  { %3927 = vtanh.f32 %v1981_v20  ;;  %v3663_v63 = vpack.c.bf16 %v3916_v34, %v3918_v13 }
 0x369   :  { %3929 = vtanh.f32 %v1980_v24  ;;  %v3460_v1 = vpop.f32.mrb[76].mxu0  ;;  %v6733_v24 = vpack.c.bf16 %v6028_v39, %v6031_v41 }
 0x36a   :  { %v3920_v31 = vpop.eup %3919  ;;  %v1983_v6 = vadd.f32 %v3460_v1, %v5100_v51  ;;  %v1927_v32 = vpop.f32.mrb[77].mxu0  ;;  %3664 = vmatprep.subr.bf16.mxu1 %v3663_v63 }
 0x36b   :  { %v3922_v58 = vpop.eup %3921  ;;  %v1982_v42 = vadd.f32 %v1927_v32, %v5103_v17  ;;  %3666 = vmatpush3.bf16.msra.mxu1 %v6732_v59  ;;  %v6735_v59 = vpack.c.bf16 %v6044_v0, %v6047_v12  ;;  %v3691_v12 = vpack.c.bf16 %v5893_v56, %v5888_v46  ;;  %v6738_v0 = vpack.c.bf16 %v6068_v15, %v6071_v9  ;;  %v6752_v9 = vld [vmem:[#allocation78_spill] sm:$0xff]  ;;  %v6754_v15 = vld [vmem:[#allocation9_spill] sm:$0xff] }
 0x36c   :  { %3931 = vtanh.f32 %v1983_v6  ;;  %v3667_v28 = vpack.c.bf16 %v3920_v31, %v3922_v58  ;;  %v6734_v58 = vpack.c.bf16 %v6036_v62, %v6039_v49  ;;  %v3699_v46 = vpack.c.bf16 %v5947_v27, %v5940_v26  ;;  %v6750_v26 = vld [vmem:[#allocation76_spill] sm:$0xff]  ;;  %v6751_v27 = vld [vmem:[#allocation77_spill] sm:$0xff] }
 0x36d   :  { %3933 = vtanh.f32 %v1982_v42  ;;  %v3463_v57 = vpop.f32.mrb[78].mxu0  ;;  %v3703_v56 = vpack.c.bf16 %v5979_v5, %v5974_v19 }
 0x36e   :  { %v3924_v60 = vpop.eup %3923  ;;  %v1985_v13 = vadd.f32 %v3463_v57, %v5111_v50  ;;  %v1937_v34 = vpop.f32.mrb[79].mxu0  ;;  %3668 = vmatprep.subr.bf16.mxu1 %v3667_v28 }
 0x36f   :  { %v3926_v52 = vpop.eup %3925  ;;  %v1984_v20 = vadd.f32 %v1937_v34, %v5114_v37  ;;  %3670 = vmatpush3.bf16.msra.mxu1 %v6733_v24  ;;  %v2110_v24 = vrot.slane %v6754_v15, 4 }
 0x370   :  { %3935 = vtanh.f32 %v1985_v13  ;;  %v3671_v63 = vpack.c.bf16 %v3924_v60, %v3926_v52  ;;  %v6736_v13 = vpack.c.bf16 %v6052_v54, %v6055_v11  ;;  %v6737_v52 = vpack.c.bf16 %v6060_v33, %v6063_v47  ;;  %v6117_v54 = vld [vmem:[%s6389_s4] sm:$0xff] }
 0x371   :  { %3937 = vtanh.f32 %v1984_v20  ;;  %v3466_v3 = vpop.f32.mrb[80].mxu0  ;;  %v3695_v11 = vpack.c.bf16 %v5919_v7, %v5914_v55  ;;  %v6748_v55 = vld [vmem:[#allocation74_spill] sm:$0xff]  ;;  %v6749_v7 = vld [vmem:[#allocation75_spill] sm:$0xff]  ;;  %v6753_v47 = vld [vmem:[#allocation8_spill] sm:$0xff] }
 0x372   :  { %v3928_v44 = vpop.eup %3927  ;;  %v1987_v1 = vadd.f32 %v3466_v3, %v5122_v25  ;;  %v1947_v31 = vpop.f32.mrb[81].mxu0  ;;  %3672 = vmatprep.subr.bf16.mxu1 %v3671_v63  ;;  %v2097_v33 = vrot.slane %v6753_v47, 4  ;;  %v6755_v63 = vld [vmem:[#allocation79_spill] sm:$0xff]  ;;  %v6756_v3 = vld [vmem:[#allocation80_spill] sm:$0xff] }
 0x373   :  { %v3930_v6 = vpop.eup %3929  ;;  %v1986_v32 = vadd.f32 %v1947_v31, %v5125_v22  ;;  %3674 = vmatpush3.bf16.msra.mxu1 %v6734_v58  ;;  %v6759_v58 = vld [vmem:[#allocation14_spill] sm:$0xff] }
 0x374   :  { %3939 = vtanh.f32 %v1987_v1  ;;  %v3675_v42 = vpack.c.bf16 %v3928_v44, %v3930_v6  ;;  %v6757_v44 = vld [vmem:[#allocation57_spill] sm:$0xff]  ;;  %v2098_v31 = vadd.f32 %v2097_v33, %v6753_v47  ;;  %v2111_v6 = vadd.f32 %v2110_v24, %v6754_v15 }
 0x375   :  { %3941 = vtanh.f32 %v1986_v32  ;;  %v2123_v1 = vrot.slane %v6757_v44, 4  ;;  %v6758_v32 = vld [vmem:[#allocation13_spill] sm:$0xff] }
 0x376   :  { %v3932_v41 = vpop.eup %3931  ;;  %3676 = vmatprep.subr.bf16.mxu1 %v3675_v42  ;;  %v6760_v42 = vld [vmem:[#allocation60_spill] sm:$0xff] }
 0x377   :  { %v3934_v39 = vpop.eup %3933  ;;  %3678 = vmatpush3.bf16.msra.mxu1 %v6735_v59  ;;  %v2099_v59 = vrot.slane %v2098_v31, 2 }
 0x378   :  { %v3679_v28 = vpack.c.bf16 %v3932_v41, %v3934_v39  ;;  %v2136_v41 = vrot.slane %v6760_v42, 4  ;;  %v2124_v39 = vadd.f32 %v2123_v1, %v6757_v44 }
 0x37a   :  { %v3936_v57 = vpop.eup %3935  ;;  %3680 = vmatprep.subr.bf16.mxu1 %v3679_v28  ;;  %v2112_v28 = vrot.slane %v2111_v6, 2 }
 0x37b   :  { %v3938_v60 = vpop.eup %3937  ;;  %3682 = vmatpush3.bf16.msra.mxu1 %v6736_v13 }
 0x37c   :  { %v3683_v49 = vpack.c.bf16 %v3936_v57, %v3938_v60  ;;  %v6188_v57 = vld [vmem:[%s6385_s0 + $0x130] sm:$0xff] }
 0x37d   :  { %v4077_v60 = vld [vmem:[%s6385_s0 + $0x1f0] sm:$0xff] }
 0x37e   :  { %v3940_v62 = vpop.eup %3939  ;;  %3684 = vmatprep.subr.bf16.mxu1 %v3683_v49  ;;  %v2183_v13 = vmul.f32 %v4077_v60, %v6188_v57  ;;  %v6761_v49 = vld [vmem:[#allocation17_spill] sm:$0xff] }
 0x37f   :  { %v3942_v34 = vpop.eup %3941  ;;  %3686 = vmatpush3.bf16.msra.mxu1 %v6737_v52  ;;  %v6200_v52 = vld [vmem:[%s6385_s0 + $0x118] sm:$0xff] }
 0x380   :  { %v3687_v20 = vpack.c.bf16 %v3940_v62, %v3942_v34  ;;  %v6762_v62 = vld [vmem:[#allocation63_spill] sm:$0xff] }
 0x381   :  { %v2149_v34 = vrot.slane %v6762_v62, 4 }
 0x382   :  { %3688 = vmatprep.subr.bf16.mxu1 %v3687_v20  ;;  %v4079_v20 = vld [vmem:[%s6385_s0 + $0x1f8] sm:$0xff] }
 0x383   :  { %3690 = vmatpush3.bf16.msra.mxu1 %v6738_v0  ;;  %v6763_v0 = vld [vmem:[#allocation15_spill] sm:$0xff] }
 0x384   :  { %3692 = vmatprep.subr.bf16.mxu1 %v3691_v12 }
 0x386   :  { %2085 = vmatmul.mubr.f32.vlgmr.msra.gmra.mrb[50].mxu1 %v6117_v54 }
 0x387   :  { %3694 = vmatpush3.bf16.msra.mxu1 %v3691_v12  ;;  %3483 = vmatprep.mubr.msk.f32.mxu1 %vm323_vm0, %v5615_v23  ;;  %v6739_v23 = vld [vmem:[#allocation56_spill] sm:$0xff]  ;;  %v2171_v12 = vmul.f32 %v4079_v20, %v6200_v52 }
 0x388   :  { %3696 = vmatprep.subr.bf16.mxu1 %v3695_v11 }
 0x38b   :  { %3698 = vmatpush3.bf16.msra.mxu1 %v3695_v11  ;;  %v2137_v11 = vadd.f32 %v2136_v41, %v6760_v42 }
 0x38c   :  { %3700 = vmatprep.subr.bf16.mxu1 %v3699_v46 }
 0x38f   :  { %3702 = vmatpush3.bf16.msra.mxu1 %v3699_v46  ;;  %v6212_v46 = vld [vmem:[%s6385_s0 + $0x138] sm:$0xff]  ;;  %s4106_s0 = smov [#allocation2]  }
 0x390   :  { %3704 = vmatprep.subr.bf16.mxu1 %v3703_v56  ;;  %s2703_s7 = sshll.u32 %s4106_s0, 4  ;;  %s2704_s7 = int_to_ptr.vmem [resolvable:$true] %s2703_s7 }
 0x391   :  { %s4081_s2 = scalar_lea.vmem %s2704_s7, 64  ;;  %p4086_p1 = scmp.lt.s32.totalorder %s2704_s7, %s2704_s7 }
 0x392   :  { %p4082_p0 = scmp.ne.s32.totalorder %s2704_s7, %s4081_s2  ;;  %p4087_p2 = scmp.lt.s32.totalorder %s4081_s2, %s4081_s2 }
 0x393   :  { %3706 = vmatpush3.bf16.msra.mxu1 %v3703_v56  ;;  %v2184_v56 = vmul.f32 %v6212_v46, %v4079_v20 }
 0x394   :  { %p4088_p3 = por %p4087_p2, %p4086_p1 }
 0x396   :  { %3484 = vmatmul.mubr.msk.f32.vlgmr.msra.gmra.mrb[52].mxu1 %vm323_vm0, %v5626_v16  ;;  %v6740_v16 = vld [vmem:[#allocation66_spill] sm:$0xff]  ;;  %p4089_p4 = pnand %p4088_p3, %p4082_p0 }
 0x397   :  { %3486 = vmatprep.mubr.msk.f32.mxu1 %vm323_vm0, %v5633_v8  ;;  %v6741_v8 = vld [vmem:[#allocation67_spill] sm:$0xff] }
 0x39a   :  { %3487 = vmatmul.mubr.msk.f32.gmra.mrb[54].mxu1 %vm323_vm0, %v5640_v45  ;;  %v6742_v45 = vld [vmem:[#allocation68_spill] sm:$0xff] }
 0x39b   :  { %3489 = vmatprep.mubr.msk.f32.mxu1 %vm323_vm0, %v5647_v48  ;;  %v6743_v48 = vld [vmem:[#allocation69_spill] sm:$0xff] }
 0x39e   :  { %3490 = vmatmul.mubr.msk.f32.gmra.mrb[56].mxu1 %vm323_vm0, %v5654_v2  ;;  %v6744_v2 = vld [vmem:[#allocation70_spill] sm:$0xff] }
 0x39f   :  { %3492 = vmatprep.mubr.msk.f32.mxu1 %vm323_vm0, %v5661_v18  ;;  %v6745_v18 = vld [vmem:[#allocation71_spill] sm:$0xff] }
 0x3a2   :  { %3493 = vmatmul.mubr.msk.f32.gmra.mrb[58].mxu1 %vm323_vm0, %v5668_v10  ;;  %v6746_v10 = vld [vmem:[#allocation72_spill] sm:$0xff] }
 0x3a3   :  { %3495 = vmatprep.mubr.msk.f32.mxu1 %vm323_vm0, %v5675_v4  ;;  %v6747_v4 = vld [vmem:[#allocation73_spill] sm:$0xff] }
 0x3a6   :  { %3496 = vmatmul.mubr.msk.f32.gmra.mrb[60].mxu1 %vm323_vm0, %v6739_v23  ;;  %v2125_v23 = vrot.slane %v2124_v39, 2 }
 0x3a7   :  { %3498 = vmatprep.mubr.msk.f32.mxu1 %vm323_vm0, %v6740_v16  ;;  %v2100_v16 = vadd.f32 %v2099_v59, %v2098_v31 }
 0x3a8   :  { %v2126_v47 = vadd.f32 %v2125_v23, %v2124_v39 }
 0x3a9   :  { %v2101_v15 = vrot.slane %v2100_v16, 1 }
 0x3aa   :  { %3499 = vmatmul.mubr.msk.f32.gmra.mrb[62].mxu1 %vm323_vm0, %v6741_v8  ;;  %v2113_v8 = vadd.f32 %v2112_v28, %v2111_v6  ;;  %v2127_v42 = vrot.slane %v2126_v47, 1 }
 0x3ab   :  { %3501 = vmatprep.mubr.msk.f32.mxu1 %vm323_vm0, %v6742_v45  ;;  %v6764_v45 = vld [vmem:[#allocation18_spill] sm:$0xff]  ;;  %v2102_v28 = vadd.f32 %v2101_v15, %v2100_v16 }
 0x3ac   :  { %v2114_v24 = vrot.slane %v2113_v8, 1 }
 0x3ae   :  { %3502 = vmatmul.mubr.msk.f32.gmra.mrb[64].mxu1 %vm323_vm0, %v6743_v48  ;;  %v6765_v48 = vld [vmem:[#allocation62_spill] sm:$0xff]  ;;  %v2115_v60 = vadd.f32 %v2114_v24, %v2113_v8 }
 0x3af   :  { %3504 = vmatprep.mubr.msk.f32.mxu1 %vm323_vm0, %v6744_v2  ;;  %v2186_v2 = vadd.f32 %v6765_v48, %v2183_v13 }
 0x3b2   :  { %3505 = vmatmul.mubr.msk.f32.gmra.mrb[66].mxu1 %vm323_vm0, %v6745_v18  ;;  %v2150_v18 = vadd.f32 %v2149_v34, %v6762_v62 }
 0x3b3   :  { %3507 = vmatprep.mubr.msk.f32.mxu1 %vm323_vm0, %v6746_v10  ;;  %v6766_v10 = vld [vmem:[#allocation16_spill] sm:$0xff] }
 0x3b4   :  { %v2151_v1 = vrot.slane %v2150_v18, 2 }
 0x3b6   :  { %3508 = vmatmul.mubr.msk.f32.gmra.mrb[68].mxu1 %vm323_vm0, %v6747_v4  ;;  %v6767_v4 = vld [vmem:[#allocation64_spill] sm:$0xff]  ;;  %v2152_v41 = vadd.f32 %v2151_v1, %v2150_v18 }
 0x3b7   :  { %3510 = vmatprep.mubr.msk.f32.mxu1 %vm323_vm0, %v6748_v55  ;;  %v2174_v55 = vadd.f32 %v6767_v4, %v2171_v12 }
 0x3b8   :  { %v2153_v62 = vrot.slane %v2152_v41, 1 }
 0x3b9   :  { %v2175_v33 = vrot.slane %v2174_v55, 4 }
 0x3ba   :  { %3511 = vmatmul.mubr.msk.f32.gmra.mrb[70].mxu1 %vm323_vm0, %v6749_v7  ;;  %v2138_v7 = vrot.slane %v2137_v11, 2  ;;  %v2154_v23 = vadd.f32 %v2153_v62, %v2152_v41 }
 0x3bb   :  { %3513 = vmatprep.mubr.msk.f32.mxu1 %vm323_vm0, %v6750_v26  ;;  %v6768_v26 = vld [vmem:[#allocation65_spill] sm:$0xff]  ;;  %v2176_v31 = vadd.f32 %v2175_v33, %v2174_v55 }
 0x3bc   :  { %v2139_v6 = vadd.f32 %v2138_v7, %v2137_v11 }
 0x3bd   :  { %v2177_v59 = vrot.slane %v2176_v31, 2 }
 0x3be   :  { %3514 = vmatmul.mubr.msk.f32.gmra.mrb[72].mxu1 %vm323_vm0, %v6751_v27  ;;  %v2162_v27 = vrot.slane %v6768_v26, 4  ;;  %v2140_v39 = vrot.slane %v2139_v6, 1 }
 0x3bf   :  { %3516 = vmatprep.mubr.msk.f32.mxu1 %vm323_vm0, %v6752_v9  ;;  %v2187_v9 = vadd.f32 %v2186_v2, %v2184_v56  ;;  %v2178_v34 = vadd.f32 %v2177_v59, %v2176_v31  ;;  %v2194_v56 = vsel %vm1217_vm1, %v2102_v28, %v2115_v60 }
 0x3c0   :  { %v2141_v12 = vadd.f32 %v2140_v39, %v2139_v6 }
 0x3c1   :  { %v2188_v44 = vrot.slane %v2187_v9, 4 }
 0x3c2   :  { %3517 = vmatmul.mubr.msk.f32.gmra.mrb[74].mxu1 %vm323_vm0, %v6755_v63  ;;  %v6769_v63 = vld [vmem:[#allocation19_spill] sm:$0xff] }
 0x3c3   :  { %3519 = vmatprep.mubr.msk.f32.mxu1 %vm323_vm0, %v6756_v3  ;;  %v2163_v3 = vadd.f32 %v2162_v27, %v6768_v26 }
 0x3c6   :  { %3520 = vmatmul.mubr.msk.f32.gmra.mrb[76].mxu1 %vm323_vm0, %v6758_v32  ;;  %v2164_v32 = vrot.slane %v2163_v3, 2 }
 0x3c7   :  { %3522 = vmatprep.mubr.msk.f32.mxu1 %vm323_vm0, %v6759_v58  ;;  %v2189_v58 = vadd.f32 %v2188_v44, %v2187_v9 }
 0x3c8   :  { %v2165_v13 = vadd.f32 %v2164_v32, %v2163_v3 }
 0x3c9   :  { %v2190_v20 = vrot.slane %v2189_v58, 2 }
 0x3ca   :  { %3523 = vmatmul.mubr.msk.f32.gmra.mrb[78].mxu1 %vm323_vm0, %v6761_v49  ;;  %v2128_v49 = vadd.f32 %v2127_v42, %v2126_v47 }
 0x3cb   :  { %3525 = vmatprep.mubr.msk.f32.mxu1 %vm323_vm0, %v6763_v0  ;;  %v2166_v0 = vrot.slane %v2165_v13, 1  ;;  %v2191_v11 = vadd.f32 %v2190_v20, %v2189_v58 }
 0x3cc   :  { %v2195_v48 = vsel %vm1219_vm2, %v2194_v56, %v2128_v49  ;;  %v6772_v56 = vld [vmem:[#allocation41_spill] sm:$0xff] }
 0x3cd   :  { %v2167_v2 = vadd.f32 %v2166_v0, %v2165_v13  ;;  %v2196_v18 = vsel %vm1221_vm3, %v2195_v48, %v2141_v12  ;;  %v2192_v8 = vrot.slane %v2191_v11, 1 }
 0x3ce   :  { %3526 = vmatmul.mubr.msk.f32.gmra.mrb[80].mxu1 %vm323_vm0, %v6764_v45  ;;  %v2179_v45 = vrot.slane %v2178_v34, 1 }
 0x3cf   :  { %3528 = vmatprep.mubr.msk.f32.mxu1 %vm323_vm0, %v6766_v10  ;;  %v2197_v10 = vsel %vm1223_vm4, %v2196_v18, %v2154_v23  ;;  %v2193_v55 = vadd.f32 %v2192_v8, %v2191_v11  ;;  %v6773_v11 = vld [vmem:[#allocation42_spill] sm:$0xff] }
 0x3d0   :  { %v2180_v16 = vadd.f32 %v2179_v45, %v2178_v34  ;;  %v2198_v4 = vsel %vm1225_vm5, %v2197_v10, %v2167_v2 }
 0x3d2   :  { %3529 = vmatmul.mubr.msk.f32.gmra.mrb[82].mxu1 %vm323_vm0, %v6769_v63  ;;  %v2199_v7 = vsel %vm1227_vm6, %v2198_v4, %v2180_v16  ;;  %v6774_v16 = vld [vmem:[#allocation43_spill] sm:$0xff] }
 0x3d3   :  { %v2200_v26 = vsel %vm1229_vm7, %v2199_v7, %v2193_v55  ;;  %v6775_v7 = vld [vmem:[#allocation44_spill] sm:$0xff] }
 0x459   :  { %v3133_v27 = vpop.f32.mrb[50].mxu1 }
 0x45a   :  { %v3134_v9 = vpop.f32.mrb[51].mxu1 }
 0x45b   :  { %v3135_v47 = vadd.f32 %v3134_v9, %v3133_v27 }
 0x45d   :  { %v2087_v33 = vadd.f32 %v3135_v47, %v5561_v43  ;;  %v6776_v47 = vld [vmem:[#allocation45_spill] sm:$0xff] }
 0x45f   :  { %v2201_v15 = vmul.f32 %v2200_v26, %v2087_v33 }
 0x461   :  { %v2202_v24 = vrot.slane %v2201_v15, 4 }
 0x463   :  { %v2203_v63 = vadd.f32 %v2202_v24, %v2201_v15 }
 0x465   :  { %v2204_v3 = vrot.slane %v2203_v63, 2 }
 0x467   :  { %v2205_v44 = vadd.f32 %v2204_v3, %v2203_v63  ;;  %v6777_v3 = vld [vmem:[#allocation46_spill] sm:$0xff] }
 0x469   :  { %v2206_v1 = vrot.slane %v2205_v44, 1  ;;  %v3485_v31 = vpop.f32.mrb[52].mxu1 }
 0x46a   :  { %v2442_v6 = vadd.f32 %v3485_v31, %v6713_v38  ;;  %v2282_v32 = vpop.f32.mrb[53].mxu1 }
 0x46b   :  { %v2441_v58 = vadd.f32 %v2282_v32, %v6714_v61  ;;  %v2207_v42 = vadd.f32 %v2206_v1, %v2205_v44  ;;  %v6770_v61 = vld [vmem:[#allocation39_spill] sm:$0xff] }
 0x46c   :  { %3943 = vtanh.f32 %v2442_v6  ;;  %v6778_v6 = vld [vmem:[#allocation47_spill] sm:$0xff] }
 0x46d   :  { %3945 = vtanh.f32 %v2441_v58  ;;  %v3488_v41 = vpop.f32.mrb[54].mxu1  ;;  %v6238_v59 = vsel %vm1219_vm2, %v6006_v21, %v2207_v42  ;;  %v6771_v21 = vld [vmem:[#allocation40_spill] sm:$0xff] }
 0x46e   :  { %v2444_v28 = vadd.f32 %v3488_v41, %v6715_v30  ;;  %v2292_v60 = vpop.f32.mrb[55].mxu1 }
 0x46f   :  { %v2443_v39 = vadd.f32 %v2292_v60, %v6716_v53 }
 0x470   :  { %3947 = vtanh.f32 %v2444_v28  ;;  %v6779_v28 = vld [vmem:[#allocation48_spill] sm:$0xff] }
 0x471   :  { %3949 = vtanh.f32 %v2443_v39  ;;  %v3491_v13 = vpop.f32.mrb[56].mxu1 }
 0x472   :  { %v2446_v38 = vadd.f32 %v3491_v13, %v6717_v35  ;;  %v2302_v49 = vpop.f32.mrb[57].mxu1 }
 0x473   :  { %v2445_v62 = vadd.f32 %v2302_v49, %v6770_v61 }
 0x474   :  { %3951 = vtanh.f32 %v2446_v38  ;;  %v6780_v38 = vld [vmem:[#allocation49_spill] sm:$0xff] }
 0x475   :  { %3953 = vtanh.f32 %v2445_v62  ;;  %v3494_v34 = vpop.f32.mrb[58].mxu1 }
 0x476   :  { %v6244_v20 = vpop.eup %3943  ;;  %v2448_v12 = vadd.f32 %v3494_v34, %v6771_v21  ;;  %v2312_v0 = vpop.f32.mrb[59].mxu1  ;;  %v6781_v21 = vld [vmem:[#allocation50_spill] sm:$0xff] }
 0x477   :  { %v6247_v30 = vpop.eup %3945  ;;  %v2447_v53 = vadd.f32 %v2312_v0, %v6772_v56 }
 0x478   :  { %3955 = vtanh.f32 %v2448_v12  ;;  %v3709_v23 = vpack.c.bf16 %v6244_v20, %v6247_v30 }
 0x479   :  { %3957 = vtanh.f32 %v2447_v53  ;;  %v3497_v35 = vpop.f32.mrb[60].mxu1  ;;  %v6782_v53 = vld [vmem:[#allocation51_spill] sm:$0xff] }
 0x47a   :  { %v6252_v45 = vpop.eup %3947  ;;  %v2450_v48 = vadd.f32 %v3497_v35, %v6773_v11  ;;  %v2322_v2 = vpop.f32.mrb[61].mxu1 }
 0x47b   :  { %v6255_v18 = vpop.eup %3949  ;;  %v2449_v8 = vadd.f32 %v2322_v2, %v6774_v16  ;;  %v6783_v16 = vld [vmem:[#allocation52_spill] sm:$0xff] }
 0x47c   :  { %3959 = vtanh.f32 %v2450_v48  ;;  %v3713_v10 = vpack.c.bf16 %v6252_v45, %v6255_v18 }
 0x47d   :  { %3961 = vtanh.f32 %v2449_v8  ;;  %v3500_v4 = vpop.f32.mrb[62].mxu1 }
 0x47e   :  { %v6260_v55 = vpop.eup %3951  ;;  %v2452_v26 = vadd.f32 %v3500_v4, %v6775_v7  ;;  %v2332_v27 = vpop.f32.mrb[63].mxu1 }
 0x47f   :  { %v6263_v9 = vpop.eup %3953  ;;  %v2451_v33 = vadd.f32 %v2332_v27, %v6776_v47 }
 0x480   :  { %3963 = vtanh.f32 %v2452_v26  ;;  %v3717_v15 = vpack.c.bf16 %v6260_v55, %v6263_v9  ;;  %v6784_v26 = vld [vmem:[#allocation53_spill] sm:$0xff] }
 0x481   :  { %3965 = vtanh.f32 %v2451_v33  ;;  %v3503_v24 = vpop.f32.mrb[64].mxu1 }
 0x482   :  { %v6268_v63 = vpop.eup %3955  ;;  %v2454_v44 = vadd.f32 %v3503_v24, %v6777_v3  ;;  %v2342_v1 = vpop.f32.mrb[65].mxu1  ;;  %v6785_v3 = vld [vmem:[#allocation54_spill] sm:$0xff] }
 0x483   :  { %v6271_v31 = vpop.eup %3957  ;;  %v2453_v32 = vadd.f32 %v2342_v1, %v6778_v6 }
 0x484   :  { %3967 = vtanh.f32 %v2454_v44  ;;  %v3721_v58 = vpack.c.bf16 %v6268_v63, %v6271_v31 }
 0x485   :  { %3969 = vtanh.f32 %v2453_v32  ;;  %v3506_v42 = vpop.f32.mrb[66].mxu1  ;;  %v6786_v32 = vld [vmem:[#allocation55_spill] sm:$0xff] }
 0x486   :  { %v6276_v41 = vpop.eup %3959  ;;  %v2456_v60 = vadd.f32 %v3506_v42, %v6779_v28  ;;  %v2352_v39 = vpop.f32.mrb[67].mxu1 }
 0x487   :  { %v6279_v13 = vpop.eup %3961  ;;  %v2455_v49 = vadd.f32 %v2352_v39, %v6780_v38 }
 0x488   :  { %3971 = vtanh.f32 %v2456_v60  ;;  %v3725_v61 = vpack.c.bf16 %v6276_v41, %v6279_v13  ;;  %v6787_v41 = vld [vmem:[#allocation20_spill] sm:$0xff] }
 0x489   :  { %3973 = vtanh.f32 %v2455_v49  ;;  %v3509_v62 = vpop.f32.mrb[68].mxu1  ;;  %v2582_v13 = vrot.slane %v6787_v41, 4 }
 0x48a   :  { %v6284_v34 = vpop.eup %3963  ;;  %v2458_v12 = vadd.f32 %v3509_v62, %v6781_v21  ;;  %v2362_v0 = vpop.f32.mrb[69].mxu1 }
 0x48b   :  { %v6287_v56 = vpop.eup %3965  ;;  %v2457_v35 = vadd.f32 %v2362_v0, %v6782_v53 }
 0x48c   :  { %3975 = vtanh.f32 %v2458_v12  ;;  %v3729_v11 = vpack.c.bf16 %v6284_v34, %v6287_v56  ;;  %v6789_v56 = vld [vmem:[#allocation22_spill] sm:$0xff] }
 0x48d   :  { %3977 = vtanh.f32 %v2457_v35  ;;  %v3512_v48 = vpop.f32.mrb[70].mxu1 }
 0x48e   :  { %v6292_v2 = vpop.eup %3967  ;;  %v2460_v8 = vadd.f32 %v3512_v48, %v6783_v16  ;;  %v2372_v4 = vpop.f32.mrb[71].mxu1 }
 0x48f   :  { %v6295_v7 = vpop.eup %3969  ;;  %v2459_v27 = vadd.f32 %v2372_v4, %v6784_v26 }
 0x490   :  { %3979 = vtanh.f32 %v2460_v8  ;;  %v3733_v47 = vpack.c.bf16 %v6292_v2, %v6295_v7  ;;  %v6790_v2 = vld [vmem:[#allocation23_spill] sm:$0xff] }
 0x491   :  { %3981 = vtanh.f32 %v2459_v27  ;;  %v3515_v33 = vpop.f32.mrb[72].mxu1  ;;  %v2621_v7 = vrot.slane %v6790_v2, 4 }
 0x492   :  { %v6300_v24 = vpop.eup %3971  ;;  %v2462_v44 = vadd.f32 %v3515_v33, %v6785_v3  ;;  %v2382_v1 = vpop.f32.mrb[73].mxu1 }
 0x493   :  { %v6303_v6 = vpop.eup %3973  ;;  %v2461_v42 = vadd.f32 %v2382_v1, %v6786_v32 }
 0x494   :  { %3983 = vtanh.f32 %v2462_v44  ;;  %v3737_v28 = vpack.c.bf16 %v6300_v24, %v6303_v6  ;;  %v2668_v24 = vmul.f32 %v6188_v57, %v5974_v19  ;;  %v6794_v57 = vld [vmem:[#allocation27_spill] sm:$0xff] }
 0x495   :  { %3985 = vtanh.f32 %v2461_v42  ;;  %v3518_v60 = vpop.f32.mrb[74].mxu1 }
 0x496   :  { %v3976_v39 = vpop.eup %3975  ;;  %v2464_v38 = vadd.f32 %v3518_v60, %v5079_v29  ;;  %v2392_v49 = vpop.f32.mrb[75].mxu1  ;;  %v2583_v60 = vadd.f32 %v2582_v13, %v6787_v41 }
 0x497   :  { %v3978_v62 = vpop.eup %3977  ;;  %v2463_v21 = vadd.f32 %v2392_v49, %v6643_v14 }
 0x498   :  { %3987 = vtanh.f32 %v2464_v38  ;;  %v3707_v12 = vpack.c.bf16 %v3976_v39, %v3978_v62  ;;  %v2584_v38 = vrot.slane %v2583_v60, 2  ;;  %v2622_v62 = vadd.f32 %v2621_v7, %v6790_v2 }
 0x499   :  { %3989 = vtanh.f32 %v2463_v21  ;;  %v3521_v0 = vpop.f32.mrb[76].mxu1  ;;  %v2669_v21 = vmul.f32 %v6212_v46, %v5979_v5 }
 0x49a   :  { %v3980_v53 = vpop.eup %3979  ;;  %v2466_v35 = vadd.f32 %v3521_v0, %v5089_v36  ;;  %v2402_v48 = vpop.f32.mrb[77].mxu1  ;;  %3708 = vmatprep.subr.bf16.mxu0 %v3707_v12  ;;  %v2585_v0 = vadd.f32 %v2584_v38, %v2583_v60  ;;  %v2623_v19 = vrot.slane %v2622_v62, 2 }
 0x49b   :  { %v3982_v16 = vpop.eup %3981  ;;  %v2465_v8 = vadd.f32 %v2402_v48, %v5092_v40  ;;  %3710 = vmatpush3.bf16.msra.mxu0 %v3709_v23 }
 0x49c   :  { %3991 = vtanh.f32 %v2466_v35  ;;  %v3711_v29 = vpack.c.bf16 %v3980_v53, %v3982_v16  ;;  %v6792_v35 = vld [vmem:[#allocation24_spill] sm:$0xff] }
 0x49d   :  { %3993 = vtanh.f32 %v2465_v8  ;;  %v3524_v14 = vpop.f32.mrb[78].mxu1  ;;  %v2671_v48 = vadd.f32 %v6792_v35, %v2668_v24  ;;  %v6793_v8 = vld [vmem:[#allocation26_spill] sm:$0xff] }
 0x49e   :  { %v3984_v4 = vpop.eup %3983  ;;  %v2468_v26 = vadd.f32 %v3524_v14, %v5100_v51  ;;  %v2412_v27 = vpop.f32.mrb[79].mxu1  ;;  %3712 = vmatprep.subr.bf16.mxu0 %v3711_v29  ;;  %v2647_v14 = vrot.slane %v6794_v57, 4 }
 0x49f   :  { %v3986_v33 = vpop.eup %3985  ;;  %v2467_v36 = vadd.f32 %v2412_v27, %v5103_v17  ;;  %3714 = vmatpush3.bf16.msra.mxu0 %v3713_v10  ;;  %v2586_v27 = vrot.slane %v2585_v0, 1 }
 0x4a0   :  { %3995 = vtanh.f32 %v2468_v26  ;;  %v3715_v40 = vpack.c.bf16 %v3984_v4, %v3986_v33  ;;  %v2672_v4 = vadd.f32 %v2671_v48, %v2669_v21 }
 0x4a1   :  { %3997 = vtanh.f32 %v2467_v36  ;;  %v3527_v20 = vpop.f32.mrb[80].mxu1  ;;  %v2648_v36 = vadd.f32 %v2647_v14, %v6794_v57 }
 0x4a2   :  { %v3988_v30 = vpop.eup %3987  ;;  %v2470_v23 = vadd.f32 %v3527_v20, %v5111_v50  ;;  %v2422_v3 = vpop.f32.mrb[81].mxu1  ;;  %3716 = vmatprep.subr.bf16.mxu0 %v3715_v40  ;;  %v2624_v20 = vadd.f32 %v2623_v19, %v2622_v62 }
 0x4a3   :  { %v3990_v44 = vpop.eup %3989  ;;  %v2469_v51 = vadd.f32 %v2422_v3, %v5114_v37  ;;  %3718 = vmatpush3.bf16.msra.mxu0 %v3717_v15 }
 0x4a4   :  { %3999 = vtanh.f32 %v2470_v23  ;;  %v3719_v17 = vpack.c.bf16 %v3988_v30, %v3990_v44  ;;  %v2649_v30 = vrot.slane %v2648_v36, 2 }
 0x4a5   :  { %4001 = vtanh.f32 %v2469_v51  ;;  %v3530_v45 = vpop.f32.mrb[82].mxu1 }
 0x4a6   :  { %v3992_v18 = vpop.eup %3991  ;;  %v2472_v10 = vadd.f32 %v3530_v45, %v5122_v25  ;;  %v2432_v1 = vpop.f32.mrb[83].mxu1  ;;  %3720 = vmatprep.subr.bf16.mxu0 %v3719_v17  ;;  %v2587_v17 = vadd.f32 %v2586_v27, %v2585_v0 }
 0x4a7   :  { %v3994_v32 = vpop.eup %3993  ;;  %v2471_v50 = vadd.f32 %v2432_v1, %v5125_v22  ;;  %3722 = vmatpush3.bf16.msra.mxu0 %v3721_v58 }
 0x4a8   :  { %4003 = vtanh.f32 %v2472_v10  ;;  %v3723_v37 = vpack.c.bf16 %v3992_v18, %v3994_v32  ;;  %v2625_v18 = vrot.slane %v2624_v20, 1  ;;  %v2650_v10 = vadd.f32 %v2649_v30, %v2648_v36 }
 0x4a9   :  { %4005 = vtanh.f32 %v2471_v50 }
 0x4aa   :  { %v3996_v55 = vpop.eup %3995  ;;  %3724 = vmatprep.subr.bf16.mxu0 %v3723_v37 }
 0x4ab   :  { %v3998_v9 = vpop.eup %3997  ;;  %3726 = vmatpush3.bf16.msra.mxu0 %v3725_v61  ;;  %v6788_v61 = vld [vmem:[#allocation21_spill] sm:$0xff] }
 0x4ac   :  { %v3727_v25 = vpack.c.bf16 %v3996_v55, %v3998_v9  ;;  %v2595_v34 = vrot.slane %v6788_v61, 4  ;;  %v2626_v55 = vadd.f32 %v2625_v18, %v2624_v20  ;;  %v2651_v9 = vrot.slane %v2650_v10, 1 }
 0x4ae   :  { %v4000_v15 = vpop.eup %3999  ;;  %3728 = vmatprep.subr.bf16.mxu0 %v3727_v25  ;;  %v2596_v39 = vadd.f32 %v2595_v34, %v6788_v61 }
 0x4af   :  { %v4002_v42 = vpop.eup %4001  ;;  %3730 = vmatpush3.bf16.msra.mxu0 %v3729_v11  ;;  %v2608_v11 = vrot.slane %v6789_v56, 4 }
 0x4b0   :  { %v3731_v22 = vpack.c.bf16 %v4000_v15, %v4002_v42  ;;  %v2597_v49 = vrot.slane %v2596_v39, 2 }
 0x4b2   :  { %v4004_v63 = vpop.eup %4003  ;;  %3732 = vmatprep.subr.bf16.mxu0 %v3731_v22  ;;  %v2598_v53 = vadd.f32 %v2597_v49, %v2596_v39 }
 0x4b3   :  { %v4006_v31 = vpop.eup %4005  ;;  %3734 = vmatpush3.bf16.msra.mxu0 %v3733_v47  ;;  %v2609_v47 = vadd.f32 %v2608_v11, %v6789_v56 }
 0x4b4   :  { %v3735_v58 = vpack.c.bf16 %v4004_v63, %v4006_v31  ;;  %v2599_v33 = vrot.slane %v2598_v53, 1  ;;  %v2652_v31 = vadd.f32 %v2651_v9, %v2650_v10 }
 0x4b5   :  { %v2610_v12 = vrot.slane %v2609_v47, 2 }
 0x4b6   :  { %3736 = vmatprep.subr.bf16.mxu0 %v3735_v58  ;;  %v2600_v45 = vadd.f32 %v2599_v33, %v2598_v53 }
 0x4b7   :  { %3738 = vmatpush3.bf16.msra.mxu0 %v3737_v28  ;;  %v2656_v28 = vmul.f32 %v6200_v52, %v5979_v5  ;;  %v2611_v26 = vadd.f32 %v2610_v12, %v2609_v47  ;;  %v2673_v5 = vrot.slane %v2672_v4, 4 }
 0x4b8   :  { %v2679_v25 = vsel %vm1217_vm1, %v2587_v17, %v2600_v45 }
 0x4b9   :  { %v2659_v29 = vadd.f32 %v6793_v8, %v2656_v28  ;;  %v2674_v23 = vadd.f32 %v2673_v5, %v2672_v4  ;;  %v2612_v3 = vrot.slane %v2611_v26, 1 }
 0x4ba   :  { %2570 = vmatmul.mubr.f32.vlgmr.msra.gmra.mrb[82].mxu0 %v6117_v54  ;;  %v6791_v54 = vld [vmem:[#allocation25_spill] sm:$0xff] }
 0x4bb   :  { %v2634_v6 = vrot.slane %v6791_v54, 4  ;;  %v2660_v52 = vrot.slane %v2659_v29, 4  ;;  %v2613_v1 = vadd.f32 %v2612_v3, %v2611_v26  ;;  %v2675_v37 = vrot.slane %v2674_v23, 2 }
 0x4bd   :  { %v2635_v16 = vadd.f32 %v2634_v6, %v6791_v54  ;;  %v2661_v40 = vadd.f32 %v2660_v52, %v2659_v29  ;;  %v2676_v22 = vadd.f32 %v2675_v37, %v2674_v23  ;;  %v2680_v63 = vsel %vm1219_vm2, %v2679_v25, %v2613_v1 }
 0x4be   :  { %v2681_v58 = vsel %vm1221_vm3, %v2680_v63, %v2626_v55 }
 0x4bf   :  { %v2636_v46 = vrot.slane %v2635_v16, 2  ;;  %v2662_v51 = vrot.slane %v2661_v40, 2  ;;  %v2677_v13 = vrot.slane %v2676_v22, 1 }
 0x4c1   :  { %v2637_v44 = vadd.f32 %v2636_v46, %v2635_v16  ;;  %v2663_v50 = vadd.f32 %v2662_v51, %v2661_v40  ;;  %v2678_v56 = vadd.f32 %v2677_v13, %v2676_v22 }
 0x4c3   :  { %v2638_v32 = vrot.slane %v2637_v44, 1  ;;  %v2664_v42 = vrot.slane %v2663_v50, 1 }
 0x4c5   :  { %v2639_v15 = vadd.f32 %v2638_v32, %v2637_v44  ;;  %v2665_v41 = vadd.f32 %v2664_v42, %v2663_v50 }
 0x4c7   :  { %v2682_v61 = vsel %vm1223_vm4, %v2681_v58, %v2639_v15 }
 0x4c8   :  { %v2683_v34 = vsel %vm1225_vm5, %v2682_v61, %v2652_v31 }
 0x4c9   :  { %v2684_v11 = vsel %vm1227_vm6, %v2683_v34, %v2665_v41 }
 0x4ca   :  { %v2685_v60 = vsel %vm1229_vm7, %v2684_v11, %v2678_v56 }
 0x58d   :  { %v3208_v39 = vpop.f32.mrb[82].mxu0 }
 0x58e   :  { %v3209_v2 = vpop.f32.mrb[83].mxu0 }
 0x58f   :  { %v3210_v7 = vadd.f32 %v3209_v2, %v3208_v39 }
 0x591   :  { %v2572_v47 = vadd.f32 %v3210_v7, %v5561_v43 }
 0x593   :  { %v2686_v38 = vmul.f32 %v2685_v60, %v2572_v47 }
 0x595   :  { %v2687_v49 = vrot.slane %v2686_v38, 4 }
 0x597   :  { %v2688_v24 = vadd.f32 %v2687_v49, %v2686_v38 }
 0x599   :  { %v2689_v54 = vrot.slane %v2688_v24, 2 }
 0x59b   :  { %v2690_v6 = vadd.f32 %v2689_v54, %v2688_v24 }
 0x59d   :  { %v2691_v28 = vrot.slane %v2690_v6, 1 }
 0x59f   :  { %v2692_v62 = vadd.f32 %v2691_v28, %v2690_v6 }
 0x5a1   :  { %v2695_v21 = vsel %vm1221_vm3, %v6238_v59, %v2692_v62 }
 0x5a2   :  { %2696 = vst [vmem:[#allocation2] sm:$0xf] %v2695_v21 }
 0x5a3   :  { %4092 = shalt.err (!%p4089_p4)
}
 0x5a4   :  { %s4093_s8 = scalar_lea.hbm %s6391_s6, 64 }
 0x5a5   :  { %p4094_p5 = scmp.ne.s32.totalorder %s6391_s6, %s4093_s8  ;;  %p4097_p6 = scmp.lt.u32.totalorder %s4093_s8, %s6391_s6 }
 0x5a7   :  { %p4099_p7 = pnand %p4097_p6, %p4094_p5 }
 0x5a9   :  { %4102 = shalt.err (!%p4099_p7)
}
 0x5aa   :  { %2706 = dma.vmem_to_hbm [thread:$0]  %s2704_s7, 64, %s6391_s6, [#allocation3]  }
 0x5ab   :  { %4103 = dma.done.wait [#allocation3], 64  }
 0x5ac   :  { %4104 = vsyncadd [#allocation3], 4294967232 }
 0x5ad   :  { %2710 = vsyncpa [#allocation3], 1 }

</bundles_post_ra>
